<compile_context>
chip_gen: v6e
topology: v6e:2x2x1
jax: 0.10.0
libtpu: 0.0.40
codegen_flags: <defaults>
</compile_context>

<pallas_src>
import functools

import jax
import jax.numpy as jnp
from jax.experimental import pallas as pl
from jax.experimental.pallas import tpu as pltpu


def _vmem_limit_bytes():
    """Generation-aware VMEM cap (~85% of physical), conservative fallback."""
    try:
        info = pltpu.get_tpu_info()
        cap = None
        for name in ("vmem_capacity_bytes", "vmem_size_bytes", "vmem_bytes"):
            cap = getattr(info, name, None)
            if cap:
                break
        if cap:
            return max(int(cap) * 85 // 100, 32 * 1024 * 1024)
    except Exception:
        pass
    return 64 * 1024 * 1024


_VMEM_LIMIT = _vmem_limit_bytes()
_ROW_TILE = 1024 if _VMEM_LIMIT >= 96 * 1024 * 1024 else 512   # bigger tiles off v7x


def _chunk_size(n, target):
    """Largest divisor of n that is <= target (n itself if n <= target)."""
    if n <= target:
        return n
    for c in range(target, 0, -1):
        if n % c == 0:
            return c
    return n


# ----------------------------------------------------------------------------
# Fused GEMM (+ optional per-column scale/shift + activation), row-tiled grid.
# Serves: im2col convs (BN folded), prenet, lin_target, projection, and the
# hoisted input-side LSTM gate precomputations.  bf16 operands, f32 accumulate,
# optional bf16 output for layer-to-layer chaining.
# ----------------------------------------------------------------------------
def _gemm_bias_act_kernel(*refs, act, has_scale, has_shift):
    x_ref, w_ref = refs[0], refs[1]
    o_ref = refs[-1]
    idx = 2
    y = jnp.dot(x_ref[...], w_ref[...], preferred_element_type=jnp.float32)
    if has_scale:
        y = y * refs[idx][...]
        idx += 1
    if has_shift:
        y = y + refs[idx][...]
        idx += 1
    if act == 'relu':
        y = jnp.maximum(y, 0.0)
    elif act == 'tanh':
        y = jnp.tanh(y)
    o_ref[...] = y.astype(o_ref.dtype)


def gemm_bias_act(x, w, scale=None, shift=None, act=None, out_dtype=jnp.float32):
    R, Kd = x.shape
    N = w.shape[1]
    TR = min(R, _ROW_TILE)
    grid = (pl.cdiv(R, TR),)
    in_specs = [pl.BlockSpec((TR, Kd), lambda i: (i, 0)),
                pl.BlockSpec((Kd, N), lambda i: (0, 0))]
    args = [x.astype(jnp.bfloat16), w.astype(jnp.bfloat16)]
    if scale is not None:
        in_specs.append(pl.BlockSpec((1, N), lambda i: (0, 0)))
        args.append(scale.reshape(1, N).astype(jnp.float32))
    if shift is not None:
        in_specs.append(pl.BlockSpec((1, N), lambda i: (0, 0)))
        args.append(shift.reshape(1, N).astype(jnp.float32))
    return pl.pallas_call(
        functools.partial(_gemm_bias_act_kernel, act=act,
                          has_scale=scale is not None,
                          has_shift=shift is not None),
        out_shape=jax.ShapeDtypeStruct((R, N), out_dtype),
        grid=grid,
        in_specs=in_specs,
        out_specs=pl.BlockSpec((TR, N), lambda i: (i, 0)),
        compiler_params=pltpu.CompilerParams(
            dimension_semantics=("parallel",),
            vmem_limit_bytes=_VMEM_LIMIT),
    )(*args)


def conv1d_bn_act(x_ncl, w_oik, scale, shift, act, out_dtype=jnp.float32):
    """'same' Conv1d + folded eval-BatchNorm + activation via im2col GEMM.

    im2col columns are built in bf16 to halve the HBM blowup (v5e/v6e).
    TODO(synk): replace with a halo-blocked Pallas conv kernel (K in-kernel
    dots over overlapping L blocks) to remove the K-fold HBM traffic entirely.
    """
    B, Cin, Lx = x_ncl.shape
    Cout, _, K = w_oik.shape
    pad = K // 2
    x_blc = jnp.transpose(x_ncl, (0, 2, 1)).astype(jnp.bfloat16)   # (B, L, Cin)
    x_pad = jnp.pad(x_blc, ((0, 0), (pad, K - 1 - pad), (0, 0)))
    cols = jnp.concatenate([x_pad[:, k:k + Lx, :] for k in range(K)], axis=-1)
    x_col = cols.reshape(B * Lx, K * Cin)
    w_col = jnp.transpose(w_oik, (2, 1, 0)).reshape(K * Cin, Cout)
    y = gemm_bias_act(x_col, w_col, scale=scale, shift=shift, act=act,
                      out_dtype=out_dtype)
    return jnp.transpose(y.reshape(B, Lx, Cout), (0, 2, 1))        # (B, Cout, L)


# ----------------------------------------------------------------------------
# Bidirectional encoder LSTM recurrence, chunked over T.
# grid = (direction, T-chunk); direction is "parallel" (megacore on v7x),
# T-chunk is "arbitrary" with h/c carried in scratch.  Input gates x@Wih+b are
# precomputed outside; only h@Whh stays serial.  Backward direction reads its
# chunks in reverse via the index_map and reverses time within the chunk.
# ----------------------------------------------------------------------------
def _bilstm_kernel(xg_ref, whh_ref, h0_ref, c0_ref, o_ref, h_s, c_s, *, TC, H):
    d = pl.program_id(0)                       # 0 = forward, 1 = backward

    @pl.when(pl.program_id(1) == 0)
    def _():
        h_s[...] = h0_ref[...]
        c_s[...] = c0_ref[...]

    whh = whh_ref[...]                         # (H, 4H) bf16, hoisted

    @pl.loop(0, TC)
    def _(t):
        idx = jnp.where(d == 0, t, TC - 1 - t)   # in-chunk reversal for bwd dir
        gates = xg_ref[idx] + jnp.dot(h_s[...].astype(jnp.bfloat16), whh,
                                      preferred_element_type=jnp.float32)
        i = jax.nn.sigmoid(gates[:, 0 * H:1 * H])
        f = jax.nn.sigmoid(gates[:, 1 * H:2 * H])
        g = jnp.tanh(gates[:, 2 * H:3 * H])
        o = jax.nn.sigmoid(gates[:, 3 * H:4 * H])
        c = f * c_s[...] + i * g
        h = o * jnp.tanh(c)
        h_s[...] = h
        c_s[...] = c
        o_ref[idx] = h.astype(o_ref.dtype)


def bilstm(xg2, whh2_bf, h02, c02):
    _, T, B, H4 = xg2.shape
    H = H4 // 4
    TC = _chunk_size(T, 64)
    NC = T // TC
    # backward direction (d==1) walks chunks in reverse: chunk = NC-1-c
    t_map = lambda d, c: (d, d * (NC - 1) + (1 - 2 * d) * c, 0, 0)
    return pl.pallas_call(
        functools.partial(_bilstm_kernel, TC=TC, H=H),
        out_shape=jax.ShapeDtypeStruct((2, T, B, H), jnp.bfloat16),
        grid=(2, NC),
        in_specs=[pl.BlockSpec((None, TC, B, H4), t_map),
                  pl.BlockSpec((None, H, H4), lambda d, c: (d, 0, 0)),
                  pl.BlockSpec((None, B, H), lambda d, c: (d, 0, 0)),
                  pl.BlockSpec((None, B, H), lambda d, c: (d, 0, 0))],
        out_specs=pl.BlockSpec((None, TC, B, H), t_map),
        scratch_shapes=[pltpu.VMEM((B, H), jnp.float32),
                        pltpu.VMEM((B, H), jnp.float32)],
        compiler_params=pltpu.CompilerParams(
            dimension_semantics=("parallel", "arbitrary"),
            vmem_limit_bytes=_VMEM_LIMIT),
    )(xg2, whh2_bf, h02, c02)


# ----------------------------------------------------------------------------
# Teacher-forced decoder: location-aware attention + 2-layer LSTMCell stack.
# Grid over L-chunks ("arbitrary"); h/c/cumulative-attention carried in
# scratch; per-step dec/ctx/score streamed out via blocked out_specs (bf16 for
# dec/ctx).  Attention context and location conv run on the MXU.
# ----------------------------------------------------------------------------
def _decoder_kernel(melg_ref, enc_ref, lenc_ref, mask_ref,
                    wq_ref, ws_ref, wloc_ref, w0_ref, w1_ref, b1_ref,
                    hinit_ref, cinit_ref,
                    dec_ref, ctx_ref, score_ref,
                    h_s, c_s, pad_s,
                    *, TL, T, D, Kloc):
    B = enc_ref.shape[0]
    A = wq_ref.shape[1]
    pad = Kloc // 2
    bf16 = jnp.bfloat16
    f32 = jnp.float32

    @pl.when(pl.program_id(0) == 0)
    def _():
        h_s[...] = hinit_ref[...]
        c_s[...] = cinit_ref[...]
        pad_s[...] = jnp.zeros_like(pad_s)

    # hoist loop-invariant loads / broadcasts out of the serial loop
    wq = wq_ref[...]
    ws = ws_ref[...]
    wloc = wloc_ref[...]                         # (Kloc, A) bf16 (fused loc conv)
    w0 = w0_ref[...]                             # (E+D, 4D) = [wih0a ; whh0]
    w1 = w1_ref[...]                             # (2D, 4D)  = [wih1  ; whh1]
    b1 = jnp.broadcast_to(b1_ref[...], (B, b1_ref.shape[1]))
    mask = mask_ref[...]                         # additive bias, -1e30 on masked

    def lstm_cell(gates, c_prev):
        i = jax.nn.sigmoid(gates[:, 0 * D:1 * D])
        f = jax.nn.sigmoid(gates[:, 1 * D:2 * D])
        g = jnp.tanh(gates[:, 2 * D:3 * D])
        o = jax.nn.sigmoid(gates[:, 3 * D:4 * D])
        c = f * c_prev + i * g
        h = o * jnp.tanh(c)
        return h, c

    @pl.loop(0, TL)
    def _(t):
        # ---- location-aware attention (score path kept in f32) --------------
        query = h_s[1]                                            # pre-update h1
        lq = jnp.dot(query.astype(bf16), wq, preferred_element_type=f32)  # (B,A)

        # location conv as one MXU matmul: gather Kloc shifted taps of the
        # cumulative attention and contract with the fused (Kloc, A) weights.
        cum_pad = pad_s[...]                                      # (B, T+K-1)
        taps = jnp.stack([cum_pad[:, k:k + T] for k in range(Kloc)], axis=-1)
        conv_loc = jnp.dot(taps.reshape(B * T, Kloc).astype(bf16), wloc,
                           preferred_element_type=f32).reshape(B, T, A)

        e = jnp.tanh(lq[:, None, :] + lenc_ref[...] + conv_loc)
        score = jnp.sum(e * ws, axis=-1) + mask                   # (B, T)
        m = jnp.max(score, axis=-1, keepdims=True)
        p = jnp.exp(score - m)
        attn = p * pl.reciprocal(jnp.sum(p, axis=-1, keepdims=True), approx=True)

        # context on the MXU: (B,1,T) @ (B,T,E)
        ctx = jnp.einsum('bqt,bte->bqe', attn[:, None, :].astype(bf16),
                         enc_ref[...], preferred_element_type=f32)[:, 0, :]

        score_ref[t] = attn
        pad_s[:, pad:pad + T] = cum_pad[:, pad:pad + T] + attn    # cumulative attn

        # ---- 2-layer LSTMCell stack, fused input/recurrent matmuls ----------
        x0 = jnp.concatenate([ctx, h_s[0]], axis=-1).astype(bf16)     # (B, E+D)
        gates0 = melg_ref[t] + jnp.dot(x0, w0, preferred_element_type=f32)
        h0n, c0n = lstm_cell(gates0, c_s[0])
        h_s[0] = h0n
        c_s[0] = c0n

        x1 = jnp.concatenate([h0n, h_s[1]], axis=-1).astype(bf16)     # (B, 2D)
        gates1 = jnp.dot(x1, w1, preferred_element_type=f32) + b1
        h1n, c1n = lstm_cell(gates1, c_s[1])
        h_s[1] = h1n
        c_s[1] = c1n

        dec_ref[t] = h1n.astype(dec_ref.dtype)
        ctx_ref[t] = ctx.astype(ctx_ref.dtype)


# ----------------------------------------------------------------------------
# Model glue (parameter plumbing, transposes, gathers) in plain JAX
# ----------------------------------------------------------------------------
def _bn_scale_shift(blk, eps=1e-5):
    scale = blk['gamma'] / jnp.sqrt(blk['rv'] + eps)
    shift = blk['beta'] - blk['rm'] * scale
    return scale, shift


def encoder_forward(p, text, cfg):
    embed = p['embed'][text]                           # (B, Tt, embed) gather (glue)
    x = jnp.transpose(embed, (0, 2, 1))                # (B, C, Tt)
    for blk in p['enc_convs']:
        scale, shift = _bn_scale_shift(blk)
        # Dropout = identity (eval); bf16 chaining between conv layers
        x = conv1d_bn_act(x, blk['w'], scale, shift, 'relu', out_dtype=jnp.bfloat16)
    B, C, Tt = x.shape
    H = cfg['enc_lstm_dim'] // 2
    x_t = jnp.transpose(x, (2, 0, 1))                  # (Tt, B, C) time-major

    # hoisted input-side gates for BOTH directions in one GEMM: (Tt*B, C)x(C, 8H)
    pf, pb = p['enc_lstm']['fwd'], p['enc_lstm']['bwd']
    wih_both = jnp.concatenate([pf['wih'].T, pb['wih'].T], axis=1)
    b_both = jnp.concatenate([pf['bih'] + pf['bhh'], pb['bih'] + pb['bhh']])
    xg = gemm_bias_act(x_t.reshape(Tt * B, C), wih_both, shift=b_both)
    xg = xg.reshape(Tt, B, 8 * H)
    xg2 = jnp.stack([xg[..., :4 * H], xg[..., 4 * H:]], axis=0)   # (2, Tt, B, 4H)

    whh2 = jnp.stack([pf['whh'].T, pb['whh'].T], axis=0).astype(jnp.bfloat16)
    h02 = jnp.broadcast_to(p['enc_h0'], (2, B, H))
    c02 = jnp.broadcast_to(p['enc_c0'], (2, B, H))
    o2 = bilstm(xg2, whh2, h02, c02)                   # (2, Tt, B, H) bf16
    out = jnp.concatenate([o2[0], o2[1]], axis=-1)     # (Tt, B, enc_lstm_dim)
    return jnp.transpose(out, (1, 0, 2))               # (B, Tt, enc_lstm_dim) bf16


def decoder_forward(p, mels, enc_out, text_len, cfg):
    B, M, L = mels.shape
    Tt, E = enc_out.shape[1], enc_out.shape[2]
    A = cfg['attention_dim']
    D = cfg['dec_dim']
    P = cfg['pre_dim']
    Kloc = cfg['loc_kernel']
    assert cfg['dec_n_layer'] == 2  # decoder kernel hardcodes a 2-layer cell stack

    # lin_target (row-tiled GEMM, no scale/shift)
    l_enc = gemm_bias_act(enc_out.reshape(B * Tt, E),
                          p['lin_target'].T).reshape(B, Tt, A)

    # prenet on [go, mels] (K=1 convs -> GEMMs; dropout identity: eval & deterministic)
    go = jnp.zeros((B, M, 1), jnp.float32)
    mels_in = jnp.concatenate([go, mels], axis=2)                 # (B, M, L+1)
    h1 = gemm_bias_act(jnp.transpose(mels_in, (0, 2, 1)).reshape(B * (L + 1), M),
                       p['prenet1']['w'][:, :, 0].T, shift=p['prenet1']['b'],
                       act='relu', out_dtype=jnp.bfloat16)
    h2 = gemm_bias_act(h1, p['prenet2']['w'][:, :, 0].T, shift=p['prenet2']['b'],
                       act='relu', out_dtype=jnp.bfloat16)
    mels_pad = jnp.transpose(h2.reshape(B, L + 1, P)[:, :L, :], (1, 0, 2))  # (L, B, P)

    # hoisted mel-side decoder gates: (L*B, P)x(P, 4D) + b0 outside the recurrence
    cell0, cell1 = p['cell'][0], p['cell'][1]
    wih0 = cell0['wih']                                # (4D, P+E), input = cat([mel, attn])
    wih0m, wih0a = wih0[:, :P].T, wih0[:, P:].T
    b0 = cell0['bih'] + cell0['bhh']
    mel_g = gemm_bias_act(mels_pad.reshape(L * B, P), wih0m,
                          shift=b0).reshape(L, B, 4 * D)

    # attention mask as additive bias (kept f32 — -1e30 overflows bf16)
    ids = jnp.arange(Tt, dtype=jnp.int32)[None, :]
    mask_bias = jnp.where(ids >= text_len[:, None], jnp.float32(-1e30), jnp.float32(0.0))

    att = p['attention']
    wq = att['wq'].T.astype(jnp.bfloat16)              # (D, A)
    ws = att['ws'].astype(jnp.float32)                 # (1, A)
    # fused location conv weights: Wloc[k, a] = sum_loc wl1[loc, 0, k] * wl2[a, loc, 0]
    wloc = jnp.einsum('lk,al->ka', att['wl1'][:, 0, :],
                      att['wl2'][:, :, 0]).astype(jnp.bfloat16)

    # fused cell weights: x0 = [ctx, h0], x1 = [h0n, h1]
    w0cat = jnp.concatenate([wih0a, cell0['whh'].T], axis=0).astype(jnp.bfloat16)
    w1cat = jnp.concatenate([cell1['wih'].T, cell1['whh'].T], axis=0).astype(jnp.bfloat16)
    b1 = (cell1['bih'] + cell1['bhh']).reshape(1, 4 * D)

    h_init = jnp.stack([jnp.broadcast_to(cell0['h0'], (B, D)),
                        jnp.broadcast_to(cell1['h0'], (B, D))], axis=0)
    c_init = jnp.stack([jnp.broadcast_to(cell0['c0'], (B, D)),
                        jnp.broadcast_to(cell1['c0'], (B, D))], axis=0)

    TL = _chunk_size(L, 32)
    NL = L // TL

    def _full(shape):
        nd = len(shape)
        return pl.BlockSpec(shape, lambda l: (0,) * nd)

    dec_seq, ctx_seq, score_seq = pl.pallas_call(
        functools.partial(_decoder_kernel, TL=TL, T=Tt, D=D, Kloc=Kloc),
        grid=(NL,),
        out_shape=(jax.ShapeDtypeStruct((L, B, D), jnp.bfloat16),
                   jax.ShapeDtypeStruct((L, B, E), jnp.bfloat16),
                   jax.ShapeDtypeStruct((L, B, Tt), jnp.float32)),
        in_specs=[pl.BlockSpec((TL, B, 4 * D), lambda l: (l, 0, 0)),   # mel gates
                  _full((B, Tt, E)),                                    # enc (bf16)
                  _full((B, Tt, A)),                                    # l_enc
                  _full((B, Tt)),                                       # mask bias
                  _full((D, A)), _full((1, A)), _full((Kloc, A)),       # wq, ws, wloc
                  _full((E + D, 4 * D)), _full((2 * D, 4 * D)),         # w0cat, w1cat
                  _full((1, 4 * D)),                                    # b1
                  _full((2, B, D)), _full((2, B, D))],                  # h/c init
        out_specs=(pl.BlockSpec((TL, B, D), lambda l: (l, 0, 0)),
                   pl.BlockSpec((TL, B, E), lambda l: (l, 0, 0)),
                   pl.BlockSpec((TL, B, Tt), lambda l: (l, 0, 0))),
        scratch_shapes=[pltpu.VMEM((2, B, D), jnp.float32),             # h state
                        pltpu.VMEM((2, B, D), jnp.float32),             # c state
                        pltpu.VMEM((B, Tt + Kloc - 1), jnp.float32)],   # cum attn
        compiler_params=pltpu.CompilerParams(
            dimension_semantics=("arbitrary",),
            vmem_limit_bytes=_VMEM_LIMIT),
    )(mel_g, enc_out, l_enc, mask_bias,
      wq, ws, wloc, w0cat, w1cat, b1, h_init, c_init)
    # TODO(synk): megacore batch-split (grid over B halves) of the decoder for v7x.

    # projection as a separate row-tiled GEMM over all L*B rows
    dec_ctx = jnp.concatenate([dec_seq.reshape(L * B, D),
                               ctx_seq.reshape(L * B, E)], axis=-1)    # bf16
    wp = p['proj_w']                                   # (M+1, D+E), input = cat([dec, attn])
    wcat = jnp.concatenate([wp[:, :D].T, wp[:, D:].T], axis=0)          # (D+E, M+1)
    proj = gemm_bias_act(dec_ctx, wcat, shift=p['proj_b'])

    out = jnp.transpose(proj.reshape(L, B, M + 1), (1, 2, 0))           # (B, M+1, L)
    mel_out = out[:, :M, :]
    stop_out = out[:, M, :]                                             # (B, L)
    attn_scores = jnp.transpose(score_seq, (1, 2, 0))                   # (B, Tt, L)
    return mel_out, stop_out, attn_scores


def tacotron2_forward(params, text, text_len, mels, *, cfg):
    """Eval-mode, valid=True (teacher-forced) forward of Tacotron2."""
    enc_out = encoder_forward(params, text, cfg)
    mel_out, stop_out, attn_scores = decoder_forward(params, mels, enc_out, text_len, cfg)

    x = mel_out
    for i, blk in enumerate(params['postnet']):
        last = (i == cfg['n_post'] - 1)
        act = None if last else 'tanh'
        scale, shift = _bn_scale_shift(blk)
        x = conv1d_bn_act(x, blk['w'], scale, shift, act,
                          out_dtype=jnp.float32 if last else jnp.bfloat16)
    mel_post = mel_out + x

    # TODO(synk): inference `decode()` path (data-dependent early stop) and the
    # MSE/BCE losses are not translated; mels_len output masking skipped (None).
    return mel_out, stop_out, attn_scores, None, mel_post


# ----------------------------------------------------------------------------
# Deterministic parameter init (shapes follow the PyTorch __init__)
# ----------------------------------------------------------------------------
def init_params(key, cfg):
    keys = iter(jax.random.split(key, 64))

    def nrm(shape, s=0.08):
        return jax.random.normal(next(keys), shape, jnp.float32) * s

    E, A, D = cfg['enc_lstm_dim'], cfg['attention_dim'], cfg['dec_dim']
    M, P = cfg['n_mels'], cfg['pre_dim']
    LOC, KL = cfg['loc_dim'], cfg['loc_kernel']
    H = E // 2

    p = {}
    p['embed'] = nrm((cfg['n_vocab'], cfg['embed_dim']), 0.3)

    enc_convs = []
    ch = cfg['embed_dim']
    for _ in range(cfg['enc_n_conv']):
        enc_convs.append(dict(
            w=nrm((ch, ch, cfg['enc_kernel_size']), 0.1),
            gamma=jnp.ones((ch,), jnp.float32), beta=jnp.zeros((ch,), jnp.float32),
            rm=jnp.zeros((ch,), jnp.float32), rv=jnp.ones((ch,), jnp.float32)))
        ch = cfg['enc_conv_dim']
    p['enc_convs'] = enc_convs

    p['enc_lstm'] = {name: dict(wih=nrm((4 * H, cfg['enc_conv_dim'])),
                                whh=nrm((4 * H, H)),
                                bih=nrm((4 * H,), 0.02), bhh=nrm((4 * H,), 0.02))
                     for name in ('fwd', 'bwd')}
    p['enc_h0'] = nrm((2, 1, H), 0.05)
    p['enc_c0'] = nrm((2, 1, H), 0.05)

    p['prenet1'] = dict(w=nrm((P, M, 1), 0.1), b=nrm((P,), 0.02))
    p['prenet2'] = dict(w=nrm((P, P, 1), 0.1), b=nrm((P,), 0.02))
    p['lin_target'] = nrm((A, E))
    p['attention'] = dict(wq=nrm((A, D)), ws=nrm((1, A)),
                          wl1=nrm((LOC, 1, KL), 0.1), wl2=nrm((A, LOC, 1), 0.1))

    cells = []
    in_dim = P + E
    for _ in range(cfg['dec_n_layer']):
        cells.append(dict(wih=nrm((4 * D, in_dim)), whh=nrm((4 * D, D)),
                          bih=nrm((4 * D,), 0.02), bhh=nrm((4 * D,), 0.02),
                          h0=nrm((1, D), 0.05), c0=nrm((1, D), 0.05)))
        in_dim = D
    p['cell'] = cells
    p['proj_w'] = nrm((M + 1, E + D))
    p['proj_b'] = nrm((M + 1,), 0.02)

    postnet = []
    in_c = M
    for i in range(cfg['n_post']):
        out_c = M if i == cfg['n_post'] - 1 else cfg['post_dim']
        postnet.append(dict(
            w=nrm((out_c, in_c, cfg['post_kernel_size']), 0.1),
            gamma=jnp.ones((out_c,), jnp.float32), beta=jnp.zeros((out_c,), jnp.float32),
            rm=jnp.zeros((out_c,), jnp.float32), rv=jnp.ones((out_c,), jnp.float32)))
        in_c = out_c
    p['postnet'] = postnet
    return p


# ----------------------------------------------------------------------------
if __name__ == "__main__":
    cfg = dict(
        n_vocab=20, embed_dim=32, enc_kernel_size=5, enc_n_conv=2,
        enc_conv_dim=32, enc_lstm_dim=64, enc_n_lstm=1, dropout=0.5,
        n_mels=16, pre_dim=32, attention_dim=32, loc_dim=8, loc_kernel=7,
        dec_dim=64, dec_n_layer=2, zoneout=0.1, deterministic=True,
        dec_max_length=100, dec_stop_threshold=0.5,
        n_post=3, post_dim=32, post_kernel_size=5,
    )

    params = init_params(jax.random.PRNGKey(0), cfg)

    B, Tt, L = 2, 8, 6
    kt, km = jax.random.split(jax.random.PRNGKey(1))
    text = jax.random.randint(kt, (B, Tt), 0, cfg['n_vocab'], dtype=jnp.int32)
    text_len = jnp.array([8, 5], dtype=jnp.int32)
    mels = jax.random.normal(km, (B, cfg['n_mels'], L), jnp.float32)

    fwd = jax.jit(functools.partial(tacotron2_forward, cfg=cfg))
    mel_out, stop_out, attn_scores, _none, mel_post = fwd(params, text, text_len, mels)
    jax.block_until_ready((mel_out, stop_out, attn_scores, mel_post))

    assert mel_out.shape == (B, cfg['n_mels'], L)
    assert stop_out.shape == (B, L)
    assert attn_scores.shape == (B, Tt, L)
    assert mel_post.shape == (B, cfg['n_mels'], L)
    print("KERNEL_OK")
</pallas_src>

<mosaic_0001>
module attributes {stable_mosaic.version = 11 : i64} {
  func.func @_gemm_bias_act_kernel(%arg0: i32, %arg1: memref<14x16xbf16, #tpu.memory_space<vmem>>, %arg2: memref<16x32xbf16, #tpu.memory_space<vmem>>, %arg3: memref<1x32xf32, #tpu.memory_space<vmem>>, %arg4: memref<14x32xbf16, #tpu.memory_space<vmem>>) attributes {dimension_semantics = [#tpu.dimension_semantics<parallel>], iteration_bounds = array<i64: 1>, scalar_prefetch = 0 : i64, scratch_operands = 0 : i64, tpu.core_type = #tpu.core_type<tc>, window_params = [{transform_indices = @transform_0, window_bounds = array<i64: 14, 16>}, {pipeline_mode = #tpu.pipeline_mode<synchronous>, transform_indices = @transform_1, window_bounds = array<i64: 16, 32>}, {pipeline_mode = #tpu.pipeline_mode<synchronous>, transform_indices = @transform_2, window_bounds = array<i64: 1, 32>}, {transform_indices = @transform_3, window_bounds = array<i64: 14, 32>}]} {
    %c0 = arith.constant 0 : index
    %c0_0 = arith.constant 0 : index
    %0 = vector.load %arg1[%c0, %c0_0] : memref<14x16xbf16, #tpu.memory_space<vmem>>, vector<14x16xbf16>
    %c0_1 = arith.constant 0 : index
    %c0_2 = arith.constant 0 : index
    %1 = vector.load %arg2[%c0_1, %c0_2] : memref<16x32xbf16, #tpu.memory_space<vmem>>, vector<16x32xbf16>
    %cst = arith.constant dense<0.000000e+00> : vector<14x32xf32>
    %2 = tpu.matmul %0, %1, %cst {dimension_numbers = #tpu.dot_dimension_numbers<[1], [0], [0], [1], [0, 0, 1, 1], [], []>} : vector<14x16xbf16>, vector<16x32xbf16>, vector<14x32xf32> -> vector<14x32xf32>
    %c0_3 = arith.constant 0 : index
    %c0_4 = arith.constant 0 : index
    %3 = vector.load %arg3[%c0_3, %c0_4] : memref<1x32xf32, #tpu.memory_space<vmem>>, vector<1x32xf32>
    %4 = vector.broadcast %3 : vector<1x32xf32> to vector<14x32xf32>
    %5 = arith.addf %2, %4 : vector<14x32xf32>
    %cst_5 = arith.constant 0.000000e+00 : f32
    %6 = vector.broadcast %cst_5 : f32 to vector<14x32xf32>
    %7 = arith.maximumf %5, %6 : vector<14x32xf32>
    %8 = arith.truncf %7 : vector<14x32xf32> to vector<14x32xbf16>
    %c0_6 = arith.constant 0 : index
    %c0_7 = arith.constant 0 : index
    %9 = vector.load %arg4[%c0_6, %c0_7] : memref<14x32xbf16, #tpu.memory_space<vmem>>, vector<14x32xbf16>
    tpu.vector_store %arg4[%c0_6, %c0_7], %8 {strides = array<i32>} : memref<14x32xbf16, #tpu.memory_space<vmem>>, vector<14x32xbf16>,
    return
  }
  func.func @transform_0(%arg0: i32) -> (i32, i32) {
    %c0_i32 = arith.constant 0 : i32
    %c0_i32_0 = arith.constant 0 : i32
    return %arg0, %c0_i32 : i32, i32
  }
  func.func @transform_1(%arg0: i32) -> (i32, i32) {
    %c0_i32 = arith.constant 0 : i32
    %c0_i32_0 = arith.constant 0 : i32
    %c0_i32_1 = arith.constant 0 : i32
    return %c0_i32, %c0_i32_0 : i32, i32
  }
  func.func @transform_2(%arg0: i32) -> (i32, i32) {
    %c0_i32 = arith.constant 0 : i32
    %c0_i32_0 = arith.constant 0 : i32
    %c0_i32_1 = arith.constant 0 : i32
    return %c0_i32, %c0_i32_0 : i32, i32
  }
  func.func @transform_3(%arg0: i32) -> (i32, i32) {
    %c0_i32 = arith.constant 0 : i32
    %c0_i32_0 = arith.constant 0 : i32
    return %arg0, %c0_i32 : i32, i32
  }
}

module attributes {stable_mosaic.version = 11 : i64} {
  func.func @_gemm_bias_act_kernel(%arg0: i32, %arg1: memref<14x32xbf16, #tpu.memory_space<vmem>>, %arg2: memref<32x32xbf16, #tpu.memory_space<vmem>>, %arg3: memref<1x32xf32, #tpu.memory_space<vmem>>, %arg4: memref<14x32xbf16, #tpu.memory_space<vmem>>) attributes {dimension_semantics = [#tpu.dimension_semantics<parallel>], iteration_bounds = array<i64: 1>, scalar_prefetch = 0 : i64, scratch_operands = 0 : i64, tpu.core_type = #tpu.core_type<tc>, window_params = [{transform_indices = @transform_0, window_bounds = array<i64: 14, 32>}, {pipeline_mode = #tpu.pipeline_mode<synchronous>, transform_indices = @transform_1, window_bounds = array<i64: 32, 32>}, {pipeline_mode = #tpu.pipeline_mode<synchronous>, transform_indices = @transform_2, window_bounds = array<i64: 1, 32>}, {transform_indices = @transform_3, window_bounds = array<i64: 14, 32>}]} {
    %c0 = arith.constant 0 : index
    %c0_0 = arith.constant 0 : index
    %0 = vector.load %arg1[%c0, %c0_0] : memref<14x32xbf16, #tpu.memory_space<vmem>>, vector<14x32xbf16>
    %c0_1 = arith.constant 0 : index
    %c0_2 = arith.constant 0 : index
    %1 = vector.load %arg2[%c0_1, %c0_2] : memref<32x32xbf16, #tpu.memory_space<vmem>>, vector<32x32xbf16>
    %cst = arith.constant dense<0.000000e+00> : vector<14x32xf32>
    %2 = tpu.matmul %0, %1, %cst {dimension_numbers = #tpu.dot_dimension_numbers<[1], [0], [0], [1], [0, 0, 1, 1], [], []>} : vector<14x32xbf16>, vector<32x32xbf16>, vector<14x32xf32> -> vector<14x32xf32>
    %c0_3 = arith.constant 0 : index
    %c0_4 = arith.constant 0 : index
    %3 = vector.load %arg3[%c0_3, %c0_4] : memref<1x32xf32, #tpu.memory_space<vmem>>, vector<1x32xf32>
    %4 = vector.broadcast %3 : vector<1x32xf32> to vector<14x32xf32>
    %5 = arith.addf %2, %4 : vector<14x32xf32>
    %cst_5 = arith.constant 0.000000e+00 : f32
    %6 = vector.broadcast %cst_5 : f32 to vector<14x32xf32>
    %7 = arith.maximumf %5, %6 : vector<14x32xf32>
    %8 = arith.truncf %7 : vector<14x32xf32> to vector<14x32xbf16>
    %c0_6 = arith.constant 0 : index
    %c0_7 = arith.constant 0 : index
    %9 = vector.load %arg4[%c0_6, %c0_7] : memref<14x32xbf16, #tpu.memory_space<vmem>>, vector<14x32xbf16>
    tpu.vector_store %arg4[%c0_6, %c0_7], %8 {strides = array<i32>} : memref<14x32xbf16, #tpu.memory_space<vmem>>, vector<14x32xbf16>,
    return
  }
  func.func @transform_0(%arg0: i32) -> (i32, i32) {
    %c0_i32 = arith.constant 0 : i32
    %c0_i32_0 = arith.constant 0 : i32
    return %arg0, %c0_i32 : i32, i32
  }
  func.func @transform_1(%arg0: i32) -> (i32, i32) {
    %c0_i32 = arith.constant 0 : i32
    %c0_i32_0 = arith.constant 0 : i32
    %c0_i32_1 = arith.constant 0 : i32
    return %c0_i32, %c0_i32_0 : i32, i32
  }
  func.func @transform_2(%arg0: i32) -> (i32, i32) {
    %c0_i32 = arith.constant 0 : i32
    %c0_i32_0 = arith.constant 0 : i32
    %c0_i32_1 = arith.constant 0 : i32
    return %c0_i32, %c0_i32_0 : i32, i32
  }
  func.func @transform_3(%arg0: i32) -> (i32, i32) {
    %c0_i32 = arith.constant 0 : i32
    %c0_i32_0 = arith.constant 0 : i32
    return %arg0, %c0_i32 : i32, i32
  }
}

module attributes {stable_mosaic.version = 11 : i64} {
  func.func @_gemm_bias_act_kernel(%arg0: i32, %arg1: memref<12x32xbf16, #tpu.memory_space<vmem>>, %arg2: memref<32x256xbf16, #tpu.memory_space<vmem>>, %arg3: memref<1x256xf32, #tpu.memory_space<vmem>>, %arg4: memref<12x256xf32, #tpu.memory_space<vmem>>) attributes {dimension_semantics = [#tpu.dimension_semantics<parallel>], iteration_bounds = array<i64: 1>, scalar_prefetch = 0 : i64, scratch_operands = 0 : i64, tpu.core_type = #tpu.core_type<tc>, window_params = [{transform_indices = @transform_0, window_bounds = array<i64: 12, 32>}, {pipeline_mode = #tpu.pipeline_mode<synchronous>, transform_indices = @transform_1, window_bounds = array<i64: 32, 256>}, {pipeline_mode = #tpu.pipeline_mode<synchronous>, transform_indices = @transform_2, window_bounds = array<i64: 1, 256>}, {transform_indices = @transform_3, window_bounds = array<i64: 12, 256>}]} {
    %c0 = arith.constant 0 : index
    %c0_0 = arith.constant 0 : index
    %0 = vector.load %arg1[%c0, %c0_0] : memref<12x32xbf16, #tpu.memory_space<vmem>>, vector<12x32xbf16>
    %c0_1 = arith.constant 0 : index
    %c0_2 = arith.constant 0 : index
    %1 = vector.load %arg2[%c0_1, %c0_2] : memref<32x256xbf16, #tpu.memory_space<vmem>>, vector<32x256xbf16>
    %cst = arith.constant dense<0.000000e+00> : vector<12x256xf32>
    %2 = tpu.matmul %0, %1, %cst {dimension_numbers = #tpu.dot_dimension_numbers<[1], [0], [0], [1], [0, 0, 1, 1], [], []>} : vector<12x32xbf16>, vector<32x256xbf16>, vector<12x256xf32> -> vector<12x256xf32>
    %c0_3 = arith.constant 0 : index
    %c0_4 = arith.constant 0 : index
    %3 = vector.load %arg3[%c0_3, %c0_4] : memref<1x256xf32, #tpu.memory_space<vmem>>, vector<1x256xf32>
    %4 = vector.broadcast %3 : vector<1x256xf32> to vector<12x256xf32>
    %5 = arith.addf %2, %4 : vector<12x256xf32>
    %c0_5 = arith.constant 0 : index
    %c0_6 = arith.constant 0 : index
    %6 = vector.load %arg4[%c0_5, %c0_6] : memref<12x256xf32, #tpu.memory_space<vmem>>, vector<12x256xf32>
    tpu.vector_store %arg4[%c0_5, %c0_6], %5 {strides = array<i32>} : memref<12x256xf32, #tpu.memory_space<vmem>>, vector<12x256xf32>,
    return
  }
  func.func @transform_0(%arg0: i32) -> (i32, i32) {
    %c0_i32 = arith.constant 0 : i32
    %c0_i32_0 = arith.constant 0 : i32
    return %arg0, %c0_i32 : i32, i32
  }
  func.func @transform_1(%arg0: i32) -> (i32, i32) {
    %c0_i32 = arith.constant 0 : i32
    %c0_i32_0 = arith.constant 0 : i32
    %c0_i32_1 = arith.constant 0 : i32
    return %c0_i32, %c0_i32_0 : i32, i32
  }
  func.func @transform_2(%arg0: i32) -> (i32, i32) {
    %c0_i32 = arith.constant 0 : i32
    %c0_i32_0 = arith.constant 0 : i32
    %c0_i32_1 = arith.constant 0 : i32
    return %c0_i32, %c0_i32_0 : i32, i32
  }
  func.func @transform_3(%arg0: i32) -> (i32, i32) {
    %c0_i32 = arith.constant 0 : i32
    %c0_i32_0 = arith.constant 0 : i32
    return %arg0, %c0_i32 : i32, i32
  }
}

module attributes {stable_mosaic.version = 11 : i64} {
  func.func @_gemm_bias_act_kernel(%arg0: i32, %arg1: memref<16x32xbf16, #tpu.memory_space<vmem>>, %arg2: memref<32x256xbf16, #tpu.memory_space<vmem>>, %arg3: memref<1x256xf32, #tpu.memory_space<vmem>>, %arg4: memref<16x256xf32, #tpu.memory_space<vmem>>) attributes {dimension_semantics = [#tpu.dimension_semantics<parallel>], iteration_bounds = array<i64: 1>, scalar_prefetch = 0 : i64, scratch_operands = 0 : i64, tpu.core_type = #tpu.core_type<tc>, window_params = [{transform_indices = @transform_0, window_bounds = array<i64: 16, 32>}, {pipeline_mode = #tpu.pipeline_mode<synchronous>, transform_indices = @transform_1, window_bounds = array<i64: 32, 256>}, {pipeline_mode = #tpu.pipeline_mode<synchronous>, transform_indices = @transform_2, window_bounds = array<i64: 1, 256>}, {transform_indices = @transform_3, window_bounds = array<i64: 16, 256>}]} {
    %c0 = arith.constant 0 : index
    %c0_0 = arith.constant 0 : index
    %0 = vector.load %arg1[%c0, %c0_0] : memref<16x32xbf16, #tpu.memory_space<vmem>>, vector<16x32xbf16>
    %c0_1 = arith.constant 0 : index
    %c0_2 = arith.constant 0 : index
    %1 = vector.load %arg2[%c0_1, %c0_2] : memref<32x256xbf16, #tpu.memory_space<vmem>>, vector<32x256xbf16>
    %cst = arith.constant dense<0.000000e+00> : vector<16x256xf32>
    %2 = tpu.matmul %0, %1, %cst {dimension_numbers = #tpu.dot_dimension_numbers<[1], [0], [0], [1], [0, 0, 1, 1], [], []>} : vector<16x32xbf16>, vector<32x256xbf16>, vector<16x256xf32> -> vector<16x256xf32>
    %c0_3 = arith.constant 0 : index
    %c0_4 = arith.constant 0 : index
    %3 = vector.load %arg3[%c0_3, %c0_4] : memref<1x256xf32, #tpu.memory_space<vmem>>, vector<1x256xf32>
    %4 = vector.broadcast %3 : vector<1x256xf32> to vector<16x256xf32>
    %5 = arith.addf %2, %4 : vector<16x256xf32>
    %c0_5 = arith.constant 0 : index
    %c0_6 = arith.constant 0 : index
    %6 = vector.load %arg4[%c0_5, %c0_6] : memref<16x256xf32, #tpu.memory_space<vmem>>, vector<16x256xf32>
    tpu.vector_store %arg4[%c0_5, %c0_6], %5 {strides = array<i32>} : memref<16x256xf32, #tpu.memory_space<vmem>>, vector<16x256xf32>,
    return
  }
  func.func @transform_0(%arg0: i32) -> (i32, i32) {
    %c0_i32 = arith.constant 0 : i32
    %c0_i32_0 = arith.constant 0 : i32
    return %arg0, %c0_i32 : i32, i32
  }
  func.func @transform_1(%arg0: i32) -> (i32, i32) {
    %c0_i32 = arith.constant 0 : i32
    %c0_i32_0 = arith.constant 0 : i32
    %c0_i32_1 = arith.constant 0 : i32
    return %c0_i32, %c0_i32_0 : i32, i32
  }
  func.func @transform_2(%arg0: i32) -> (i32, i32) {
    %c0_i32 = arith.constant 0 : i32
    %c0_i32_0 = arith.constant 0 : i32
    %c0_i32_1 = arith.constant 0 : i32
    return %c0_i32, %c0_i32_0 : i32, i32
  }
  func.func @transform_3(%arg0: i32) -> (i32, i32) {
    %c0_i32 = arith.constant 0 : i32
    %c0_i32_0 = arith.constant 0 : i32
    return %arg0, %c0_i32 : i32, i32
  }
}

module attributes {stable_mosaic.version = 11 : i64} {
  func.func @_gemm_bias_act_kernel(%arg0: i32, %arg1: memref<16x160xbf16, #tpu.memory_space<vmem>>, %arg2: memref<160x32xbf16, #tpu.memory_space<vmem>>, %arg3: memref<1x32xf32, #tpu.memory_space<vmem>>, %arg4: memref<1x32xf32, #tpu.memory_space<vmem>>, %arg5: memref<16x32xbf16, #tpu.memory_space<vmem>>) attributes {dimension_semantics = [#tpu.dimension_semantics<parallel>], iteration_bounds = array<i64: 1>, scalar_prefetch = 0 : i64, scratch_operands = 0 : i64, tpu.core_type = #tpu.core_type<tc>, window_params = [{transform_indices = @transform_0, window_bounds = array<i64: 16, 160>}, {pipeline_mode = #tpu.pipeline_mode<synchronous>, transform_indices = @transform_1, window_bounds = array<i64: 160, 32>}, {pipeline_mode = #tpu.pipeline_mode<synchronous>, transform_indices = @transform_2, window_bounds = array<i64: 1, 32>}, {pipeline_mode = #tpu.pipeline_mode<synchronous>, transform_indices = @transform_3, window_bounds = array<i64: 1, 32>}, {transform_indices = @transform_4, window_bounds = array<i64: 16, 32>}]} {
    %c0 = arith.constant 0 : index
    %c0_0 = arith.constant 0 : index
    %0 = vector.load %arg1[%c0, %c0_0] : memref<16x160xbf16, #tpu.memory_space<vmem>>, vector<16x160xbf16>
    %c0_1 = arith.constant 0 : index
    %c0_2 = arith.constant 0 : index
    %1 = vector.load %arg2[%c0_1, %c0_2] : memref<160x32xbf16, #tpu.memory_space<vmem>>, vector<160x32xbf16>
    %cst = arith.constant dense<0.000000e+00> : vector<16x32xf32>
    %2 = tpu.matmul %0, %1, %cst {dimension_numbers = #tpu.dot_dimension_numbers<[1], [0], [0], [1], [0, 0, 1, 1], [], []>} : vector<16x160xbf16>, vector<160x32xbf16>, vector<16x32xf32> -> vector<16x32xf32>
    %c0_3 = arith.constant 0 : index
    %c0_4 = arith.constant 0 : index
    %3 = vector.load %arg3[%c0_3, %c0_4] : memref<1x32xf32, #tpu.memory_space<vmem>>, vector<1x32xf32>
    %4 = vector.broadcast %3 : vector<1x32xf32> to vector<16x32xf32>
    %5 = arith.mulf %2, %4 : vector<16x32xf32>
    %c0_5 = arith.constant 0 : index
    %c0_6 = arith.constant 0 : index
    %6 = vector.load %arg4[%c0_5, %c0_6] : memref<1x32xf32, #tpu.memory_space<vmem>>, vector<1x32xf32>
    %7 = vector.broadcast %6 : vector<1x32xf32> to vector<16x32xf32>
    %8 = arith.addf %5, %7 : vector<16x32xf32>
    %cst_7 = arith.constant 0.000000e+00 : f32
    %9 = vector.broadcast %cst_7 : f32 to vector<16x32xf32>
    %10 = arith.maximumf %8, %9 : vector<16x32xf32>
    %11 = arith.truncf %10 : vector<16x32xf32> to vector<16x32xbf16>
    %c0_8 = arith.constant 0 : index
    %c0_9 = arith.constant 0 : index
    %12 = vector.load %arg5[%c0_8, %c0_9] : memref<16x32xbf16, #tpu.memory_space<vmem>>, vector<16x32xbf16>
    tpu.vector_store %arg5[%c0_8, %c0_9], %11 {strides = array<i32>} : memref<16x32xbf16, #tpu.memory_space<vmem>>, vector<16x32xbf16>,
    return
  }
  func.func @transform_0(%arg0: i32) -> (i32, i32) {
    %c0_i32 = arith.constant 0 : i32
    %c0_i32_0 = arith.constant 0 : i32
    return %arg0, %c0_i32 : i32, i32
  }
  func.func @transform_1(%arg0: i32) -> (i32, i32) {
    %c0_i32 = arith.constant 0 : i32
    %c0_i32_0 = arith.constant 0 : i32
    %c0_i32_1 = arith.constant 0 : i32
    return %c0_i32, %c0_i32_0 : i32, i32
  }
  func.func @transform_2(%arg0: i32) -> (i32, i32) {
    %c0_i32 = arith.constant 0 : i32
    %c0_i32_0 = arith.constant 0 : i32
    %c0_i32_1 = arith.constant 0 : i32
    return %c0_i32, %c0_i32_0 : i32, i32
  }
  func.func @transform_3(%arg0: i32) -> (i32, i32) {
    %c0_i32 = arith.constant 0 : i32
    %c0_i32_0 = arith.constant 0 : i32
    %c0_i32_1 = arith.constant 0 : i32
    return %c0_i32, %c0_i32_0 : i32, i32
  }
  func.func @transform_4(%arg0: i32) -> (i32, i32) {
    %c0_i32 = arith.constant 0 : i32
    %c0_i32_0 = arith.constant 0 : i32
    return %arg0, %c0_i32 : i32, i32
  }
}

module attributes {stable_mosaic.version = 11 : i64} {
  func.func @_bilstm_kernel(%arg0: i32, %arg1: i32, %arg2: memref<1x8x2x128xf32, #tpu.memory_space<vmem>>, %arg3: memref<1x32x128xbf16, #tpu.memory_space<vmem>>, %arg4: memref<1x2x32xf32, #tpu.memory_space<vmem>>, %arg5: memref<1x2x32xf32, #tpu.memory_space<vmem>>, %arg6: memref<1x8x2x32xbf16, #tpu.memory_space<vmem>>, %arg7: memref<2x32xf32, #tpu.memory_space<vmem>>, %arg8: memref<2x32xf32, #tpu.memory_space<vmem>>) attributes {dimension_semantics = [#tpu.dimension_semantics<parallel>, #tpu.dimension_semantics<arbitrary>], iteration_bounds = array<i64: 2, 1>, scalar_prefetch = 0 : i64, scratch_operands = 2 : i64, tpu.core_type = #tpu.core_type<tc>, window_params = [{transform_indices = @transform_0, window_bounds = array<i64: 1, 8, 2, 128>}, {transform_indices = @transform_1, window_bounds = array<i64: 1, 32, 128>}, {transform_indices = @transform_2, window_bounds = array<i64: 1, 2, 32>}, {transform_indices = @transform_3, window_bounds = array<i64: 1, 2, 32>}, {transform_indices = @transform_4, window_bounds = array<i64: 1, 8, 2, 32>}]} {
    %c0_i32 = arith.constant 0 : i32
    %0 = arith.cmpi eq, %arg1, %c0_i32 : i32
    %1 = arith.extui %0 : i1 to i32
    %c0_i32_0 = arith.constant 0 : i32
    %2 = arith.cmpi ne, %1, %c0_i32_0 : i32
    scf.if %2 {
      %c0_5 = arith.constant 0 : index
      %c0_6 = arith.constant 0 : index
      %c0_7 = arith.constant 0 : index
      %6 = vector.load %arg4[%c0_5, %c0_6, %c0_7] : memref<1x2x32xf32, #tpu.memory_space<vmem>>, vector<1x2x32xf32>
      %7 = vector.shape_cast %6 : vector<1x2x32xf32> to vector<2x32xf32>
      %c0_8 = arith.constant 0 : index
      %c0_9 = arith.constant 0 : index
      %8 = vector.load %arg7[%c0_8, %c0_9] : memref<2x32xf32, #tpu.memory_space<vmem>>, vector<2x32xf32>
      tpu.vector_store %arg7[%c0_8, %c0_9], %7 {strides = array<i32>} : memref<2x32xf32, #tpu.memory_space<vmem>>, vector<2x32xf32>,
      %c0_10 = arith.constant 0 : index
      %c0_11 = arith.constant 0 : index
      %c0_12 = arith.constant 0 : index
      %9 = vector.load %arg5[%c0_10, %c0_11, %c0_12] : memref<1x2x32xf32, #tpu.memory_space<vmem>>, vector<1x2x32xf32>
      %10 = vector.shape_cast %9 : vector<1x2x32xf32> to vector<2x32xf32>
      %c0_13 = arith.constant 0 : index
      %c0_14 = arith.constant 0 : index
      %11 = vector.load %arg8[%c0_13, %c0_14] : memref<2x32xf32, #tpu.memory_space<vmem>>, vector<2x32xf32>
      tpu.vector_store %arg8[%c0_13, %c0_14], %10 {strides = array<i32>} : memref<2x32xf32, #tpu.memory_space<vmem>>, vector<2x32xf32>,
    } else {
    }
    %c0 = arith.constant 0 : index
    %c0_1 = arith.constant 0 : index
    %c0_2 = arith.constant 0 : index
    %3 = vector.load %arg3[%c0, %c0_1, %c0_2] : memref<1x32x128xbf16, #tpu.memory_space<vmem>>, vector<1x32x128xbf16>
    %4 = vector.shape_cast %3 : vector<1x32x128xbf16> to vector<32x128xbf16>
    %c0_i32_3 = arith.constant 0 : i32
    %c8_i32 = arith.constant 8 : i32
    %5 = arith.addi %c0_i32_3, %c8_i32 : i32
    %c1_i32 = arith.constant 1 : i32
    scf.for %arg9 = %c0_i32_3 to %5 step %c1_i32  : i32 {
      %c1_i32_5 = arith.constant 1 : i32
      %6 = arith.muli %arg9, %c1_i32_5 : i32
      %c0_i32_6 = arith.constant 0 : i32
      %7 = arith.addi %c0_i32_6, %6 : i32
      %c0_i32_7 = arith.constant 0 : i32
      %8 = arith.cmpi eq, %arg0, %c0_i32_7 : i32
      %c7_i32 = arith.constant 7 : i32
      %9 = arith.subi %c7_i32, %7 : i32
      %10 = arith.select %8, %7, %9 : i32
      %c0_8 = arith.constant 0 : index
      %11 = arith.index_cast %10 : i32 to index
      %c0_9 = arith.constant 0 : index
      %c0_10 = arith.constant 0 : index
      %12 = vector.load %arg2[%c0_8, %11, %c0_9, %c0_10] : memref<1x8x2x128xf32, #tpu.memory_space<vmem>>, vector<1x1x2x128xf32>
      %13 = vector.shape_cast %12 : vector<1x1x2x128xf32> to vector<2x128xf32>
      %c0_11 = arith.constant 0 : index
      %c0_12 = arith.constant 0 : index
      %14 = vector.load %arg7[%c0_11, %c0_12] : memref<2x32xf32, #tpu.memory_space<vmem>>, vector<2x32xf32>
      %15 = arith.truncf %14 : vector<2x32xf32> to vector<2x32xbf16>
      %cst = arith.constant dense<0.000000e+00> : vector<2x128xf32>
      %16 = tpu.matmul %15, %4, %cst {dimension_numbers = #tpu.dot_dimension_numbers<[1], [0], [0], [1], [0, 0, 1, 1], [], []>} : vector<2x32xbf16>, vector<32x128xbf16>, vector<2x128xf32> -> vector<2x128xf32>
      %17 = arith.addf %13, %16 : vector<2x128xf32>
      %18 = vector.extract_strided_slice %17 {offsets = [0, 0], sizes = [2, 32], strides = [1, 1]} : vector<2x128xf32> to vector<2x32xf32>
      %19 = arith.negf %18 : vector<2x32xf32>
      %20 = math.exp %19 : vector<2x32xf32>
      %cst_13 = arith.constant 1.000000e+00 : f32
      %21 = vector.broadcast %cst_13 : f32 to vector<2x32xf32>
      %22 = arith.addf %21, %20 : vector<2x32xf32>
      %23 = arith.divf %21, %22 : vector<2x32xf32>
      %24 = vector.extract_strided_slice %17 {offsets = [0, 32], sizes = [2, 32], strides = [1, 1]} : vector<2x128xf32> to vector<2x32xf32>
      %25 = arith.negf %24 : vector<2x32xf32>
      %26 = math.exp %25 : vector<2x32xf32>
      %cst_14 = arith.constant 1.000000e+00 : f32
      %27 = vector.broadcast %cst_14 : f32 to vector<2x32xf32>
      %28 = arith.addf %27, %26 : vector<2x32xf32>
      %29 = arith.divf %27, %28 : vector<2x32xf32>
      %30 = vector.extract_strided_slice %17 {offsets = [0, 64], sizes = [2, 32], strides = [1, 1]} : vector<2x128xf32> to vector<2x32xf32>
      %31 = math.tanh %30 : vector<2x32xf32>
      %32 = vector.extract_strided_slice %17 {offsets = [0, 96], sizes = [2, 32], strides = [1, 1]} : vector<2x128xf32> to vector<2x32xf32>
      %33 = arith.negf %32 : vector<2x32xf32>
      %34 = math.exp %33 : vector<2x32xf32>
      %cst_15 = arith.constant 1.000000e+00 : f32
      %35 = vector.broadcast %cst_15 : f32 to vector<2x32xf32>
      %36 = arith.addf %35, %34 : vector<2x32xf32>
      %37 = arith.divf %35, %36 : vector<2x32xf32>
      %c0_16 = arith.constant 0 : index
      %c0_17 = arith.constant 0 : index
      %38 = vector.load %arg8[%c0_16, %c0_17] : memref<2x32xf32, #tpu.memory_space<vmem>>, vector<2x32xf32>
      %39 = arith.mulf %29, %38 : vector<2x32xf32>
      %40 = arith.mulf %23, %31 : vector<2x32xf32>
      %41 = arith.addf %39, %40 : vector<2x32xf32>
      %42 = math.tanh %41 : vector<2x32xf32>
      %43 = arith.mulf %37, %42 : vector<2x32xf32>
      %c0_18 = arith.constant 0 : index
      %c0_19 = arith.constant 0 : index
      %44 = vector.load %arg7[%c0_18, %c0_19] : memref<2x32xf32, #tpu.memory_space<vmem>>, vector<2x32xf32>
      tpu.vector_store %arg7[%c0_18, %c0_19], %43 {strides = array<i32>} : memref<2x32xf32, #tpu.memory_space<vmem>>, vector<2x32xf32>,
      %c0_20 = arith.constant 0 : index
      %c0_21 = arith.constant 0 : index
      %45 = vector.load %arg8[%c0_20, %c0_21] : memref<2x32xf32, #tpu.memory_space<vmem>>, vector<2x32xf32>
      tpu.vector_store %arg8[%c0_20, %c0_21], %41 {strides = array<i32>} : memref<2x32xf32, #tpu.memory_space<vmem>>, vector<2x32xf32>,
      %46 = arith.truncf %43 : vector<2x32xf32> to vector<2x32xbf16>
      %c0_22 = arith.constant 0 : index
      %47 = arith.index_cast %10 : i32 to index
      %c0_23 = arith.constant 0 : index
      %c0_24 = arith.constant 0 : index
      %48 = vector.load %arg6[%c0_22, %47, %c0_23, %c0_24] : memref<1x8x2x32xbf16, #tpu.memory_space<vmem>>, vector<1x1x2x32xbf16>
      %49 = vector.shape_cast %48 : vector<1x1x2x32xbf16> to vector<2x32xbf16>
      %50 = vector.shape_cast %46 : vector<2x32xbf16> to vector<1x1x2x32xbf16>
      tpu.vector_store %arg6[%c0_22, %47, %c0_23, %c0_24], %50 {strides = array<i32>} : memref<1x8x2x32xbf16, #tpu.memory_space<vmem>>, vector<1x1x2x32xbf16>,
    }
    %c8_i32_4 = arith.constant 8 : i32
    return
  }
  func.func @transform_0(%arg0: i32, %arg1: i32) -> (i32, i32, i32, i32) {
    %c0_i32 = arith.constant 0 : i32
    %0 = arith.muli %arg0, %c0_i32 : i32
    %c2_i32 = arith.constant 2 : i32
    %1 = arith.muli %c2_i32, %arg0 : i32
    %c1_i32 = arith.constant 1 : i32
    %2 = arith.subi %c1_i32, %1 : i32
    %3 = arith.muli %2, %arg1 : i32
    %4 = arith.addi %0, %3 : i32
    %c0_i32_0 = arith.constant 0 : i32
    %c0_i32_1 = arith.constant 0 : i32
    %c0_i32_2 = arith.constant 0 : i32
    return %arg0, %4, %c0_i32_0, %c0_i32_1 : i32, i32, i32, i32
  }
  func.func @transform_1(%arg0: i32, %arg1: i32) -> (i32, i32, i32) {
    %c0_i32 = arith.constant 0 : i32
    %c0_i32_0 = arith.constant 0 : i32
    %c0_i32_1 = arith.constant 0 : i32
    return %arg0, %c0_i32, %c0_i32_0 : i32, i32, i32
  }
  func.func @transform_2(%arg0: i32, %arg1: i32) -> (i32, i32, i32) {
    %c0_i32 = arith.constant 0 : i32
    %c0_i32_0 = arith.constant 0 : i32
    %c0_i32_1 = arith.constant 0 : i32
    return %arg0, %c0_i32, %c0_i32_0 : i32, i32, i32
  }
  func.func @transform_3(%arg0: i32, %arg1: i32) -> (i32, i32, i32) {
    %c0_i32 = arith.constant 0 : i32
    %c0_i32_0 = arith.constant 0 : i32
    %c0_i32_1 = arith.constant 0 : i32
    return %arg0, %c0_i32, %c0_i32_0 : i32, i32, i32
  }
  func.func @transform_4(%arg0: i32, %arg1: i32) -> (i32, i32, i32, i32) {
    %c0_i32 = arith.constant 0 : i32
    %0 = arith.muli %arg0, %c0_i32 : i32
    %c2_i32 = arith.constant 2 : i32
    %1 = arith.muli %c2_i32, %arg0 : i32
    %c1_i32 = arith.constant 1 : i32
    %2 = arith.subi %c1_i32, %1 : i32
    %3 = arith.muli %2, %arg1 : i32
    %4 = arith.addi %0, %3 : i32
    %c0_i32_0 = arith.constant 0 : i32
    %c0_i32_1 = arith.constant 0 : i32
    %c0_i32_2 = arith.constant 0 : i32
    return %arg0, %4, %c0_i32_0, %c0_i32_1 : i32, i32, i32, i32
  }
}

module attributes {stable_mosaic.version = 11 : i64} {
  func.func @_gemm_bias_act_kernel(%arg0: i32, %arg1: memref<16x64xbf16, #tpu.memory_space<vmem>>, %arg2: memref<64x32xbf16, #tpu.memory_space<vmem>>, %arg3: memref<16x32xf32, #tpu.memory_space<vmem>>) attributes {dimension_semantics = [#tpu.dimension_semantics<parallel>], iteration_bounds = array<i64: 1>, scalar_prefetch = 0 : i64, scratch_operands = 0 : i64, tpu.core_type = #tpu.core_type<tc>, window_params = [{transform_indices = @transform_0, window_bounds = array<i64: 16, 64>}, {pipeline_mode = #tpu.pipeline_mode<synchronous>, transform_indices = @transform_1, window_bounds = array<i64: 64, 32>}, {transform_indices = @transform_2, window_bounds = array<i64: 16, 32>}]} {
    %c0 = arith.constant 0 : index
    %c0_0 = arith.constant 0 : index
    %0 = vector.load %arg1[%c0, %c0_0] : memref<16x64xbf16, #tpu.memory_space<vmem>>, vector<16x64xbf16>
    %c0_1 = arith.constant 0 : index
    %c0_2 = arith.constant 0 : index
    %1 = vector.load %arg2[%c0_1, %c0_2] : memref<64x32xbf16, #tpu.memory_space<vmem>>, vector<64x32xbf16>
    %cst = arith.constant dense<0.000000e+00> : vector<16x32xf32>
    %2 = tpu.matmul %0, %1, %cst {dimension_numbers = #tpu.dot_dimension_numbers<[1], [0], [0], [1], [0, 0, 1, 1], [], []>} : vector<16x64xbf16>, vector<64x32xbf16>, vector<16x32xf32> -> vector<16x32xf32>
    %c0_3 = arith.constant 0 : index
    %c0_4 = arith.constant 0 : index
    %3 = vector.load %arg3[%c0_3, %c0_4] : memref<16x32xf32, #tpu.memory_space<vmem>>, vector<16x32xf32>
    tpu.vector_store %arg3[%c0_3, %c0_4], %2 {strides = array<i32>} : memref<16x32xf32, #tpu.memory_space<vmem>>, vector<16x32xf32>,
    return
  }
  func.func @transform_0(%arg0: i32) -> (i32, i32) {
    %c0_i32 = arith.constant 0 : i32
    %c0_i32_0 = arith.constant 0 : i32
    return %arg0, %c0_i32 : i32, i32
  }
  func.func @transform_1(%arg0: i32) -> (i32, i32) {
    %c0_i32 = arith.constant 0 : i32
    %c0_i32_0 = arith.constant 0 : i32
    %c0_i32_1 = arith.constant 0 : i32
    return %c0_i32, %c0_i32_0 : i32, i32
  }
  func.func @transform_2(%arg0: i32) -> (i32, i32) {
    %c0_i32 = arith.constant 0 : i32
    %c0_i32_0 = arith.constant 0 : i32
    return %arg0, %c0_i32 : i32, i32
  }
}

module attributes {stable_mosaic.version = 11 : i64} {
  func.func @_decoder_kernel(%arg0: i32, %arg1: memref<6x2x256xf32, #tpu.memory_space<vmem>>, %arg2: memref<2x8x64xbf16, #tpu.memory_space<vmem>>, %arg3: memref<2x8x32xf32, #tpu.memory_space<vmem>>, %arg4: memref<2x8xf32, #tpu.memory_space<vmem>>, %arg5: memref<64x32xbf16, #tpu.memory_space<vmem>>, %arg6: memref<1x32xf32, #tpu.memory_space<vmem>>, %arg7: memref<7x32xbf16, #tpu.memory_space<vmem>>, %arg8: memref<128x256xbf16, #tpu.memory_space<vmem>>, %arg9: memref<128x256xbf16, #tpu.memory_space<vmem>>, %arg10: memref<1x256xf32, #tpu.memory_space<vmem>>, %arg11: memref<2x2x64xf32, #tpu.memory_space<vmem>>, %arg12: memref<2x2x64xf32, #tpu.memory_space<vmem>>, %arg13: memref<6x2x64xbf16, #tpu.memory_space<vmem>>, %arg14: memref<6x2x64xbf16, #tpu.memory_space<vmem>>, %arg15: memref<6x2x8xf32, #tpu.memory_space<vmem>>, %arg16: memref<2x2x64xf32, #tpu.memory_space<vmem>>, %arg17: memref<2x2x64xf32, #tpu.memory_space<vmem>>, %arg18: memref<2x14xf32, #tpu.memory_space<vmem>>) attributes {dimension_semantics = [#tpu.dimension_semantics<arbitrary>], iteration_bounds = array<i64: 1>, scalar_prefetch = 0 : i64, scratch_operands = 3 : i64, tpu.core_type = #tpu.core_type<tc>, window_params = [{transform_indices = @transform_0, window_bounds = array<i64: 6, 2, 256>}, {pipeline_mode = #tpu.pipeline_mode<synchronous>, transform_indices = @transform_1, window_bounds = array<i64: 2, 8, 64>}, {pipeline_mode = #tpu.pipeline_mode<synchronous>, transform_indices = @transform_2, window_bounds = array<i64: 2, 8, 32>}, {pipeline_mode = #tpu.pipeline_mode<synchronous>, transform_indices = @transform_3, window_bounds = array<i64: 2, 8>}, {pipeline_mode = #tpu.pipeline_mode<synchronous>, transform_indices = @transform_4, window_bounds = array<i64: 64, 32>}, {pipeline_mode = #tpu.pipeline_mode<synchronous>, transform_indices = @transform_5, window_bounds = array<i64: 1, 32>}, {pipeline_mode = #tpu.pipeline_mode<synchronous>, transform_indices = @transform_6, window_bounds = array<i64: 7, 32>}, {pipeline_mode = #tpu.pipeline_mode<synchronous>, transform_indices = @transform_7, window_bounds = array<i64: 128, 256>}, {pipeline_mode = #tpu.pipeline_mode<synchronous>, transform_indices = @transform_8, window_bounds = array<i64: 128, 256>}, {pipeline_mode = #tpu.pipeline_mode<synchronous>, transform_indices = @transform_9, window_bounds = array<i64: 1, 256>}, {pipeline_mode = #tpu.pipeline_mode<synchronous>, transform_indices = @transform_10, window_bounds = array<i64: 2, 2, 64>}, {pipeline_mode = #tpu.pipeline_mode<synchronous>, transform_indices = @transform_11, window_bounds = array<i64: 2, 2, 64>}, {transform_indices = @transform_12, window_bounds = array<i64: 6, 2, 64>}, {transform_indices = @transform_13, window_bounds = array<i64: 6, 2, 64>}, {transform_indices = @transform_14, window_bounds = array<i64: 6, 2, 8>}]} {
    %c0_i32 = arith.constant 0 : i32
    %0 = arith.cmpi eq, %arg0, %c0_i32 : i32
    %1 = arith.extui %0 : i1 to i32
    %c0_i32_0 = arith.constant 0 : i32
    %2 = arith.cmpi ne, %1, %c0_i32_0 : i32
    scf.if %2 {
      %c0_16 = arith.constant 0 : index
      %c0_17 = arith.constant 0 : index
      %c0_18 = arith.constant 0 : index
      %13 = vector.load %arg11[%c0_16, %c0_17, %c0_18] : memref<2x2x64xf32, #tpu.memory_space<vmem>>, vector<2x2x64xf32>
      %c0_19 = arith.constant 0 : index
      %c0_20 = arith.constant 0 : index
      %c0_21 = arith.constant 0 : index
      %14 = vector.load %arg16[%c0_19, %c0_20, %c0_21] : memref<2x2x64xf32, #tpu.memory_space<vmem>>, vector<2x2x64xf32>
      tpu.vector_store %arg16[%c0_19, %c0_20, %c0_21], %13 {strides = array<i32>} : memref<2x2x64xf32, #tpu.memory_space<vmem>>, vector<2x2x64xf32>,
      %c0_22 = arith.constant 0 : index
      %c0_23 = arith.constant 0 : index
      %c0_24 = arith.constant 0 : index
      %15 = vector.load %arg12[%c0_22, %c0_23, %c0_24] : memref<2x2x64xf32, #tpu.memory_space<vmem>>, vector<2x2x64xf32>
      %c0_25 = arith.constant 0 : index
      %c0_26 = arith.constant 0 : index
      %c0_27 = arith.constant 0 : index
      %16 = vector.load %arg17[%c0_25, %c0_26, %c0_27] : memref<2x2x64xf32, #tpu.memory_space<vmem>>, vector<2x2x64xf32>
      tpu.vector_store %arg17[%c0_25, %c0_26, %c0_27], %15 {strides = array<i32>} : memref<2x2x64xf32, #tpu.memory_space<vmem>>, vector<2x2x64xf32>,
      %cst = arith.constant 0.000000e+00 : f32
      %17 = vector.broadcast %cst : f32 to vector<2x14xf32>
      %c0_28 = arith.constant 0 : index
      %c0_29 = arith.constant 0 : index
      %18 = vector.load %arg18[%c0_28, %c0_29] : memref<2x14xf32, #tpu.memory_space<vmem>>, vector<2x14xf32>
      tpu.vector_store %arg18[%c0_28, %c0_29], %17 {strides = array<i32>} : memref<2x14xf32, #tpu.memory_space<vmem>>, vector<2x14xf32>,
    } else {
    }
    %c0 = arith.constant 0 : index
    %c0_1 = arith.constant 0 : index
    %3 = vector.load %arg5[%c0, %c0_1] : memref<64x32xbf16, #tpu.memory_space<vmem>>, vector<64x32xbf16>
    %c0_2 = arith.constant 0 : index
    %c0_3 = arith.constant 0 : index
    %4 = vector.load %arg6[%c0_2, %c0_3] : memref<1x32xf32, #tpu.memory_space<vmem>>, vector<1x32xf32>
    %c0_4 = arith.constant 0 : index
    %c0_5 = arith.constant 0 : index
    %5 = vector.load %arg7[%c0_4, %c0_5] : memref<7x32xbf16, #tpu.memory_space<vmem>>, vector<7x32xbf16>
    %c0_6 = arith.constant 0 : index
    %c0_7 = arith.constant 0 : index
    %6 = vector.load %arg8[%c0_6, %c0_7] : memref<128x256xbf16, #tpu.memory_space<vmem>>, vector<128x256xbf16>
    %c0_8 = arith.constant 0 : index
    %c0_9 = arith.constant 0 : index
    %7 = vector.load %arg9[%c0_8, %c0_9] : memref<128x256xbf16, #tpu.memory_space<vmem>>, vector<128x256xbf16>
    %c0_10 = arith.constant 0 : index
    %c0_11 = arith.constant 0 : index
    %8 = vector.load %arg10[%c0_10, %c0_11] : memref<1x256xf32, #tpu.memory_space<vmem>>, vector<1x256xf32>
    %9 = vector.shape_cast %8 : vector<1x256xf32> to vector<1x256xf32>
    %10 = vector.broadcast %9 : vector<1x256xf32> to vector<2x256xf32>
    %c0_12 = arith.constant 0 : index
    %c0_13 = arith.constant 0 : index
    %11 = vector.load %arg4[%c0_12, %c0_13] : memref<2x8xf32, #tpu.memory_space<vmem>>, vector<2x8xf32>
    %c0_i32_14 = arith.constant 0 : i32
    %c6_i32 = arith.constant 6 : i32
    %12 = arith.addi %c0_i32_14, %c6_i32 : i32
    %c1_i32 = arith.constant 1 : i32
    scf.for %arg19 = %c0_i32_14 to %12 step %c1_i32  : i32 {
      %c1_i32_16 = arith.constant 1 : i32
      %13 = arith.muli %arg19, %c1_i32_16 : i32
      %c0_i32_17 = arith.constant 0 : i32
      %14 = arith.addi %c0_i32_17, %13 : i32
      %c1 = arith.constant 1 : index
      %c0_18 = arith.constant 0 : index
      %c0_19 = arith.constant 0 : index
      %15 = vector.load %arg16[%c1, %c0_18, %c0_19] : memref<2x2x64xf32, #tpu.memory_space<vmem>>, vector<1x2x64xf32>
      %16 = vector.shape_cast %15 : vector<1x2x64xf32> to vector<2x64xf32>
      %17 = arith.truncf %16 : vector<2x64xf32> to vector<2x64xbf16>
      %cst = arith.constant dense<0.000000e+00> : vector<2x32xf32>
      %18 = tpu.matmul %17, %3, %cst {dimension_numbers = #tpu.dot_dimension_numbers<[1], [0], [0], [1], [0, 0, 1, 1], [], []>} : vector<2x64xbf16>, vector<64x32xbf16>, vector<2x32xf32> -> vector<2x32xf32>
      %c0_20 = arith.constant 0 : index
      %c0_21 = arith.constant 0 : index
      %19 = vector.load %arg18[%c0_20, %c0_21] : memref<2x14xf32, #tpu.memory_space<vmem>>, vector<2x14xf32>
      %20 = vector.extract_strided_slice %19 {offsets = [0, 0], sizes = [2, 8], strides = [1, 1]} : vector<2x14xf32> to vector<2x8xf32>
      %21 = vector.extract_strided_slice %19 {offsets = [0, 1], sizes = [2, 8], strides = [1, 1]} : vector<2x14xf32> to vector<2x8xf32>
      %22 = vector.extract_strided_slice %19 {offsets = [0, 2], sizes = [2, 8], strides = [1, 1]} : vector<2x14xf32> to vector<2x8xf32>
      %23 = vector.extract_strided_slice %19 {offsets = [0, 3], sizes = [2, 8], strides = [1, 1]} : vector<2x14xf32> to vector<2x8xf32>
      %24 = vector.extract_strided_slice %19 {offsets = [0, 4], sizes = [2, 8], strides = [1, 1]} : vector<2x14xf32> to vector<2x8xf32>
      %25 = vector.extract_strided_slice %19 {offsets = [0, 5], sizes = [2, 8], strides = [1, 1]} : vector<2x14xf32> to vector<2x8xf32>
      %26 = vector.extract_strided_slice %19 {offsets = [0, 6], sizes = [2, 8], strides = [1, 1]} : vector<2x14xf32> to vector<2x8xf32>
      %27 = vector.shape_cast %20 : vector<2x8xf32> to vector<2x8x1xf32>
      %28 = vector.shape_cast %21 : vector<2x8xf32> to vector<2x8x1xf32>
      %29 = vector.shape_cast %22 : vector<2x8xf32> to vector<2x8x1xf32>
      %30 = vector.shape_cast %23 : vector<2x8xf32> to vector<2x8x1xf32>
      %31 = vector.shape_cast %24 : vector<2x8xf32> to vector<2x8x1xf32>
      %32 = vector.shape_cast %25 : vector<2x8xf32> to vector<2x8x1xf32>
      %33 = vector.shape_cast %26 : vector<2x8xf32> to vector<2x8x1xf32>
      %34 = tpu.concatenate %27, %28, %29, %30, %31, %32, %33 in 2 : vector<2x8x1xf32>, vector<2x8x1xf32>, vector<2x8x1xf32>, vector<2x8x1xf32>, vector<2x8x1xf32>, vector<2x8x1xf32>, vector<2x8x1xf32> -> vector<2x8x7xf32>
      %35 = vector.shape_cast %34 : vector<2x8x7xf32> to vector<16x7xf32>
      %36 = arith.truncf %35 : vector<16x7xf32> to vector<16x7xbf16>
      %cst_22 = arith.constant dense<0.000000e+00> : vector<16x32xf32>
      %37 = tpu.matmul %36, %5, %cst_22 {dimension_numbers = #tpu.dot_dimension_numbers<[1], [0], [0], [1], [0, 0, 1, 1], [], []>} : vector<16x7xbf16>, vector<7x32xbf16>, vector<16x32xf32> -> vector<16x32xf32>
      %38 = vector.shape_cast %37 : vector<16x32xf32> to vector<2x8x32xf32>
      %39 = vector.shape_cast %18 : vector<2x32xf32> to vector<2x1x32xf32>
      %c0_23 = arith.constant 0 : index
      %c0_24 = arith.constant 0 : index
      %c0_25 = arith.constant 0 : index
      %40 = vector.load %arg3[%c0_23, %c0_24, %c0_25] : memref<2x8x32xf32, #tpu.memory_space<vmem>>, vector<2x8x32xf32>
      %41 = vector.broadcast %39 : vector<2x1x32xf32> to vector<2x8x32xf32>
      %42 = arith.addf %41, %40 : vector<2x8x32xf32>
      %43 = arith.addf %42, %38 : vector<2x8x32xf32>
      %44 = math.tanh %43 : vector<2x8x32xf32>
      %45 = vector.shape_cast %4 : vector<1x32xf32> to vector<1x1x32xf32>
      %46 = vector.broadcast %45 : vector<1x1x32xf32> to vector<2x8x32xf32>
      %47 = arith.mulf %44, %46 : vector<2x8x32xf32>
      %cst_26 = arith.constant dense<0.000000e+00> : vector<2x8xf32>
      %48 = vector.multi_reduction <add>, %47, %cst_26 [2] : vector<2x8x32xf32> to vector<2x8xf32>
      %49 = arith.addf %48, %11 : vector<2x8xf32>
      %cst_27 = arith.constant dense<0xFF800000> : vector<2xf32>
      %50 = vector.multi_reduction <maximumf>, %49, %cst_27 [1] : vector<2x8xf32> to vector<2xf32>
      %51 = vector.shape_cast %50 : vector<2xf32> to vector<2x1xf32>
      %52 = vector.broadcast %51 : vector<2x1xf32> to vector<2x8xf32>
      %53 = arith.subf %49, %52 : vector<2x8xf32>
      %54 = math.exp %53 : vector<2x8xf32>
      %cst_28 = arith.constant dense<0.000000e+00> : vector<2xf32>
      %55 = vector.multi_reduction <add>, %54, %cst_28 [1] : vector<2x8xf32> to vector<2xf32>
      %56 = vector.shape_cast %55 : vector<2xf32> to vector<2x1xf32>
      %57 = tpu.reciprocal %56 {approx = true} : vector<2x1xf32> -> vector<2x1xf32>
      %58 = vector.broadcast %57 : vector<2x1xf32> to vector<2x8xf32>
      %59 = arith.mulf %54, %58 : vector<2x8xf32>
      %60 = vector.shape_cast %59 : vector<2x8xf32> to vector<2x1x8xf32>
      %61 = arith.truncf %60 : vector<2x1x8xf32> to vector<2x1x8xbf16>
      %c0_29 = arith.constant 0 : index
      %c0_30 = arith.constant 0 : index
      %c0_31 = arith.constant 0 : index
      %62 = vector.load %arg2[%c0_29, %c0_30, %c0_31] : memref<2x8x64xbf16, #tpu.memory_space<vmem>>, vector<2x8x64xbf16>
      "tpu.trace_start"() <{level = 10 : i32, message = "bqt,bte->bqe"}> : () -> ()
      %cst_32 = arith.constant dense<0.000000e+00> : vector<2x1x64xf32>
      %63 = tpu.matmul %61, %62, %cst_32 {dimension_numbers = #tpu.dot_dimension_numbers<[2], [1], [1], [2], [0, 0, 0, 1, 1, 2], [0], [0]>} : vector<2x1x8xbf16>, vector<2x8x64xbf16>, vector<2x1x64xf32> -> vector<2x1x64xf32>
      "tpu.trace_stop"() : () -> ()
      %64 = vector.shape_cast %63 : vector<2x1x64xf32> to vector<2x64xf32>
      %65 = arith.index_cast %14 : i32 to index
      %c0_33 = arith.constant 0 : index
      %c0_34 = arith.constant 0 : index
      %66 = vector.load %arg15[%65, %c0_33, %c0_34] : memref<6x2x8xf32, #tpu.memory_space<vmem>>, vector<1x2x8xf32>
      %67 = vector.shape_cast %66 : vector<1x2x8xf32> to vector<2x8xf32>
      %68 = vector.shape_cast %59 : vector<2x8xf32> to vector<1x2x8xf32>
      tpu.vector_store %arg15[%65, %c0_33, %c0_34], %68 {strides = array<i32>} : memref<6x2x8xf32, #tpu.memory_space<vmem>>, vector<1x2x8xf32>,
      %69 = vector.extract_strided_slice %19 {offsets = [0, 3], sizes = [2, 8], strides = [1, 1]} : vector<2x14xf32> to vector<2x8xf32>
      %70 = arith.addf %69, %59 : vector<2x8xf32>
      %c0_35 = arith.constant 0 : index
      %c3 = arith.constant 3 : index
      %71 = vector.load %arg18[%c0_35, %c3] : memref<2x14xf32, #tpu.memory_space<vmem>>, vector<2x8xf32>
      tpu.vector_store %arg18[%c0_35, %c3], %70 {strides = array<i32>} : memref<2x14xf32, #tpu.memory_space<vmem>>, vector<2x8xf32>,
      %c0_36 = arith.constant 0 : index
      %c0_37 = arith.constant 0 : index
      %c0_38 = arith.constant 0 : index
      %72 = vector.load %arg16[%c0_36, %c0_37, %c0_38] : memref<2x2x64xf32, #tpu.memory_space<vmem>>, vector<1x2x64xf32>
      %73 = vector.shape_cast %72 : vector<1x2x64xf32> to vector<2x64xf32>
      %74 = tpu.concatenate %64, %73 in 1 : vector<2x64xf32>, vector<2x64xf32> -> vector<2x128xf32>
      %75 = arith.truncf %74 : vector<2x128xf32> to vector<2x128xbf16>
      %76 = arith.index_cast %14 : i32 to index
      %c0_39 = arith.constant 0 : index
      %c0_40 = arith.constant 0 : index
      %77 = vector.load %arg1[%76, %c0_39, %c0_40] : memref<6x2x256xf32, #tpu.memory_space<vmem>>, vector<1x2x256xf32>
      %78 = vector.shape_cast %77 : vector<1x2x256xf32> to vector<2x256xf32>
      %cst_41 = arith.constant dense<0.000000e+00> : vector<2x256xf32>
      %79 = tpu.matmul %75, %6, %cst_41 {dimension_numbers = #tpu.dot_dimension_numbers<[1], [0], [0], [1], [0, 0, 1, 1], [], []>} : vector<2x128xbf16>, vector<128x256xbf16>, vector<2x256xf32> -> vector<2x256xf32>
      %80 = arith.addf %78, %79 : vector<2x256xf32>
      %c0_42 = arith.constant 0 : index
      %c0_43 = arith.constant 0 : index
      %c0_44 = arith.constant 0 : index
      %81 = vector.load %arg17[%c0_42, %c0_43, %c0_44] : memref<2x2x64xf32, #tpu.memory_space<vmem>>, vector<1x2x64xf32>
      %82 = vector.shape_cast %81 : vector<1x2x64xf32> to vector<2x64xf32>
      %83 = vector.extract_strided_slice %80 {offsets = [0, 0], sizes = [2, 64], strides = [1, 1]} : vector<2x256xf32> to vector<2x64xf32>
      %84 = arith.negf %83 : vector<2x64xf32>
      %85 = math.exp %84 : vector<2x64xf32>
      %cst_45 = arith.constant 1.000000e+00 : f32
      %86 = vector.broadcast %cst_45 : f32 to vector<2x64xf32>
      %87 = arith.addf %86, %85 : vector<2x64xf32>
      %88 = arith.divf %86, %87 : vector<2x64xf32>
      %89 = vector.extract_strided_slice %80 {offsets = [0, 64], sizes = [2, 64], strides = [1, 1]} : vector<2x256xf32> to vector<2x64xf32>
      %90 = arith.negf %89 : vector<2x64xf32>
      %91 = math.exp %90 : vector<2x64xf32>
      %cst_46 = arith.constant 1.000000e+00 : f32
      %92 = vector.broadcast %cst_46 : f32 to vector<2x64xf32>
      %93 = arith.addf %92, %91 : vector<2x64xf32>
      %94 = arith.divf %92, %93 : vector<2x64xf32>
      %95 = vector.extract_strided_slice %80 {offsets = [0, 128], sizes = [2, 64], strides = [1, 1]} : vector<2x256xf32> to vector<2x64xf32>
      %96 = math.tanh %95 : vector<2x64xf32>
      %97 = vector.extract_strided_slice %80 {offsets = [0, 192], sizes = [2, 64], strides = [1, 1]} : vector<2x256xf32> to vector<2x64xf32>
      %98 = arith.negf %97 : vector<2x64xf32>
      %99 = math.exp %98 : vector<2x64xf32>
      %cst_47 = arith.constant 1.000000e+00 : f32
      %100 = vector.broadcast %cst_47 : f32 to vector<2x64xf32>
      %101 = arith.addf %100, %99 : vector<2x64xf32>
      %102 = arith.divf %100, %101 : vector<2x64xf32>
      %103 = arith.mulf %94, %82 : vector<2x64xf32>
      %104 = arith.mulf %88, %96 : vector<2x64xf32>
      %105 = arith.addf %103, %104 : vector<2x64xf32>
      %106 = math.tanh %105 : vector<2x64xf32>
      %107 = arith.mulf %102, %106 : vector<2x64xf32>
      %c0_48 = arith.constant 0 : index
      %c0_49 = arith.constant 0 : index
      %c0_50 = arith.constant 0 : index
      %108 = vector.load %arg16[%c0_48, %c0_49, %c0_50] : memref<2x2x64xf32, #tpu.memory_space<vmem>>, vector<1x2x64xf32>
      %109 = vector.shape_cast %108 : vector<1x2x64xf32> to vector<2x64xf32>
      %110 = vector.shape_cast %107 : vector<2x64xf32> to vector<1x2x64xf32>
      tpu.vector_store %arg16[%c0_48, %c0_49, %c0_50], %110 {strides = array<i32>} : memref<2x2x64xf32, #tpu.memory_space<vmem>>, vector<1x2x64xf32>,
      %c0_51 = arith.constant 0 : index
      %c0_52 = arith.constant 0 : index
      %c0_53 = arith.constant 0 : index
      %111 = vector.load %arg17[%c0_51, %c0_52, %c0_53] : memref<2x2x64xf32, #tpu.memory_space<vmem>>, vector<1x2x64xf32>
      %112 = vector.shape_cast %111 : vector<1x2x64xf32> to vector<2x64xf32>
      %113 = vector.shape_cast %105 : vector<2x64xf32> to vector<1x2x64xf32>
      tpu.vector_store %arg17[%c0_51, %c0_52, %c0_53], %113 {strides = array<i32>} : memref<2x2x64xf32, #tpu.memory_space<vmem>>, vector<1x2x64xf32>,
      %c1_54 = arith.constant 1 : index
      %c0_55 = arith.constant 0 : index
      %c0_56 = arith.constant 0 : index
      %114 = vector.load %arg16[%c1_54, %c0_55, %c0_56] : memref<2x2x64xf32, #tpu.memory_space<vmem>>, vector<1x2x64xf32>
      %115 = vector.shape_cast %114 : vector<1x2x64xf32> to vector<2x64xf32>
      %116 = tpu.concatenate %107, %115 in 1 : vector<2x64xf32>, vector<2x64xf32> -> vector<2x128xf32>
      %117 = arith.truncf %116 : vector<2x128xf32> to vector<2x128xbf16>
      %cst_57 = arith.constant dense<0.000000e+00> : vector<2x256xf32>
      %118 = tpu.matmul %117, %7, %cst_57 {dimension_numbers = #tpu.dot_dimension_numbers<[1], [0], [0], [1], [0, 0, 1, 1], [], []>} : vector<2x128xbf16>, vector<128x256xbf16>, vector<2x256xf32> -> vector<2x256xf32>
      %119 = arith.addf %118, %10 : vector<2x256xf32>
      %c1_58 = arith.constant 1 : index
      %c0_59 = arith.constant 0 : index
      %c0_60 = arith.constant 0 : index
      %120 = vector.load %arg17[%c1_58, %c0_59, %c0_60] : memref<2x2x64xf32, #tpu.memory_space<vmem>>, vector<1x2x64xf32>
      %121 = vector.shape_cast %120 : vector<1x2x64xf32> to vector<2x64xf32>
      %122 = vector.extract_strided_slice %119 {offsets = [0, 0], sizes = [2, 64], strides = [1, 1]} : vector<2x256xf32> to vector<2x64xf32>
      %123 = arith.negf %122 : vector<2x64xf32>
      %124 = math.exp %123 : vector<2x64xf32>
      %cst_61 = arith.constant 1.000000e+00 : f32
      %125 = vector.broadcast %cst_61 : f32 to vector<2x64xf32>
      %126 = arith.addf %125, %124 : vector<2x64xf32>
      %127 = arith.divf %125, %126 : vector<2x64xf32>
      %128 = vector.extract_strided_slice %119 {offsets = [0, 64], sizes = [2, 64], strides = [1, 1]} : vector<2x256xf32> to vector<2x64xf32>
      %129 = arith.negf %128 : vector<2x64xf32>
      %130 = math.exp %129 : vector<2x64xf32>
      %cst_62 = arith.constant 1.000000e+00 : f32
      %131 = vector.broadcast %cst_62 : f32 to vector<2x64xf32>
      %132 = arith.addf %131, %130 : vector<2x64xf32>
      %133 = arith.divf %131, %132 : vector<2x64xf32>
      %134 = vector.extract_strided_slice %119 {offsets = [0, 128], sizes = [2, 64], strides = [1, 1]} : vector<2x256xf32> to vector<2x64xf32>
      %135 = math.tanh %134 : vector<2x64xf32>
      %136 = vector.extract_strided_slice %119 {offsets = [0, 192], sizes = [2, 64], strides = [1, 1]} : vector<2x256xf32> to vector<2x64xf32>
      %137 = arith.negf %136 : vector<2x64xf32>
      %138 = math.exp %137 : vector<2x64xf32>
      %cst_63 = arith.constant 1.000000e+00 : f32
      %139 = vector.broadcast %cst_63 : f32 to vector<2x64xf32>
      %140 = arith.addf %139, %138 : vector<2x64xf32>
      %141 = arith.divf %139, %140 : vector<2x64xf32>
      %142 = arith.mulf %133, %121 : vector<2x64xf32>
      %143 = arith.mulf %127, %135 : vector<2x64xf32>
      %144 = arith.addf %142, %143 : vector<2x64xf32>
      %145 = math.tanh %144 : vector<2x64xf32>
      %146 = arith.mulf %141, %145 : vector<2x64xf32>
      %c1_64 = arith.constant 1 : index
      %c0_65 = arith.constant 0 : index
      %c0_66 = arith.constant 0 : index
      %147 = vector.load %arg16[%c1_64, %c0_65, %c0_66] : memref<2x2x64xf32, #tpu.memory_space<vmem>>, vector<1x2x64xf32>
      %148 = vector.shape_cast %147 : vector<1x2x64xf32> to vector<2x64xf32>
      %149 = vector.shape_cast %146 : vector<2x64xf32> to vector<1x2x64xf32>
      tpu.vector_store %arg16[%c1_64, %c0_65, %c0_66], %149 {strides = array<i32>} : memref<2x2x64xf32, #tpu.memory_space<vmem>>, vector<1x2x64xf32>,
      %c1_67 = arith.constant 1 : index
      %c0_68 = arith.constant 0 : index
      %c0_69 = arith.constant 0 : index
      %150 = vector.load %arg17[%c1_67, %c0_68, %c0_69] : memref<2x2x64xf32, #tpu.memory_space<vmem>>, vector<1x2x64xf32>
      %151 = vector.shape_cast %150 : vector<1x2x64xf32> to vector<2x64xf32>
      %152 = vector.shape_cast %144 : vector<2x64xf32> to vector<1x2x64xf32>
      tpu.vector_store %arg17[%c1_67, %c0_68, %c0_69], %152 {strides = array<i32>} : memref<2x2x64xf32, #tpu.memory_space<vmem>>, vector<1x2x64xf32>,
      %153 = arith.truncf %146 : vector<2x64xf32> to vector<2x64xbf16>
      %154 = arith.index_cast %14 : i32 to index
      %c0_70 = arith.constant 0 : index
      %c0_71 = arith.constant 0 : index
      %155 = vector.load %arg13[%154, %c0_70, %c0_71] : memref<6x2x64xbf16, #tpu.memory_space<vmem>>, vector<1x2x64xbf16>
      %156 = vector.shape_cast %155 : vector<1x2x64xbf16> to vector<2x64xbf16>
      %157 = vector.shape_cast %153 : vector<2x64xbf16> to vector<1x2x64xbf16>
      tpu.vector_store %arg13[%154, %c0_70, %c0_71], %157 {strides = array<i32>} : memref<6x2x64xbf16, #tpu.memory_space<vmem>>, vector<1x2x64xbf16>,
      %158 = arith.truncf %64 : vector<2x64xf32> to vector<2x64xbf16>
      %159 = arith.index_cast %14 : i32 to index
      %c0_72 = arith.constant 0 : index
      %c0_73 = arith.constant 0 : index
      %160 = vector.load %arg14[%159, %c0_72, %c0_73] : memref<6x2x64xbf16, #tpu.memory_space<vmem>>, vector<1x2x64xbf16>
      %161 = vector.shape_cast %160 : vector<1x2x64xbf16> to vector<2x64xbf16>
      %162 = vector.shape_cast %158 : vector<2x64xbf16> to vector<1x2x64xbf16>
      tpu.vector_store %arg14[%159, %c0_72, %c0_73], %162 {strides = array<i32>} : memref<6x2x64xbf16, #tpu.memory_space<vmem>>, vector<1x2x64xbf16>,
    }
    %c6_i32_15 = arith.constant 6 : i32
    return
  }
  func.func @transform_0(%arg0: i32) -> (i32, i32, i32) {
    %c0_i32 = arith.constant 0 : i32
    %c0_i32_0 = arith.constant 0 : i32
    %c0_i32_1 = arith.constant 0 : i32
    return %arg0, %c0_i32, %c0_i32_0 : i32, i32, i32
  }
  func.func @transform_1(%arg0: i32) -> (i32, i32, i32) {
    %c0_i32 = arith.constant 0 : i32
    %c0_i32_0 = arith.constant 0 : i32
    %c0_i32_1 = arith.constant 0 : i32
    %c0_i32_2 = arith.constant 0 : i32
    return %c0_i32, %c0_i32_0, %c0_i32_1 : i32, i32, i32
  }
  func.func @transform_2(%arg0: i32) -> (i32, i32, i32) {
    %c0_i32 = arith.constant 0 : i32
    %c0_i32_0 = arith.constant 0 : i32
    %c0_i32_1 = arith.constant 0 : i32
    %c0_i32_2 = arith.constant 0 : i32
    return %c0_i32, %c0_i32_0, %c0_i32_1 : i32, i32, i32
  }
  func.func @transform_3(%arg0: i32) -> (i32, i32) {
    %c0_i32 = arith.constant 0 : i32
    %c0_i32_0 = arith.constant 0 : i32
    %c0_i32_1 = arith.constant 0 : i32
    return %c0_i32, %c0_i32_0 : i32, i32
  }
  func.func @transform_4(%arg0: i32) -> (i32, i32) {
    %c0_i32 = arith.constant 0 : i32
    %c0_i32_0 = arith.constant 0 : i32
    %c0_i32_1 = arith.constant 0 : i32
    return %c0_i32, %c0_i32_0 : i32, i32
  }
  func.func @transform_5(%arg0: i32) -> (i32, i32) {
    %c0_i32 = arith.constant 0 : i32
    %c0_i32_0 = arith.constant 0 : i32
    %c0_i32_1 = arith.constant 0 : i32
    return %c0_i32, %c0_i32_0 : i32, i32
  }
  func.func @transform_6(%arg0: i32) -> (i32, i32) {
    %c0_i32 = arith.constant 0 : i32
    %c0_i32_0 = arith.constant 0 : i32
    %c0_i32_1 = arith.constant 0 : i32
    return %c0_i32, %c0_i32_0 : i32, i32
  }
  func.func @transform_7(%arg0: i32) -> (i32, i32) {
    %c0_i32 = arith.constant 0 : i32
    %c0_i32_0 = arith.constant 0 : i32
    %c0_i32_1 = arith.constant 0 : i32
    return %c0_i32, %c0_i32_0 : i32, i32
  }
  func.func @transform_8(%arg0: i32) -> (i32, i32) {
    %c0_i32 = arith.constant 0 : i32
    %c0_i32_0 = arith.constant 0 : i32
    %c0_i32_1 = arith.constant 0 : i32
    return %c0_i32, %c0_i32_0 : i32, i32
  }
  func.func @transform_9(%arg0: i32) -> (i32, i32) {
    %c0_i32 = arith.constant 0 : i32
    %c0_i32_0 = arith.constant 0 : i32
    %c0_i32_1 = arith.constant 0 : i32
    return %c0_i32, %c0_i32_0 : i32, i32
  }
  func.func @transform_10(%arg0: i32) -> (i32, i32, i32) {
    %c0_i32 = arith.constant 0 : i32
    %c0_i32_0 = arith.constant 0 : i32
    %c0_i32_1 = arith.constant 0 : i32
    %c0_i32_2 = arith.constant 0 : i32
    return %c0_i32, %c0_i32_0, %c0_i32_1 : i32, i32, i32
  }
  func.func @transform_11(%arg0: i32) -> (i32, i32, i32) {
    %c0_i32 = arith.constant 0 : i32
    %c0_i32_0 = arith.constant 0 : i32
    %c0_i32_1 = arith.constant 0 : i32
    %c0_i32_2 = arith.constant 0 : i32
    return %c0_i32, %c0_i32_0, %c0_i32_1 : i32, i32, i32
  }
  func.func @transform_12(%arg0: i32) -> (i32, i32, i32) {
    %c0_i32 = arith.constant 0 : i32
    %c0_i32_0 = arith.constant 0 : i32
    %c0_i32_1 = arith.constant 0 : i32
    return %arg0, %c0_i32, %c0_i32_0 : i32, i32, i32
  }
  func.func @transform_13(%arg0: i32) -> (i32, i32, i32) {
    %c0_i32 = arith.constant 0 : i32
    %c0_i32_0 = arith.constant 0 : i32
    %c0_i32_1 = arith.constant 0 : i32
    return %arg0, %c0_i32, %c0_i32_0 : i32, i32, i32
  }
  func.func @transform_14(%arg0: i32) -> (i32, i32, i32) {
    %c0_i32 = arith.constant 0 : i32
    %c0_i32_0 = arith.constant 0 : i32
    %c0_i32_1 = arith.constant 0 : i32
    return %arg0, %c0_i32, %c0_i32_0 : i32, i32, i32
  }
}

module attributes {stable_mosaic.version = 11 : i64} {
  func.func @_gemm_bias_act_kernel(%arg0: i32, %arg1: memref<12x128xbf16, #tpu.memory_space<vmem>>, %arg2: memref<128x17xbf16, #tpu.memory_space<vmem>>, %arg3: memref<1x17xf32, #tpu.memory_space<vmem>>, %arg4: memref<12x17xf32, #tpu.memory_space<vmem>>) attributes {dimension_semantics = [#tpu.dimension_semantics<parallel>], iteration_bounds = array<i64: 1>, scalar_prefetch = 0 : i64, scratch_operands = 0 : i64, tpu.core_type = #tpu.core_type<tc>, window_params = [{transform_indices = @transform_0, window_bounds = array<i64: 12, 128>}, {pipeline_mode = #tpu.pipeline_mode<synchronous>, transform_indices = @transform_1, window_bounds = array<i64: 128, 17>}, {pipeline_mode = #tpu.pipeline_mode<synchronous>, transform_indices = @transform_2, window_bounds = array<i64: 1, 17>}, {transform_indices = @transform_3, window_bounds = array<i64: 12, 17>}]} {
    %c0 = arith.constant 0 : index
    %c0_0 = arith.constant 0 : index
    %0 = vector.load %arg1[%c0, %c0_0] : memref<12x128xbf16, #tpu.memory_space<vmem>>, vector<12x128xbf16>
    %c0_1 = arith.constant 0 : index
    %c0_2 = arith.constant 0 : index
    %1 = vector.load %arg2[%c0_1, %c0_2] : memref<128x17xbf16, #tpu.memory_space<vmem>>, vector<128x17xbf16>
    %cst = arith.constant dense<0.000000e+00> : vector<12x17xf32>
    %2 = tpu.matmul %0, %1, %cst {dimension_numbers = #tpu.dot_dimension_numbers<[1], [0], [0], [1], [0, 0, 1, 1], [], []>} : vector<12x128xbf16>, vector<128x17xbf16>, vector<12x17xf32> -> vector<12x17xf32>
    %c0_3 = arith.constant 0 : index
    %c0_4 = arith.constant 0 : index
    %3 = vector.load %arg3[%c0_3, %c0_4] : memref<1x17xf32, #tpu.memory_space<vmem>>, vector<1x17xf32>
    %4 = vector.broadcast %3 : vector<1x17xf32> to vector<12x17xf32>
    %5 = arith.addf %2, %4 : vector<12x17xf32>
    %c0_5 = arith.constant 0 : index
    %c0_6 = arith.constant 0 : index
    %6 = vector.load %arg4[%c0_5, %c0_6] : memref<12x17xf32, #tpu.memory_space<vmem>>, vector<12x17xf32>
    tpu.vector_store %arg4[%c0_5, %c0_6], %5 {strides = array<i32>} : memref<12x17xf32, #tpu.memory_space<vmem>>, vector<12x17xf32>,
    return
  }
  func.func @transform_0(%arg0: i32) -> (i32, i32) {
    %c0_i32 = arith.constant 0 : i32
    %c0_i32_0 = arith.constant 0 : i32
    return %arg0, %c0_i32 : i32, i32
  }
  func.func @transform_1(%arg0: i32) -> (i32, i32) {
    %c0_i32 = arith.constant 0 : i32
    %c0_i32_0 = arith.constant 0 : i32
    %c0_i32_1 = arith.constant 0 : i32
    return %c0_i32, %c0_i32_0 : i32, i32
  }
  func.func @transform_2(%arg0: i32) -> (i32, i32) {
    %c0_i32 = arith.constant 0 : i32
    %c0_i32_0 = arith.constant 0 : i32
    %c0_i32_1 = arith.constant 0 : i32
    return %c0_i32, %c0_i32_0 : i32, i32
  }
  func.func @transform_3(%arg0: i32) -> (i32, i32) {
    %c0_i32 = arith.constant 0 : i32
    %c0_i32_0 = arith.constant 0 : i32
    return %arg0, %c0_i32 : i32, i32
  }
}

module attributes {stable_mosaic.version = 11 : i64} {
  func.func @_gemm_bias_act_kernel(%arg0: i32, %arg1: memref<12x80xbf16, #tpu.memory_space<vmem>>, %arg2: memref<80x32xbf16, #tpu.memory_space<vmem>>, %arg3: memref<1x32xf32, #tpu.memory_space<vmem>>, %arg4: memref<1x32xf32, #tpu.memory_space<vmem>>, %arg5: memref<12x32xbf16, #tpu.memory_space<vmem>>) attributes {dimension_semantics = [#tpu.dimension_semantics<parallel>], iteration_bounds = array<i64: 1>, scalar_prefetch = 0 : i64, scratch_operands = 0 : i64, tpu.core_type = #tpu.core_type<tc>, window_params = [{transform_indices = @transform_0, window_bounds = array<i64: 12, 80>}, {pipeline_mode = #tpu.pipeline_mode<synchronous>, transform_indices = @transform_1, window_bounds = array<i64: 80, 32>}, {pipeline_mode = #tpu.pipeline_mode<synchronous>, transform_indices = @transform_2, window_bounds = array<i64: 1, 32>}, {pipeline_mode = #tpu.pipeline_mode<synchronous>, transform_indices = @transform_3, window_bounds = array<i64: 1, 32>}, {transform_indices = @transform_4, window_bounds = array<i64: 12, 32>}]} {
    %c0 = arith.constant 0 : index
    %c0_0 = arith.constant 0 : index
    %0 = vector.load %arg1[%c0, %c0_0] : memref<12x80xbf16, #tpu.memory_space<vmem>>, vector<12x80xbf16>
    %c0_1 = arith.constant 0 : index
    %c0_2 = arith.constant 0 : index
    %1 = vector.load %arg2[%c0_1, %c0_2] : memref<80x32xbf16, #tpu.memory_space<vmem>>, vector<80x32xbf16>
    %cst = arith.constant dense<0.000000e+00> : vector<12x32xf32>
    %2 = tpu.matmul %0, %1, %cst {dimension_numbers = #tpu.dot_dimension_numbers<[1], [0], [0], [1], [0, 0, 1, 1], [], []>} : vector<12x80xbf16>, vector<80x32xbf16>, vector<12x32xf32> -> vector<12x32xf32>
    %c0_3 = arith.constant 0 : index
    %c0_4 = arith.constant 0 : index
    %3 = vector.load %arg3[%c0_3, %c0_4] : memref<1x32xf32, #tpu.memory_space<vmem>>, vector<1x32xf32>
    %4 = vector.broadcast %3 : vector<1x32xf32> to vector<12x32xf32>
    %5 = arith.mulf %2, %4 : vector<12x32xf32>
    %c0_5 = arith.constant 0 : index
    %c0_6 = arith.constant 0 : index
    %6 = vector.load %arg4[%c0_5, %c0_6] : memref<1x32xf32, #tpu.memory_space<vmem>>, vector<1x32xf32>
    %7 = vector.broadcast %6 : vector<1x32xf32> to vector<12x32xf32>
    %8 = arith.addf %5, %7 : vector<12x32xf32>
    %9 = math.tanh %8 : vector<12x32xf32>
    %10 = arith.truncf %9 : vector<12x32xf32> to vector<12x32xbf16>
    %c0_7 = arith.constant 0 : index
    %c0_8 = arith.constant 0 : index
    %11 = vector.load %arg5[%c0_7, %c0_8] : memref<12x32xbf16, #tpu.memory_space<vmem>>, vector<12x32xbf16>
    tpu.vector_store %arg5[%c0_7, %c0_8], %10 {strides = array<i32>} : memref<12x32xbf16, #tpu.memory_space<vmem>>, vector<12x32xbf16>,
    return
  }
  func.func @transform_0(%arg0: i32) -> (i32, i32) {
    %c0_i32 = arith.constant 0 : i32
    %c0_i32_0 = arith.constant 0 : i32
    return %arg0, %c0_i32 : i32, i32
  }
  func.func @transform_1(%arg0: i32) -> (i32, i32) {
    %c0_i32 = arith.constant 0 : i32
    %c0_i32_0 = arith.constant 0 : i32
    %c0_i32_1 = arith.constant 0 : i32
    return %c0_i32, %c0_i32_0 : i32, i32
  }
  func.func @transform_2(%arg0: i32) -> (i32, i32) {
    %c0_i32 = arith.constant 0 : i32
    %c0_i32_0 = arith.constant 0 : i32
    %c0_i32_1 = arith.constant 0 : i32
    return %c0_i32, %c0_i32_0 : i32, i32
  }
  func.func @transform_3(%arg0: i32) -> (i32, i32) {
    %c0_i32 = arith.constant 0 : i32
    %c0_i32_0 = arith.constant 0 : i32
    %c0_i32_1 = arith.constant 0 : i32
    return %c0_i32, %c0_i32_0 : i32, i32
  }
  func.func @transform_4(%arg0: i32) -> (i32, i32) {
    %c0_i32 = arith.constant 0 : i32
    %c0_i32_0 = arith.constant 0 : i32
    return %arg0, %c0_i32 : i32, i32
  }
}

module attributes {stable_mosaic.version = 11 : i64} {
  func.func @_gemm_bias_act_kernel(%arg0: i32, %arg1: memref<12x160xbf16, #tpu.memory_space<vmem>>, %arg2: memref<160x32xbf16, #tpu.memory_space<vmem>>, %arg3: memref<1x32xf32, #tpu.memory_space<vmem>>, %arg4: memref<1x32xf32, #tpu.memory_space<vmem>>, %arg5: memref<12x32xbf16, #tpu.memory_space<vmem>>) attributes {dimension_semantics = [#tpu.dimension_semantics<parallel>], iteration_bounds = array<i64: 1>, scalar_prefetch = 0 : i64, scratch_operands = 0 : i64, tpu.core_type = #tpu.core_type<tc>, window_params = [{transform_indices = @transform_0, window_bounds = array<i64: 12, 160>}, {pipeline_mode = #tpu.pipeline_mode<synchronous>, transform_indices = @transform_1, window_bounds = array<i64: 160, 32>}, {pipeline_mode = #tpu.pipeline_mode<synchronous>, transform_indices = @transform_2, window_bounds = array<i64: 1, 32>}, {pipeline_mode = #tpu.pipeline_mode<synchronous>, transform_indices = @transform_3, window_bounds = array<i64: 1, 32>}, {transform_indices = @transform_4, window_bounds = array<i64: 12, 32>}]} {
    %c0 = arith.constant 0 : index
    %c0_0 = arith.constant 0 : index
    %0 = vector.load %arg1[%c0, %c0_0] : memref<12x160xbf16, #tpu.memory_space<vmem>>, vector<12x160xbf16>
    %c0_1 = arith.constant 0 : index
    %c0_2 = arith.constant 0 : index
    %1 = vector.load %arg2[%c0_1, %c0_2] : memref<160x32xbf16, #tpu.memory_space<vmem>>, vector<160x32xbf16>
    %cst = arith.constant dense<0.000000e+00> : vector<12x32xf32>
    %2 = tpu.matmul %0, %1, %cst {dimension_numbers = #tpu.dot_dimension_numbers<[1], [0], [0], [1], [0, 0, 1, 1], [], []>} : vector<12x160xbf16>, vector<160x32xbf16>, vector<12x32xf32> -> vector<12x32xf32>
    %c0_3 = arith.constant 0 : index
    %c0_4 = arith.constant 0 : index
    %3 = vector.load %arg3[%c0_3, %c0_4] : memref<1x32xf32, #tpu.memory_space<vmem>>, vector<1x32xf32>
    %4 = vector.broadcast %3 : vector<1x32xf32> to vector<12x32xf32>
    %5 = arith.mulf %2, %4 : vector<12x32xf32>
    %c0_5 = arith.constant 0 : index
    %c0_6 = arith.constant 0 : index
    %6 = vector.load %arg4[%c0_5, %c0_6] : memref<1x32xf32, #tpu.memory_space<vmem>>, vector<1x32xf32>
    %7 = vector.broadcast %6 : vector<1x32xf32> to vector<12x32xf32>
    %8 = arith.addf %5, %7 : vector<12x32xf32>
    %9 = math.tanh %8 : vector<12x32xf32>
    %10 = arith.truncf %9 : vector<12x32xf32> to vector<12x32xbf16>
    %c0_7 = arith.constant 0 : index
    %c0_8 = arith.constant 0 : index
    %11 = vector.load %arg5[%c0_7, %c0_8] : memref<12x32xbf16, #tpu.memory_space<vmem>>, vector<12x32xbf16>
    tpu.vector_store %arg5[%c0_7, %c0_8], %10 {strides = array<i32>} : memref<12x32xbf16, #tpu.memory_space<vmem>>, vector<12x32xbf16>,
    return
  }
  func.func @transform_0(%arg0: i32) -> (i32, i32) {
    %c0_i32 = arith.constant 0 : i32
    %c0_i32_0 = arith.constant 0 : i32
    return %arg0, %c0_i32 : i32, i32
  }
  func.func @transform_1(%arg0: i32) -> (i32, i32) {
    %c0_i32 = arith.constant 0 : i32
    %c0_i32_0 = arith.constant 0 : i32
    %c0_i32_1 = arith.constant 0 : i32
    return %c0_i32, %c0_i32_0 : i32, i32
  }
  func.func @transform_2(%arg0: i32) -> (i32, i32) {
    %c0_i32 = arith.constant 0 : i32
    %c0_i32_0 = arith.constant 0 : i32
    %c0_i32_1 = arith.constant 0 : i32
    return %c0_i32, %c0_i32_0 : i32, i32
  }
  func.func @transform_3(%arg0: i32) -> (i32, i32) {
    %c0_i32 = arith.constant 0 : i32
    %c0_i32_0 = arith.constant 0 : i32
    %c0_i32_1 = arith.constant 0 : i32
    return %c0_i32, %c0_i32_0 : i32, i32
  }
  func.func @transform_4(%arg0: i32) -> (i32, i32) {
    %c0_i32 = arith.constant 0 : i32
    %c0_i32_0 = arith.constant 0 : i32
    return %arg0, %c0_i32 : i32, i32
  }
}

module attributes {stable_mosaic.version = 11 : i64} {
  func.func @_gemm_bias_act_kernel(%arg0: i32, %arg1: memref<12x160xbf16, #tpu.memory_space<vmem>>, %arg2: memref<160x16xbf16, #tpu.memory_space<vmem>>, %arg3: memref<1x16xf32, #tpu.memory_space<vmem>>, %arg4: memref<1x16xf32, #tpu.memory_space<vmem>>, %arg5: memref<12x16xf32, #tpu.memory_space<vmem>>) attributes {dimension_semantics = [#tpu.dimension_semantics<parallel>], iteration_bounds = array<i64: 1>, scalar_prefetch = 0 : i64, scratch_operands = 0 : i64, tpu.core_type = #tpu.core_type<tc>, window_params = [{transform_indices = @transform_0, window_bounds = array<i64: 12, 160>}, {pipeline_mode = #tpu.pipeline_mode<synchronous>, transform_indices = @transform_1, window_bounds = array<i64: 160, 16>}, {pipeline_mode = #tpu.pipeline_mode<synchronous>, transform_indices = @transform_2, window_bounds = array<i64: 1, 16>}, {pipeline_mode = #tpu.pipeline_mode<synchronous>, transform_indices = @transform_3, window_bounds = array<i64: 1, 16>}, {transform_indices = @transform_4, window_bounds = array<i64: 12, 16>}]} {
    %c0 = arith.constant 0 : index
    %c0_0 = arith.constant 0 : index
    %0 = vector.load %arg1[%c0, %c0_0] : memref<12x160xbf16, #tpu.memory_space<vmem>>, vector<12x160xbf16>
    %c0_1 = arith.constant 0 : index
    %c0_2 = arith.constant 0 : index
    %1 = vector.load %arg2[%c0_1, %c0_2] : memref<160x16xbf16, #tpu.memory_space<vmem>>, vector<160x16xbf16>
    %cst = arith.constant dense<0.000000e+00> : vector<12x16xf32>
    %2 = tpu.matmul %0, %1, %cst {dimension_numbers = #tpu.dot_dimension_numbers<[1], [0], [0], [1], [0, 0, 1, 1], [], []>} : vector<12x160xbf16>, vector<160x16xbf16>, vector<12x16xf32> -> vector<12x16xf32>
    %c0_3 = arith.constant 0 : index
    %c0_4 = arith.constant 0 : index
    %3 = vector.load %arg3[%c0_3, %c0_4] : memref<1x16xf32, #tpu.memory_space<vmem>>, vector<1x16xf32>
    %4 = vector.broadcast %3 : vector<1x16xf32> to vector<12x16xf32>
    %5 = arith.mulf %2, %4 : vector<12x16xf32>
    %c0_5 = arith.constant 0 : index
    %c0_6 = arith.constant 0 : index
    %6 = vector.load %arg4[%c0_5, %c0_6] : memref<1x16xf32, #tpu.memory_space<vmem>>, vector<1x16xf32>
    %7 = vector.broadcast %6 : vector<1x16xf32> to vector<12x16xf32>
    %8 = arith.addf %5, %7 : vector<12x16xf32>
    %c0_7 = arith.constant 0 : index
    %c0_8 = arith.constant 0 : index
    %9 = vector.load %arg5[%c0_7, %c0_8] : memref<12x16xf32, #tpu.memory_space<vmem>>, vector<12x16xf32>
    tpu.vector_store %arg5[%c0_7, %c0_8], %8 {strides = array<i32>} : memref<12x16xf32, #tpu.memory_space<vmem>>, vector<12x16xf32>,
    return
  }
  func.func @transform_0(%arg0: i32) -> (i32, i32) {
    %c0_i32 = arith.constant 0 : i32
    %c0_i32_0 = arith.constant 0 : i32
    return %arg0, %c0_i32 : i32, i32
  }
  func.func @transform_1(%arg0: i32) -> (i32, i32) {
    %c0_i32 = arith.constant 0 : i32
    %c0_i32_0 = arith.constant 0 : i32
    %c0_i32_1 = arith.constant 0 : i32
    return %c0_i32, %c0_i32_0 : i32, i32
  }
  func.func @transform_2(%arg0: i32) -> (i32, i32) {
    %c0_i32 = arith.constant 0 : i32
    %c0_i32_0 = arith.constant 0 : i32
    %c0_i32_1 = arith.constant 0 : i32
    return %c0_i32, %c0_i32_0 : i32, i32
  }
  func.func @transform_3(%arg0: i32) -> (i32, i32) {
    %c0_i32 = arith.constant 0 : i32
    %c0_i32_0 = arith.constant 0 : i32
    %c0_i32_1 = arith.constant 0 : i32
    return %c0_i32, %c0_i32_0 : i32, i32
  }
  func.func @transform_4(%arg0: i32) -> (i32, i32) {
    %c0_i32 = arith.constant 0 : i32
    %c0_i32_0 = arith.constant 0 : i32
    return %arg0, %c0_i32 : i32, i32
  }
}

</mosaic_0001>

<bundles_post_ra>
// kernel: tacotron2_forward.20
= control target key start
LH: loop header
LB: loop body
LE: loop exit
PB: predicated region body
PF: predicated region fallthrough
CT: control target
= control target key end

     0   :  { %v127_v1 = vmov 0   ;;  %vm58_vm0 = vcmask 261120   ;;  %v23_v6 = vlaneseq  ;;  %s178_s1 = inlined_call_operand.vmem [shape: bf16[32,256], index: 1, kind: input, shape index: {}]   ;;  %s179_s0 = inlined_call_operand.vmem [shape: bf16[12,32], index: 0, kind: input, shape index: {}]   ;;  %s180_s2 = inlined_call_operand.vmem [shape: f32[1,256], index: 2, kind: input, shape index: {}]   ;;  %s181_s3 = inlined_call_operand.vmem [shape: f32[12,256], index: 3, kind: output, shape index: {}]  }
   0x1   :  { %v120_v0 = vld [vmem:[%s178_s1 + $0x14] ss:$8 sps:$4 sm:$0xff]   ;;  %94 = vmatprep.mubr.bf16.mxu0 %v127_v1  ;;  %v122_v2 = vld [vmem:[%s178_s1 + $0x10] ss:$8 sps:$4 sm:$0xff]   ;;  %v123_v3 = vld [vmem:[%s178_s1 + $0x4] ss:$8 sps:$4 sm:$0xff]  }
   0x2   :  { %74 = vmatprep.subr.bf16.mxu0 %v120_v0  ;;  %v125_v4 = vld [vmem:[%s178_s1] ss:$8 sps:$4 sm:$0xff]   ;;  %v24_v7 = vshrl.u32 %v23_v6, 7 }
   0x3   :  { %75 = vmatpush1.bf16.msra.mxu0 %v122_v2  ;;  %v126_v5 = vld [vmem:[%s179_s0] sm:$0x3f]  }
   0x4   :  { %76 = vmatprep.subr.bf16.mxu0 %v123_v3  ;;  %v25_v8 = vsub.s32 0, %v24_v7  ;;  %v21_v9 = vld [vmem:[%s180_s2] sm:$0x3]  ;;  %v29_v10 = vsub.s32 1, %v24_v7 }
   0x6   :  { %v26_v11 = vrot.slane %v21_v9, %v25_v8  ;;  %v30_v12 = vrot.slane %v21_v9, %v29_v10 }
   0x7   :  { %77 = vmatpush1.bf16.msra.mxu0 %v125_v4 }
   0xa   :  { %118 = vmatmul.mubr.msk.bf16.vlgmr.msra.gmra.mxu0 %vm58_vm0, %v126_v5 }
  0xca   :  { %v96_v13 = vpop.f32.mrf.mxu0 }
  0xcb   :  { %v97_v14 = vadd.f32 %v96_v13, %v26_v11 }
  0xcc   :  { %v98_v15 = vpop.f32.mrf.mxu0 }
  0xcd   :  { %105 = vst [vmem:[%s181_s3] sm:$0xff] %v97_v14  ;;  %v99_v16 = vadd.f32 %v98_v15, %v30_v12 }
  0xce   :  { %v100_v17 = vpop.f32.mrf.mxu0 }
  0xcf   :  { %106 = vst [vmem:[%s181_s3 + $0x8] sm:$0xff] %v99_v16  ;;  %v101_v18 = vadd.f32 %v100_v17, %v26_v11 }
  0xd0   :  { %v102_v19 = vpop.f32.mrf.mxu0 }
  0xd1   :  { %107 = vst [vmem:[%s181_s3 + $0x10] sm:$0xf] %v101_v18  ;;  %v103_v20 = vadd.f32 %v102_v19, %v30_v12 }
  0xd3   :  { %108 = vst [vmem:[%s181_s3 + $0x18] sm:$0xf] %v103_v20 }

// kernel: tacotron2_forward.19
= control target key start
LH: loop header
LB: loop body
LE: loop exit
PB: predicated region body
PF: predicated region fallthrough
CT: control target
= control target key end

     0   :  { %v133_v0 = vmov 0.0   ;;  %vm134_vm0 = vmmov 0   ;;  %vm45_vm1 = vcmask 261120   ;;  %vm100_vm2 = vcmask 257024   ;;  %s173_s1 = inlined_call_operand.vmem [shape: bf16[32,32], index: 1, kind: input, shape index: {}]   ;;  %s174_s0 = inlined_call_operand.vmem [shape: bf16[14,32], index: 0, kind: input, shape index: {}]   ;;  %s175_s2 = inlined_call_operand.vmem [shape: f32[1,32], index: 2, kind: input, shape index: {}]   ;;  %s176_s3 = inlined_call_operand.vmem [shape: bf16[14,32], index: 3, kind: output, shape index: {}]  }
   0x1   :  { %120 = vmatprep.subr.bf16.mxu0 %v133_v0  ;;  %v130_v1 = vld [vmem:[%s173_s1 + $0x8] sm:$0xff]   ;;  %124 = vmatprep.mubr.msk.bf16.mxu0 %vm134_vm0, %v133_v0  ;;  %v131_v2 = vld [vmem:[%s173_s1] sm:$0xff]   ;;  %vm102_vm3 = vcmask 256000  }
   0x2   :  { %121 = vmatpush3.bf16.msra.mxu0 %v130_v1  ;;  %v132_v3 = vld [vmem:[%s174_s0] sm:$0x7f]  }
   0x3   :  { %122 = vmatprep.subr.bf16.mxu0 %v133_v0  ;;  %v108_v4 = vld [vmem:[%s175_s2] ss:$0 sm:$0xff] }
   0x6   :  { %123 = vmatpush3.bf16.msra.mxu0 %v131_v2 }
   0x9   :  { %125 = vmatmul.mubr.msk.bf16.vlgmr.msra.gmra.mxu0 %vm45_vm1, %v132_v3 }
  0xc9   :  { %v83_v5 = vpop.f32.mrf.mxu0 }
  0xca   :  { %v84_v6 = vadd.f32 %v108_v4, %v83_v5 }
  0xcb   :  { %v126_v7 = vpop.f32.mrf.mxu0 }
  0xcc   :  { %v90_v8 = vmax.f32 %v84_v6, 0.0 }
  0xcd   :  { %v86_v9 = vpop.f32.mrf.mxu0 }
  0xce   :  { %v115_v10 = vpack.c.bf16 %v90_v8, %v90_v8  ;;  %v87_v11 = vadd.f32 %v108_v4, %v86_v9 }
  0xcf   :  { %v127_v12 = vpop.f32.mrf.mxu0 }
  0xd0   :  { %101 = vst.msk [vmem:[%s176_s3] sm:$0xf] %vm100_vm2, %v115_v10  ;;  %v91_v13 = vmax.f32 %v87_v11, 0.0 }
  0xd2   :  { %v116_v14 = vpack.c.bf16 %v91_v13, %v91_v13 }
  0xd4   :  { %103 = vst.msk [vmem:[%s176_s3 + $0x4] sm:$0x7] %vm102_vm3, %v116_v14 }

// kernel: tacotron2_forward.18
= control target key start
LH: loop header
LB: loop body
LE: loop exit
PB: predicated region body
PF: predicated region fallthrough
CT: control target
= control target key end

     0   :  { %v120_v0 = vmov 0.0   ;;  %vm121_vm0 = vmmov 0   ;;  %vm37_vm1 = vcmask 130048   ;;  %vm92_vm2 = vcmask 257024   ;;  %s157_s1 = inlined_call_operand.vmem [shape: bf16[16,32], index: 1, kind: input, shape index: {}]   ;;  %s158_s0 = inlined_call_operand.vmem [shape: bf16[14,16], index: 0, kind: input, shape index: {}]   ;;  %s159_s2 = inlined_call_operand.vmem [shape: f32[1,32], index: 2, kind: input, shape index: {}]   ;;  %s160_s3 = inlined_call_operand.vmem [shape: bf16[14,32], index: 3, kind: output, shape index: {}]  }
   0x1   :  { %110 = vmatprep.subr.bf16.mxu0 %v120_v0  ;;  %v118_v1 = vld [vmem:[%s157_s1] sm:$0xff]   ;;  %112 = vmatprep.mubr.msk.bf16.mxu0 %vm121_vm0, %v120_v0  ;;  %vm94_vm3 = vcmask 256000  }
   0x2   :  { %v119_v2 = vld [vmem:[%s158_s0] sm:$0x7f]   ;;  %111 = vmatpush3.bf16.msra.mxu0 %v118_v1 }
   0x3   :  { %v100_v3 = vld [vmem:[%s159_s2] ss:$0 sm:$0xff] }
   0x5   :  { %113 = vmatmul.mubr.msk.bf16.vlgmr.msra.gmra.mxu0 %vm37_vm1, %v119_v2 }
  0xc5   :  { %v75_v4 = vpop.f32.mrf.mxu0 }
  0xc6   :  { %v76_v5 = vadd.f32 %v100_v3, %v75_v4 }
  0xc7   :  { %v114_v6 = vpop.f32.mrf.mxu0 }
  0xc8   :  { %v82_v7 = vmax.f32 %v76_v5, 0.0 }
  0xc9   :  { %v78_v8 = vpop.f32.mrf.mxu0 }
  0xca   :  { %v106_v9 = vpack.c.bf16 %v82_v7, %v82_v7  ;;  %v79_v10 = vadd.f32 %v100_v3, %v78_v8 }
  0xcb   :  { %v115_v11 = vpop.f32.mrf.mxu0 }
  0xcc   :  { %93 = vst.msk [vmem:[%s160_s3] sm:$0xf] %vm92_vm2, %v106_v9  ;;  %v83_v12 = vmax.f32 %v79_v10, 0.0 }
  0xce   :  { %v107_v13 = vpack.c.bf16 %v83_v12, %v83_v12 }
  0xd0   :  { %95 = vst.msk [vmem:[%s160_s3 + $0x4] sm:$0x7] %vm94_vm3, %v107_v13 }

// kernel: tacotron2_forward.15
= control target key start
LH: loop header
LB: loop body
LE: loop exit
PB: predicated region body
PF: predicated region fallthrough
CT: control target
= control target key end

     0   :  { %v127_v1 = vmov 0   ;;  %vm58_vm0 = vcmask 261120   ;;  %v23_v6 = vlaneseq  ;;  %s178_s1 = inlined_call_operand.vmem [shape: bf16[32,256], index: 1, kind: input, shape index: {}]   ;;  %s179_s0 = inlined_call_operand.vmem [shape: bf16[16,32], index: 0, kind: input, shape index: {}]   ;;  %s180_s2 = inlined_call_operand.vmem [shape: f32[1,256], index: 2, kind: input, shape index: {}]   ;;  %s181_s3 = inlined_call_operand.vmem [shape: f32[16,256], index: 3, kind: output, shape index: {}]  }
   0x1   :  { %v120_v0 = vld [vmem:[%s178_s1 + $0x14] ss:$8 sps:$4 sm:$0xff]   ;;  %94 = vmatprep.mubr.bf16.mxu0 %v127_v1  ;;  %v122_v2 = vld [vmem:[%s178_s1 + $0x10] ss:$8 sps:$4 sm:$0xff]   ;;  %v123_v3 = vld [vmem:[%s178_s1 + $0x4] ss:$8 sps:$4 sm:$0xff]  }
   0x2   :  { %74 = vmatprep.subr.bf16.mxu0 %v120_v0  ;;  %v125_v4 = vld [vmem:[%s178_s1] ss:$8 sps:$4 sm:$0xff]   ;;  %v24_v7 = vshrl.u32 %v23_v6, 7 }
   0x3   :  { %75 = vmatpush1.bf16.msra.mxu0 %v122_v2  ;;  %v126_v5 = vld [vmem:[%s179_s0] sm:$0xff]  }
   0x4   :  { %76 = vmatprep.subr.bf16.mxu0 %v123_v3  ;;  %v25_v8 = vsub.s32 0, %v24_v7  ;;  %v21_v9 = vld [vmem:[%s180_s2] sm:$0x3]  ;;  %v29_v10 = vsub.s32 1, %v24_v7 }
   0x6   :  { %v26_v11 = vrot.slane %v21_v9, %v25_v8  ;;  %v30_v12 = vrot.slane %v21_v9, %v29_v10 }
   0x7   :  { %77 = vmatpush1.bf16.msra.mxu0 %v125_v4 }
   0xa   :  { %118 = vmatmul.mubr.msk.bf16.vlgmr.msra.gmra.mxu0 %vm58_vm0, %v126_v5 }
  0xca   :  { %v96_v13 = vpop.f32.mrf.mxu0 }
  0xcb   :  { %v97_v14 = vadd.f32 %v96_v13, %v26_v11 }
  0xcc   :  { %v98_v15 = vpop.f32.mrf.mxu0 }
  0xcd   :  { %105 = vst [vmem:[%s181_s3] sm:$0xff] %v97_v14  ;;  %v99_v16 = vadd.f32 %v98_v15, %v30_v12 }
  0xce   :  { %v100_v17 = vpop.f32.mrf.mxu0 }
  0xcf   :  { %106 = vst [vmem:[%s181_s3 + $0x8] sm:$0xff] %v99_v16  ;;  %v101_v18 = vadd.f32 %v100_v17, %v26_v11 }
  0xd0   :  { %v102_v19 = vpop.f32.mrf.mxu0 }
  0xd1   :  { %107 = vst [vmem:[%s181_s3 + $0x10] sm:$0xff] %v101_v18  ;;  %v103_v20 = vadd.f32 %v102_v19, %v30_v12 }
  0xd3   :  { %108 = vst [vmem:[%s181_s3 + $0x18] sm:$0xff] %v103_v20 }

// kernel: tacotron2_forward.13
= control target key start
LH: loop header
LB: loop body
LE: loop exit
PB: predicated region body
PF: predicated region fallthrough
CT: control target
= control target key end

     0   :  { %v222_v0 = vmov 0   ;;  %vm109_vm0 = vcmask 261120   ;;  %vm182_vm1 = vcmask 257024   ;;  %s296_s1 = inlined_call_operand.vmem [shape: bf16[160,32], index: 1, kind: input, shape index: {}]   ;;  %s297_s0 = inlined_call_operand.vmem [shape: bf16[16,160], index: 0, kind: input, shape index: {}]   ;;  %s298_s2 = inlined_call_operand.vmem [shape: f32[1,32], index: 2, kind: input, shape index: {}]   ;;  %s299_s3 = inlined_call_operand.vmem [shape: f32[1,32], index: 3, kind: input, shape index: {}]   ;;  %s300_s4 = inlined_call_operand.vmem [shape: bf16[16,32], index: 4, kind: output, shape index: {}]  }
   0x1   :  { %113 = vmatprep.subr.bf16.mxu0 %v222_v0  ;;  %v209_v1 = vld [vmem:[%s296_s1 + $0x38] sm:$0xff]   ;;  %v210_v2 = vld [vmem:[%s296_s1 + $0x30] sm:$0xff]   ;;  %v211_v3 = vld [vmem:[%s296_s1 + $0x28] sm:$0xff]  }
   0x2   :  { %114 = vmatpush1.bf16.msra.mxu0 %v209_v1  ;;  %v212_v4 = vld [vmem:[%s296_s1 + $0x20] sm:$0xff]   ;;  %v213_v6 = vld [vmem:[%s296_s1 + $0x18] sm:$0xff]   ;;  %v214_v7 = vld [vmem:[%s296_s1 + $0x10] sm:$0xff]  }
   0x3   :  { %115 = vmatprep.subr.bf16.mxu0 %v222_v0  ;;  %v221_v5 = vld [vmem:[%s297_s0 + $0x4] ss:$8 sps:$4 sm:$0xff]   ;;  %v219_v12 = vld [vmem:[%s297_s0] ss:$8 sps:$4 sm:$0xff]  }
   0x4   :  { %201 = vmatprep.mubr.msk.bf16.mxu0 %vm109_vm0, %v221_v5  ;;  %v215_v8 = vld [vmem:[%s296_s1 + $0x8] sm:$0xff]   ;;  %v216_v9 = vld [vmem:[%s296_s1] sm:$0xff]  }
   0x5   :  { %v217_v10 = vld [vmem:[%s296_s1 + $0x48] sm:$0xff]   ;;  %v218_v11 = vld [vmem:[%s296_s1 + $0x40] sm:$0xff]  }
   0x6   :  { %116 = vmatpush1.bf16.msra.mxu0 %v210_v2  ;;  %v202_v13 = vld [vmem:[%s298_s2] ss:$0 sm:$0xff] }
   0x7   :  { %117 = vmatprep.subr.bf16.mxu0 %v222_v0  ;;  %v203_v15 = vld [vmem:[%s299_s3] ss:$0 sm:$0xff] }
   0xa   :  { %118 = vmatpush1.bf16.msra.mxu0 %v211_v3 }
   0xb   :  { %119 = vmatprep.subr.bf16.mxu0 %v222_v0 }
   0xe   :  { %120 = vmatpush1.bf16.msra.mxu0 %v212_v4 }
   0xf   :  { %121 = vmatprep.subr.bf16.mxu0 %v222_v0 }
  0x12   :  { %122 = vmatpush1.bf16.msra.mxu0 %v213_v6 }
  0x13   :  { %123 = vmatprep.subr.bf16.mxu0 %v222_v0 }
  0x16   :  { %124 = vmatpush1.bf16.msra.mxu0 %v214_v7 }
  0x17   :  { %125 = vmatprep.subr.bf16.mxu0 %v222_v0 }
  0x1a   :  { %126 = vmatpush1.bf16.msra.mxu0 %v215_v8 }
  0x1b   :  { %127 = vmatprep.subr.bf16.mxu0 %v222_v0 }
  0x1e   :  { %128 = vmatpush1.bf16.msra.mxu0 %v216_v9 }
  0x1f   :  { %141 = vmatprep.subr.bf16.mxu0 %v222_v0 }
  0x22   :  { %142 = vmatpush2.bf16.msra.mxu0 %v217_v10 }
  0x23   :  { %143 = vmatprep.subr.bf16.mxu0 %v222_v0 }
  0x26   :  { %144 = vmatpush2.bf16.msra.mxu0 %v218_v11 }
  0x29   :  { %146 = vmatmul.mubr.bf16.vlgmr.msra.gmra.mxu0 %v219_v12 }
  0xe9   :  { %v147_v14 = vpop.f32.mrf.mxu0 }
  0xea   :  { %v161_v16 = vmul.f32 %v202_v13, %v147_v14 }
  0xeb   :  { %v149_v17 = vpop.f32.mrf.mxu0 }
  0xec   :  { %v170_v18 = vadd.f32 %v203_v15, %v161_v16 }
  0xed   :  { %v150_v19 = vpop.f32.mrf.mxu0 }
  0xee   :  { %v172_v20 = vmax.f32 %v170_v18, 0.0  ;;  %v162_v21 = vmul.f32 %v202_v13, %v150_v19 }
  0xef   :  { %v152_v22 = vpop.f32.mrf.mxu0 }
  0xf0   :  { %v206_v23 = vpack.c.bf16 %v172_v20, %v172_v20  ;;  %v171_v24 = vadd.f32 %v203_v15, %v162_v21 }
  0xf2   :  { %183 = vst.msk [vmem:[%s300_s4] sm:$0xf] %vm182_vm1, %v206_v23  ;;  %v173_v25 = vmax.f32 %v171_v24, 0.0 }
  0xf4   :  { %v207_v26 = vpack.c.bf16 %v173_v25, %v173_v25 }
  0xf6   :  { %184 = vst.msk [vmem:[%s300_s4 + $0x4] sm:$0xf] %vm182_vm1, %v207_v26 }

// kernel: tacotron2_forward.16
= control target key start
LH: loop header
LB: loop body
LE: loop exit
PB: predicated region body
PF: predicated region fallthrough
CT: control target
= control target key end

     0   :  { %s753_s15 = smov 0   ;;  %s755_s16 = smov 0   ;;  %s840_s0 = inlined_call_operand.vmem [shape: f32[2,8,2,128], index: 0, kind: input, shape index: {}]   ;;  %s841_s1 = inlined_call_operand.vmem [shape: bf16[2,32,128], index: 1, kind: input, shape index: {}]   ;;  %s842_s2 = inlined_call_operand.vmem [shape: f32[2,2,32], index: 2, kind: input, shape index: {}]   ;;  %s843_s3 = inlined_call_operand.vmem [shape: f32[2,2,32], index: 3, kind: input, shape index: {}]   ;;  %s844_s4 = inlined_call_operand.vmem [shape: bf16[2,8,2,32], index: 4, kind: output, shape index: {}]  }
   0x1   :  { %s757_s17 = smov 0  }
   0x2 LB: > { %s26_s18 = sadd.s32 1, %s712_s16  ;;  %p614_p0 = scmp.ge.s32.totalorder %s716_s17, 1  ;;  %s716_s17 = sphi %s757_s17, %s14_s17   ;;  %s712_s16 = sphi %s755_s16, %s846_s16   ;;  %s708_s15 = sphi %s753_s15, %s845_s15  }
   0x3   : > { %p28_p1 = scmp.ge.s32.totalorder %s26_s18, 2  ;;  %p229_p2 = scmp.lt.s32.totalorder %s716_s17, 3 }
   0x5   : > { %s848_s18 = smov (%p28_p1, %s26_s18), 0  ;;  %p230_p3 = pnand %p614_p0, %p229_p2 }
   0x6   : > { %p285_p4 = scmp.lt.s32.totalorder (!%p230_p3), %s708_s15, 1  ;;  %s804_s12 = smov (!%p230_p3), 0  }
   0x7   : > { %233 = sbr.rel (%p230_p3) target bundleno = 725 (0x2d5), region = 36 }
   0xc   : > { %s286_s19 = scalar_select %p285_p4, %s708_s15, 1  ;;  %vm331_vm0 = vcmask 254976  }
   0xe   : > { %s631_s20 = sshll.u32 %s286_s19, 4  ;;  %s620_s21 = sshll.u32 %s286_s19, 1 }
   0xf   : > { %s778_s24 = scalar_lea.vmem %s840_s0, %s631_s20  ;;  %s301_s27 = scalar_lea.vmem %s841_s1, %s631_s20 }
  0x10   : > { %s305_s30 = scalar_lea.vmem %s842_s2, %s620_s21  ;;  %s623_s5 = sshll.u32 %s286_s19, 3  ;;  %v786_v0 = vld [vmem:[%s301_s27] sm:$0xf]  ;;  %v788_v1 = vld [vmem:[%s301_s27 + $0x4] sm:$0xf] }
  0x11   : > { %s793_s8 = scalar_lea.vmem %s844_s4, %s623_s5  ;;  %v330_v2 = vld [vmem:[%s305_s30] sm:$0x3]  ;;  %v795_v3 = vld [vmem:[%s301_s27 + $0x8] sm:$0xf]  ;;  %v797_v4 = vld [vmem:[%s301_s27 + $0xc] sm:$0xf]  ;;  %s309_s11 = scalar_lea.vmem %s843_s3, %s620_s21 }
  0x12   : > { %332 = vst.msk [vmem:[#allocation2] sm:$0x3] %vm331_vm0, %v330_v2  ;;  %v333_v5 = vld [vmem:[%s309_s11] sm:$0x3] }
  0x13   : > { %334 = vst.msk [vmem:[#allocation3] sm:$0x3] %vm331_vm0, %v333_v5 }
  0x14 LB: >> { %v626_v6 = vcombine.low %v795_v3, %v797_v4  ;;  %v722_v7 = vmov 0.0   ;;  %vm723_vm1 = vmmov 0   ;;  %v625_v8 = vcombine.low %v786_v0, %v788_v1  ;;  %p345_p5 = scmp.eq.s32.totalorder %s708_s15, 0  ;;  %s346_s13 = ssub.s32 7, %s720_s12  ;;  %s720_s12 = sphi %s804_s12, %s344_s12  }
  0x15   : >> { %636 = vmatprep.subr.bf16.mxu0 %v722_v7  ;;  %640 = vmatprep.mubr.msk.bf16.mxu0 %vm723_vm1, %v722_v7  ;;  %vm365_vm2 = vcmask 261120   ;;  %s724_s21 = smov 64   ;;  %s725_s22 = smov 32   ;;  %v727_v30 = vmov 1966171168   ;;  %v455_v32 = vlaneseq  ;;  %vm470_vm3 = vcmask 253952  }
  0x16   : >> { %637 = vmatpush3.bf16.msra.mxu0 %v626_v6  ;;  %s816_s14 = scalar_select %p345_p5, %s720_s12, %s346_s13  ;;  %v453_v31 = vunpack.c.l.s4 %v727_v30 }
  0x17   : >> { %638 = vmatprep.subr.bf16.mxu0 %v722_v7  ;;  %s726_s23 = smov 96   ;;  %v456_v34 = vshrl.u32 %v455_v32, 7  ;;  %s344_s12 = sadd.s32 1, %s720_s12  }
  0x18   : >> { %s624_s19 = sshll.u32 %s816_s14, 1  ;;  %v454_v33 = vunpack.c.0.s8 %v453_v31  ;;  %s469_s25 = scalar_lea.vmem %s793_s8, %s816_s14 }
  0x19   : >> { %v351_v9 = vld [vmem:[#allocation2] sm:$0x3]  ;;  %s349_s20 = scalar_lea.vmem %s778_s24, %s624_s19  ;;  %p341_p6 = scmp.ge.s32.totalorder %s344_s12, 8  }
  0x1a   : >> { %v352_v10 = vpack.c.bf16 %v351_v9, %v351_v9  ;;  %639 = vmatpush3.bf16.msra.mxu0 %v625_v8  ;;  %v350_v11 = vld [vmem:[%s349_s20] sm:$0x3]  ;;  %v417_v18 = vld [vmem:[#allocation3] sm:$0x3]  ;;  %v457_v36 = vsub.s32 %v454_v33, %v456_v34 }
  0x1d   : >> { %641 = vmatmul.mubr.msk.bf16.vlgmr.msra.gmra.mxu0 %vm365_vm2, %v352_v10 }
  0xdd   : >> { %v403_v12 = vpop.f32.mrf.mxu0 }
  0xde   : >> { %v409_v13 = vadd.f32 %v403_v12, %v350_v11 }
  0xdf   : >> { %v642_v14 = vpop.f32.mrf.mxu0 }
  0xe0   : >> { %682 = vtanh.f32 %v409_v13  ;;  %v628_v19 = vmul.f32 -1.442695, %v409_v13 }
  0xe1   : >> { %v406_v15 = vpop.f32.mrf.mxu0 }
  0xe2   : >> { %684 = vpow2.f32 %v628_v19 }
  0xe3   : >> { %v643_v16 = vpop.f32.mrf.mxu0 }
  0xed   : >> { %v683_v17 = vpop.eup %682 }
  0xee   : >> { %424 = vrot.lane.b32.xlu0 %v683_v17, %s724_s21 }
  0xef   : >> { %v685_v20 = vpop.eup %684 }
  0xf0   : >> { %v413_v21 = vadd.f32 1.0, %v685_v20 }
  0xf2   : >> { %419 = vrot.lane.b32.xlu0 %v417_v18, %s725_s22  ;;  %686 = vrcp.f32 %v413_v21 }
  0xff   : >> { %v687_v22 = vpop.eup %686 }
 0x160   : >> { %v425_v23 = vpop.permute.xlu0 %424 }
 0x161   : >> { %v427_v24 = vmul.f32 %v687_v22, %v425_v23 }
 0x163   : >> { %429 = vrot.lane.b32.xlu1 %v427_v24, %s725_s22 }
 0x164   : >> { %v420_v25 = vpop.permute.xlu0 %419 }
 0x165   : >> { %v422_v26 = vmul.f32 %v687_v22, %v420_v25 }
 0x1d5   : >> { %v430_v27 = vpop.permute.xlu1 %429 }
 0x1d6   : >> { %v432_v28 = vadd.f32 %v430_v27, %v422_v26 }
 0x1d8   : >> { %688 = vtanh.f32 %v432_v28 }
 0x1e5   : >> { %v689_v29 = vpop.eup %688 }
 0x1e6   : >> { %435 = vrot.lane.b32.xlu1 %v689_v29, %s724_s21 }
 0x1ea   : >> { %446 = vrot.lane.b32.xlu1 %v432_v28, %s726_s23 }
 0x258   : >> { %v436_v35 = vpop.permute.xlu1 %435 }
 0x259   : >> { %v438_v37 = vmul.f32 %v687_v22, %v436_v35 }
 0x25b   : >> { %v450_v38 = vpack.c.bf16 %v438_v37, %v438_v37  ;;  %440 = vrot.lane.b32.xlu0 %v438_v37, %s725_s22 }
 0x25c   : >> { %v447_v39 = vpop.permute.xlu1 %446 }
 0x25d   : >> { %v458_v40 = vrot.slane %v450_v38, %v457_v36  ;;  %449 = vst.msk [vmem:[#allocation3] sm:$0x3] %vm331_vm0, %v447_v39 }
 0x25f   : >> { %v465_v41 = vrot.slane %v458_v40, %v457_v36 }
 0x261   : >> { %466 = vrot.lane.b32.xlu0 %v465_v41, %s725_s22 }
 0x2cd   : >> { %v441_v42 = vpop.permute.xlu0 %440 }
 0x2ce   : >> { %444 = vst.msk [vmem:[#allocation2] sm:$0x3] %vm331_vm0, %v441_v42 }
 0x2d0   : > { %343 = sbr.rel (!%p341_p6) target bundleno = 20 (0x14), region = 88 }
 0x2d3   : >> { %v467_v43 = vpop.permute.xlu0 %466 }
 0x2d4   : >> { %471 = vst.msk [vmem:[%s469_s25] sm:$0x1] %vm470_vm3, %v467_v43 }
 0x2d5 PF: > { %s14_s17 = sadd.s32 1, %s716_s17   ;;  %s845_s15 = smov %s712_s16 }
 0x2d6   : > { %p11_p7 = scmp.ge.s32.totalorder %s14_s17, 4   ;;  %s846_s16 = smov %s848_s18 }
 0x2d8   :  { %13 = sbr.rel (!%p11_p7) target bundleno = 2 (0x2), region = 99 }

// kernel: tacotron2_forward.17
= control target key start
LH: loop header
LB: loop body
LE: loop exit
PB: predicated region body
PF: predicated region fallthrough
CT: control target
= control target key end

     0   :  { %v133_v0 = vmov 0.0   ;;  %vm134_vm0 = vmmov 0   ;;  %vm51_vm1 = vcmask 523264   ;;  %vm96_vm2 = vcmask 261120   ;;  %s171_s1 = inlined_call_operand.vmem [shape: bf16[64,32], index: 1, kind: input, shape index: {}]   ;;  %s172_s0 = inlined_call_operand.vmem [shape: bf16[16,64], index: 0, kind: input, shape index: {}]   ;;  %s173_s2 = inlined_call_operand.vmem [shape: f32[16,32], index: 2, kind: output, shape index: {}]  }
   0x1   :  { %114 = vmatprep.subr.bf16.mxu0 %v133_v0  ;;  %v128_v1 = vld [vmem:[%s171_s1 + $0x18] sm:$0xff]   ;;  %122 = vmatprep.mubr.msk.bf16.mxu0 %vm134_vm0, %v133_v0  ;;  %v129_v2 = vld [vmem:[%s171_s1 + $0x10] sm:$0xff]   ;;  %v130_v3 = vld [vmem:[%s171_s1 + $0x8] sm:$0xff]  }
   0x2   :  { %115 = vmatpush3.bf16.msra.mxu0 %v128_v1  ;;  %v131_v4 = vld [vmem:[%s171_s1] sm:$0xff]  }
   0x3   :  { %116 = vmatprep.subr.bf16.mxu0 %v133_v0  ;;  %v132_v5 = vld [vmem:[%s172_s0] sm:$0xff]  }
   0x6   :  { %117 = vmatpush3.bf16.msra.mxu0 %v129_v2 }
   0x7   :  { %118 = vmatprep.subr.bf16.mxu0 %v133_v0 }
   0xa   :  { %119 = vmatpush3.bf16.msra.mxu0 %v130_v3 }
   0xb   :  { %120 = vmatprep.subr.bf16.mxu0 %v133_v0 }
   0xe   :  { %121 = vmatpush3.bf16.msra.mxu0 %v131_v4 }
  0x11   :  { %123 = vmatmul.mubr.msk.bf16.vlgmr.msra.gmra.mxu0 %vm51_vm1, %v132_v5 }
  0xd1   :  { %v89_v6 = vpop.f32.mrf.mxu0 }
  0xd2   :  { %97 = vst.msk [vmem:[%s173_s2] sm:$0xff] %vm96_vm2, %v89_v6 }
  0xd3   :  { %v124_v7 = vpop.f32.mrf.mxu0 }
  0xd5   :  { %v92_v8 = vpop.f32.mrf.mxu0 }
  0xd6   :  { %98 = vst.msk [vmem:[%s173_s2 + $0x8] sm:$0xff] %vm96_vm2, %v92_v8 }
  0xd7   :  { %v125_v9 = vpop.f32.mrf.mxu0 }

// kernel: tacotron2_forward.22
= control target key start
LH: loop header
LB: loop body
LE: loop exit
PB: predicated region body
PF: predicated region fallthrough
CT: control target
= control target key end

     0   :  { %v193_v0 = vmov 0.0   ;;  %vm194_vm0 = vmmov 0   ;;  %vm135_vm1 = vcmask 138240   ;;  %vm137_vm2 = vcmask 134144   ;;  %s251_s1 = inlined_call_operand.vmem [shape: bf16[128,17], index: 1, kind: input, shape index: {}]   ;;  %s252_s0 = inlined_call_operand.vmem [shape: bf16[12,128], index: 0, kind: input, shape index: {}]   ;;  %s253_s2 = inlined_call_operand.vmem [shape: f32[1,17], index: 2, kind: input, shape index: {}]   ;;  %s254_s3 = inlined_call_operand.vmem [shape: f32[12,17], index: 3, kind: output, shape index: {}]  }
   0x1   :  { %162 = vmatprep.subr.bf16.mxu0 %v193_v0  ;;  %v184_v1 = vld [vmem:[%s251_s1 + $0x38] sm:$0xff]   ;;  %178 = vmatprep.mubr.msk.bf16.mxu0 %vm194_vm0, %v193_v0  ;;  %v185_v2 = vld [vmem:[%s251_s1 + $0x30] sm:$0xff]   ;;  %v186_v3 = vld [vmem:[%s251_s1 + $0x28] sm:$0xff]  }
   0x2   :  { %163 = vmatpush3.bf16.msra.mxu0 %v184_v1  ;;  %v187_v4 = vld [vmem:[%s251_s1 + $0x20] sm:$0xff]   ;;  %v188_v5 = vld [vmem:[%s251_s1 + $0x18] sm:$0xff]   ;;  %v189_v6 = vld [vmem:[%s251_s1 + $0x10] sm:$0xff]  }
   0x3   :  { %164 = vmatprep.subr.bf16.mxu0 %v193_v0  ;;  %v190_v7 = vld [vmem:[%s251_s1 + $0x8] sm:$0xff]   ;;  %v191_v8 = vld [vmem:[%s251_s1] sm:$0xff]  }
   0x4   :  { %v192_v9 = vld [vmem:[%s252_s0] sm:$0x3f]  }
   0x5   :  { %v143_v10 = vld [vmem:[%s253_s2] ss:$0 sm:$0xff] }
   0x6   :  { %165 = vmatpush3.bf16.msra.mxu0 %v185_v2 }
   0x7   :  { %166 = vmatprep.subr.bf16.mxu0 %v193_v0 }
   0xa   :  { %167 = vmatpush3.bf16.msra.mxu0 %v186_v3 }
   0xb   :  { %168 = vmatprep.subr.bf16.mxu0 %v193_v0 }
   0xe   :  { %169 = vmatpush3.bf16.msra.mxu0 %v187_v4 }
   0xf   :  { %170 = vmatprep.subr.bf16.mxu0 %v193_v0 }
  0x12   :  { %171 = vmatpush3.bf16.msra.mxu0 %v188_v5 }
  0x13   :  { %172 = vmatprep.subr.bf16.mxu0 %v193_v0 }
  0x16   :  { %173 = vmatpush3.bf16.msra.mxu0 %v189_v6 }
  0x17   :  { %174 = vmatprep.subr.bf16.mxu0 %v193_v0 }
  0x1a   :  { %175 = vmatpush3.bf16.msra.mxu0 %v190_v7 }
  0x1b   :  { %176 = vmatprep.subr.bf16.mxu0 %v193_v0 }
  0x1e   :  { %177 = vmatpush3.bf16.msra.mxu0 %v191_v8 }
  0x21   :  { %179 = vmatmul.mubr.bf16.vlgmr.msra.gmra.mxu0 %v192_v9 }
  0xe1   :  { %v128_v11 = vpop.f32.mrf.mxu0 }
  0xe2   :  { %v129_v12 = vadd.f32 %v143_v10, %v128_v11 }
  0xe3   :  { %v180_v13 = vpop.f32.mrf.mxu0 }
  0xe4   :  { %136 = vst.msk [vmem:[%s254_s3] sm:$0xff] %vm135_vm1, %v129_v12 }
  0xe5   :  { %v131_v14 = vpop.f32.mrf.mxu0 }
  0xe6   :  { %v132_v15 = vadd.f32 %v143_v10, %v131_v14 }
  0xe7   :  { %v181_v16 = vpop.f32.mrf.mxu0 }
  0xe8   :  { %138 = vst.msk [vmem:[%s254_s3 + $0x8] sm:$0xf] %vm137_vm2, %v132_v15 }

// kernel: tacotron2_forward.23
= control target key start
LH: loop header
LB: loop body
LE: loop exit
PB: predicated region body
PF: predicated region fallthrough
CT: control target
= control target key end

     0   :  { %v191_v0 = vmov 0.0   ;;  %vm192_vm0 = vmmov 0   ;;  %vm65_vm1 = vcmask 654336   ;;  %vm138_vm2 = vcmask 257024   ;;  %s248_s1 = inlined_call_operand.vmem [shape: bf16[80,32], index: 1, kind: input, shape index: {}]   ;;  %s249_s0 = inlined_call_operand.vmem [shape: bf16[12,80], index: 0, kind: input, shape index: {}]   ;;  %s250_s2 = inlined_call_operand.vmem [shape: f32[1,32], index: 2, kind: input, shape index: {}]   ;;  %s251_s3 = inlined_call_operand.vmem [shape: f32[1,32], index: 3, kind: input, shape index: {}]   ;;  %s252_s4 = inlined_call_operand.vmem [shape: bf16[12,32], index: 4, kind: output, shape index: {}]  }
   0x1   :  { %165 = vmatprep.subr.bf16.mxu0 %v191_v0  ;;  %v181_v1 = vld [vmem:[%s248_s1 + $0x20] sm:$0xff]   ;;  %175 = vmatprep.mubr.msk.bf16.mxu0 %vm192_vm0, %v191_v0  ;;  %v182_v2 = vld [vmem:[%s248_s1 + $0x18] sm:$0xff]   ;;  %v183_v3 = vld [vmem:[%s248_s1 + $0x10] sm:$0xff]   ;;  %vm140_vm3 = vcmask 254976  }
   0x2   :  { %166 = vmatpush3.bf16.msra.mxu0 %v181_v1  ;;  %v184_v4 = vld [vmem:[%s248_s1 + $0x8] sm:$0xff]   ;;  %v185_v5 = vld [vmem:[%s248_s1] sm:$0xff]  }
   0x3   :  { %167 = vmatprep.subr.bf16.mxu0 %v191_v0  ;;  %v186_v6 = vld [vmem:[%s249_s0] sm:$0x3f]  }
   0x4   :  { %v153_v7 = vld [vmem:[%s250_s2] ss:$0 sm:$0xff] }
   0x5   :  { %v154_v9 = vld [vmem:[%s251_s3] ss:$0 sm:$0xff] }
   0x6   :  { %168 = vmatpush3.bf16.msra.mxu0 %v182_v2 }
   0x7   :  { %169 = vmatprep.subr.bf16.mxu0 %v191_v0 }
   0xa   :  { %170 = vmatpush3.bf16.msra.mxu0 %v183_v3 }
   0xb   :  { %171 = vmatprep.subr.bf16.mxu0 %v191_v0 }
   0xe   :  { %172 = vmatpush3.bf16.msra.mxu0 %v184_v4 }
   0xf   :  { %173 = vmatprep.subr.bf16.mxu0 %v191_v0 }
  0x12   :  { %174 = vmatpush3.bf16.msra.mxu0 %v185_v5 }
  0x15   :  { %176 = vmatmul.mubr.msk.bf16.vlgmr.msra.gmra.mxu0 %vm65_vm1, %v186_v6 }
  0xd5   :  { %v103_v8 = vpop.f32.mrf.mxu0 }
  0xd6   :  { %v117_v10 = vmul.f32 %v153_v7, %v103_v8 }
  0xd7   :  { %v177_v11 = vpop.f32.mrf.mxu0 }
  0xd8   :  { %v126_v12 = vadd.f32 %v154_v9, %v117_v10 }
  0xd9   :  { %v106_v13 = vpop.f32.mrf.mxu0 }
  0xda   :  { %187 = vtanh.f32 %v126_v12  ;;  %v118_v14 = vmul.f32 %v153_v7, %v106_v13 }
  0xdb   :  { %v178_v15 = vpop.f32.mrf.mxu0 }
  0xdc   :  { %v127_v16 = vadd.f32 %v154_v9, %v118_v14 }
  0xde   :  { %189 = vtanh.f32 %v127_v16 }
  0xe7   :  { %v188_v17 = vpop.eup %187 }
  0xe8   :  { %v157_v18 = vpack.c.bf16 %v188_v17, %v188_v17 }
  0xea   :  { %139 = vst.msk [vmem:[%s252_s4] sm:$0xf] %vm138_vm2, %v157_v18 }
  0xeb   :  { %v190_v19 = vpop.eup %189 }
  0xec   :  { %v158_v20 = vpack.c.bf16 %v190_v19, %v190_v19 }
  0xee   :  { %141 = vst.msk [vmem:[%s252_s4 + $0x4] sm:$0x3] %vm140_vm3, %v158_v20 }

// kernel: tacotron2_forward.21
= control target key start
LH: loop header
LB: loop body
LE: loop exit
PB: predicated region body
PF: predicated region fallthrough
CT: control target
= control target key end

     0   :  { %20 = vsyncpa [#allocation6], 0  ;;  %vm52_vm0 = vcmask 517120   ;;  %vm59_vm1 = vcmask 107520   ;;  %v1319_v7 = vmov 0.0   ;;  %v1903_v17 = vlaneseq  ;;  %s1655_s25 = smov 0   ;;  %s1888_s0 = inlined_call_operand.vmem [shape: f32[6,2,256], index: 0, kind: input, shape index: {}]   ;;  %s1889_s1 = inlined_call_operand.vmem [shape: bf16[2,8,64], index: 1, kind: input, shape index: {}]   ;;  %s1890_s2 = inlined_call_operand.vmem [shape: f32[2,8,32], index: 2, kind: input, shape index: {}]   ;;  %s1891_s3 = inlined_call_operand.vmem [shape: f32[2,8], index: 3, kind: input, shape index: {}]   ;;  %s1892_s4 = inlined_call_operand.vmem [shape: bf16[64,32], index: 4, kind: input, shape index: {}]   ;;  %s1893_s5 = inlined_call_operand.vmem [shape: f32[1,32], index: 5, kind: input, shape index: {}]   ;;  %s1894_s6 = inlined_call_operand.vmem [shape: bf16[7,32], index: 6, kind: input, shape index: {}]   ;;  %s1895_s7 = inlined_call_operand.vmem [shape: bf16[128,256], index: 7, kind: input, shape index: {}]   ;;  %s1896_s8 = inlined_call_operand.vmem [shape: bf16[128,256], index: 8, kind: input, shape index: {}]   ;;  %s1897_s9 = inlined_call_operand.vmem [shape: f32[1,256], index: 9, kind: input, shape index: {}]   ;;  %s1898_s10 = inlined_call_operand.vmem [shape: f32[2,2,64], index: 10, kind: input, shape index: {}]   ;;  %s1899_s11 = inlined_call_operand.vmem [shape: f32[2,2,64], index: 11, kind: input, shape index: {}]   ;;  %s1900_s12 = inlined_call_operand.vmem [shape: bf16[6,2,64], index: 12, kind: output, shape index: {0}]   ;;  %s1901_s13 = inlined_call_operand.vmem [shape: bf16[6,2,64], index: 13, kind: output, shape index: {1}]   ;;  %s1902_s14 = inlined_call_operand.hbm [shape: f32[6,2,8], index: 14, kind: output, shape index: {2}]  }
   0x1   :  { %v50_v0 = vld [vmem:[%s1898_s10] sm:$0x3]  ;;  %v51_v1 = vld [vmem:[%s1898_s10 + $0x2] sm:$0x3]  ;;  %v1430_v5 = vld [vmem:[%s1892_s4 + $0x4] sm:$0xf] }
   0x2   :  { %53 = vst.msk [vmem:[#allocation2] sm:$0x3] %vm52_vm0, %v50_v0  ;;  %v55_v2 = vld [vmem:[%s1899_s11] sm:$0x3]  ;;  %v56_v3 = vld [vmem:[%s1899_s11 + $0x2] sm:$0x3] }
   0x3   :  { %54 = vst.msk [vmem:[#allocation2 + $0x2] sm:$0x3] %vm52_vm0, %v51_v1  ;;  %57 = vst.msk [vmem:[#allocation3] sm:$0x3] %vm52_vm0, %v55_v2  ;;  %v1425_v4 = vld [vmem:[%s1892_s4] sm:$0xf] }
   0x4   :  { %58 = vst.msk [vmem:[#allocation3 + $0x2] sm:$0x3] %vm52_vm0, %v56_v3  ;;  %1907 = vst [vmem:[#allocation8_spill] sm:$0xff] %v1425_v4  ;;  %v1435_v6 = vld [vmem:[%s1895_s7] sm:$0xff]  ;;  %v1440_v8 = vld [vmem:[%s1892_s4 + $0x8] sm:$0xf] }
   0x5   :  { %1908 = vst [vmem:[#allocation9_spill] sm:$0xff] %v1430_v5  ;;  %60 = vst.msk [vmem:[#allocation4] sm:$0x3] %vm59_vm1, %v1319_v7  ;;  %v1445_v9 = vld [vmem:[%s1892_s4 + $0xc] sm:$0xf]  ;;  %v1485_v18 = vld [vmem:[%s1895_s7 + $0x10] sm:$0xff] }
   0x6   :  { %1909 = vst [vmem:[#allocation10_spill] sm:$0xff] %v1440_v8  ;;  %1910 = vst [vmem:[#allocation11_spill] sm:$0xff] %v1445_v9  ;;  %v1450_v10 = vld [vmem:[%s1892_s4 + $0x10] sm:$0xf]  ;;  %v1455_v11 = vld [vmem:[%s1892_s4 + $0x14] sm:$0xf] }
   0x7   :  { %1911 = vst [vmem:[#allocation12_spill] sm:$0xff] %v1450_v10  ;;  %1912 = vst [vmem:[#allocation13_spill] sm:$0xff] %v1455_v11  ;;  %v1460_v12 = vld [vmem:[%s1892_s4 + $0x18] sm:$0xf]  ;;  %v1465_v13 = vld [vmem:[%s1892_s4 + $0x1c] sm:$0xf] }
   0x8   :  { %1913 = vst [vmem:[#allocation14_spill] sm:$0xff] %v1460_v12  ;;  %1914 = vst [vmem:[#allocation15_spill] sm:$0xff] %v1465_v13  ;;  %v1470_v14 = vld [vmem:[%s1893_s5] ss:$0 sm:$0xff]  ;;  %v1480_v16 = vld [vmem:[%s1895_s7 + $0x8] sm:$0xff]  ;;  %v1543_v30 = vshrl.u32 %v1903_v17, 7 }
   0x9   :  { %v1475_v15 = vld [vmem:[%s1894_s6] sm:$0xf]  ;;  %v1490_v19 = vld [vmem:[%s1895_s7 + $0x18] sm:$0xff]  ;;  %v1500_v21 = vld [vmem:[%s1895_s7 + $0x28] sm:$0xff] }
   0xa   :  { %1915 = vst [vmem:[#allocation16_spill] sm:$0xff] %v1475_v15  ;;  %v1495_v20 = vld [vmem:[%s1895_s7 + $0x20] sm:$0xff]  ;;  %v1505_v22 = vld [vmem:[%s1895_s7 + $0x30] sm:$0xff]  ;;  %v1510_v23 = vld [vmem:[%s1895_s7 + $0x38] sm:$0xff]  ;;  %v1606_v43 = vsub.s32 0, %v1543_v30  ;;  %v1609_v44 = vsub.s32 1, %v1543_v30 }
   0xb   :  { %v1515_v24 = vld [vmem:[%s1895_s7 + $0x40] sm:$0xff]  ;;  %v1520_v25 = vld [vmem:[%s1895_s7 + $0x48] sm:$0xff]  ;;  %v1525_v26 = vld [vmem:[%s1895_s7 + $0x50] sm:$0xff] }
   0xc   :  { %v1530_v27 = vld [vmem:[%s1895_s7 + $0x58] sm:$0xff]  ;;  %v1535_v28 = vld [vmem:[%s1895_s7 + $0x60] sm:$0xff]  ;;  %v1540_v29 = vld [vmem:[%s1895_s7 + $0x68] sm:$0xff] }
   0xd   :  { %v1548_v31 = vld [vmem:[%s1895_s7 + $0x70] sm:$0xff]  ;;  %v1553_v32 = vld [vmem:[%s1895_s7 + $0x78] sm:$0xff]  ;;  %v1558_v33 = vld [vmem:[%s1896_s8] sm:$0xff] }
   0xe   :  { %v1563_v34 = vld [vmem:[%s1896_s8 + $0x8] sm:$0xff]  ;;  %v1568_v35 = vld [vmem:[%s1896_s8 + $0x10] sm:$0xff]  ;;  %v1573_v36 = vld [vmem:[%s1896_s8 + $0x18] sm:$0xff] }
   0xf   :  { %v1578_v37 = vld [vmem:[%s1896_s8 + $0x20] sm:$0xff]  ;;  %v1583_v38 = vld [vmem:[%s1896_s8 + $0x28] sm:$0xff]  ;;  %v1588_v39 = vld [vmem:[%s1896_s8 + $0x30] sm:$0xff] }
  0x10   :  { %v1593_v40 = vld [vmem:[%s1896_s8 + $0x38] sm:$0xff]  ;;  %v1598_v41 = vld [vmem:[%s1896_s8 + $0x40] sm:$0xff]  ;;  %v1603_v42 = vld [vmem:[%s1896_s8 + $0x48] sm:$0xff] }
  0x11   :  { %v1614_v45 = vld [vmem:[%s1896_s8 + $0x50] sm:$0xff]  ;;  %v1619_v46 = vld [vmem:[%s1896_s8 + $0x58] sm:$0xff]  ;;  %v1624_v47 = vld [vmem:[%s1896_s8 + $0x60] sm:$0xff] }
  0x12   :  { %v1629_v48 = vld [vmem:[%s1896_s8 + $0x68] sm:$0xff]  ;;  %v1634_v49 = vld [vmem:[%s1896_s8 + $0x70] sm:$0xff]  ;;  %v1639_v50 = vld [vmem:[%s1896_s8 + $0x78] sm:$0xff] }
  0x13   :  { %v1644_v51 = vld [vmem:[%s1897_s9] sm:$0x3] }
  0x14   :  { %v1649_v52 = vld [vmem:[%s1891_s3] sm:$0x3] }
  0x15 LB: > { %v1660_v55 = vld [vmem:[#allocation4] sm:$0x3]  ;;  %v1917_v13 = vld [vmem:[#allocation15_spill] sm:$0xff]  ;;  %v1904_v58 = vmov 0.0   ;;  %v1919_v11 = vld [vmem:[#allocation13_spill] sm:$0xff]  ;;  %vm1321_vm2 = vmmov 0   ;;  %s1106_s30 = scalar_lea.vmem %s1901_s13, %s1317_s25  ;;  %s1023_s22 = scalar_lea.vmem %s1900_s12, %s1317_s25  ;;  %s1317_s25 = sphi %s1655_s25, %s121_s25  }
  0x16   : > { %1916 = vst [vmem:[#allocation17_spill] sm:$0xff] %v1660_v55  ;;  %v1918_v12 = vld [vmem:[#allocation14_spill] sm:$0xff]  ;;  %v197_v57 = vrot.slane %v1660_v55, %v1606_v43  ;;  %1203 = vmatprep.subr.bf16.mxu0 %v1904_v58  ;;  %1215 = vmatprep.subr.bf16.mxu1 %v1904_v58  ;;  %v1920_v10 = vld [vmem:[#allocation12_spill] sm:$0xff]  ;;  %v204_v60 = vrot.slane %v1660_v55, %v1609_v44  ;;  %v1921_v9 = vld [vmem:[#allocation11_spill] sm:$0xff]  ;;  %vm279_vm3 = vcmask 1042432   ;;  %vm280_vm4 = vcmask 1043456  }
  0x17   : > { %v1146_v56 = vcombine.low %v1918_v12, %v1917_v13  ;;  %v1145_v59 = vcombine.low %v1920_v10, %v1919_v11  ;;  %1211 = vmatprep.mubr.msk.bf16.mxu0 %vm1321_vm2, %v1904_v58  ;;  %1217 = vmatprep.mubr.msk.bf16.mxu1 %vm1321_vm2, %v1904_v58  ;;  %v1922_v8 = vld [vmem:[#allocation10_spill] sm:$0xff]  ;;  %v1923_v5 = vld [vmem:[#allocation9_spill] sm:$0xff]  ;;  %v1924_v4 = vld [vmem:[#allocation8_spill] sm:$0xff]  ;;  %v1322_v0 = vmov 65535   ;;  %vm149_vm5 = vcmask 523264   ;;  %s1325_s27 = smov 64  }
  0x18   : > { %210 = vbcast.lane.b32.xlu1 %v197_v57, 257  ;;  %199 = vbcast.lane.b32.xlu0 %v197_v57, 256  ;;  %v1144_v61 = vcombine.low %v1922_v8, %v1921_v9  ;;  %v1143_v62 = vcombine.low %v1924_v4, %v1923_v5  ;;  %v123_v63 = vld [vmem:[#allocation2 + $0x2] sm:$0x3]  ;;  %v281_v1 = vsel %vm279_vm3, 4294967295, %v1322_v0  ;;  %v1925_v15 = vld [vmem:[#allocation16_spill] sm:$0xff] }
  0x19   : > { %1204 = vmatpush3.bf16.msra.mxu0 %v1146_v56  ;;  %v282_v2 = vsel %vm280_vm4, %v281_v1, 0  ;;  %v124_v7 = vpack.c.bf16 %v123_v63, %v123_v63  ;;  %vm256_vm6 = vcmask 7168   ;;  %vm259_vm7 = vcmask 15360   ;;  %s1191_s15 = sshll.u32 %s1317_s25, 2  ;;  %s1152_s19 = sshll.u32 %s1317_s25, 1 }
  0x1a   : > { %1205 = vmatprep.subr.bf16.mxu0 %v1904_v58  ;;  %v284_v3 = vand.u32 %v282_v2, %v1925_v15  ;;  %vm262_vm8 = vcmask 23552   ;;  %vm265_vm9 = vcmask 31744   ;;  %vm268_vm10 = vcmask 39936   ;;  %s644_s18 = scalar_lea.vmem %s1888_s0, %s1191_s15  ;;  %s615_s20 = scalar_lea.vmem [#allocation5], %s1152_s19 }
  0x1b   : > { %vm271_vm11 = vcmask 48128   ;;  %vm275_vm12 = vcmask 56320   ;;  %vm376_vm13 = vcmask 261120   ;;  %vm420_vm14 = vcmask 1041409   ;;  %s121_s25 = sadd.s32 1, %s1317_s25  }
  0x1c   : > { %214 = vbcast.lane.b32.xlu1 %v204_v60, 257  ;;  %206 = vbcast.lane.b32.xlu0 %v204_v60, 256  ;;  %vm423_vm15 = vcmask 58368   ;;  %vm493_vm1 = vcmask 64512   ;;  %vm629_vm3 = vcmask 82968   ;;  %p118_p0 = scmp.ge.s32.totalorder %s121_s25, 6  }
  0x1d   : > { %1206 = vmatpush3.bf16.msra.mxu0 %v1145_v59  ;;  %1216 = vmatpush3.bf16.msra.mxu1 %v284_v3  ;;  %s1328_s10 = smov (%p118_p0), [#allocation5]  }
  0x1e   : > { %1207 = vmatprep.subr.bf16.mxu0 %v1904_v58  ;;  %1221 = vmatprep.subr.bf16.mxu1 %v1904_v58  ;;  %s1117_s23 = sshll.u32 (%p118_p0), %s1328_s10, 4  ;;  %s1118_s23 = int_to_ptr.vmem [resolvable:$true] %s1117_s23 }
  0x1f   :  { %s1289_s24 = scalar_lea.vmem (%p118_p0), %s1118_s23, 192  ;;  %p1294_p2 = scmp.lt.s32.totalorder (%p118_p0), %s1118_s23, %s1118_s23 }
  0x20   : > { %222 = vbcast.lane.b32.xlu1 %v204_v60, 258  ;;  %218 = vbcast.lane.b32.xlu0 %v197_v57, 258  ;;  %p1290_p1 = scmp.ne.s32.totalorder (%p118_p0), %s1118_s23, %s1289_s24  ;;  %p1295_p3 = scmp.lt.s32.totalorder (%p118_p0), %s1289_s24, %s1289_s24 }
  0x21   : > { %1208 = vmatpush3.bf16.msra.mxu0 %v1144_v61 }
  0x22   : > { %1209 = vmatprep.subr.bf16.mxu0 %v1904_v58  ;;  %p1296_p4 = por (%p118_p0), %p1295_p3, %p1294_p2 }
  0x24   : > { %230 = vbcast.lane.b32.xlu1 %v204_v60, 259  ;;  %226 = vbcast.lane.b32.xlu0 %v197_v57, 259  ;;  %p1297_p5 = pnand (%p118_p0), %p1296_p4, %p1290_p1 }
  0x25   : > { %1210 = vmatpush3.bf16.msra.mxu0 %v1143_v62 }
  0x28   : > { %1212 = vmatmul.mubr.msk.bf16.vlgmr.msra.gmra.mxu0 %vm149_vm5, %v124_v7  ;;  %238 = vbcast.lane.b32.xlu1 %v204_v60, 260 }
  0x29   : > { %234 = vbcast.lane.b32.xlu0 %v197_v57, 260 }
  0x2c   : > { %246 = vbcast.lane.b32.xlu1 %v204_v60, 261 }
  0x2d   : > { %242 = vbcast.lane.b32.xlu0 %v197_v57, 261 }
  0x30   : > { %254 = vbcast.lane.b32.xlu1 %v204_v60, 262 }
  0x31   : > { %250 = vbcast.lane.b32.xlu0 %v197_v57, 262 }
  0x8a   : > { %v211_v56 = vpop.permute.xlu1 %210  ;;  %v200_v59 = vpop.permute.xlu0 %199 }
  0x8b   : > { %v257_v7 = vsel %vm256_vm6, %v200_v59, %v211_v56  ;;  %v1926_v59 = vmov 0.0  }
  0x8e   : > { %v215_v61 = vpop.permute.xlu1 %214  ;;  %v207_v0 = vpop.permute.xlu0 %206 }
  0x8f   : > { %v258_v53 = vsel %vm256_vm6, %v207_v0, %v215_v61 }
  0x92   : > { %v223_v63 = vpop.permute.xlu1 %222  ;;  %v219_v62 = vpop.permute.xlu0 %218 }
  0x93   : > { %v261_v60 = vsel %vm259_vm7, %v258_v53, %v223_v63  ;;  %v260_v57 = vsel %vm259_vm7, %v257_v7, %v219_v62  ;;  %v1323_v62 = vmov 1966171168  }
  0x96   : > { %v231_v1 = vpop.permute.xlu1 %230  ;;  %v227_v2 = vpop.permute.xlu0 %226 }
  0x97   : > { %v264_v4 = vsel %vm262_vm8, %v261_v60, %v231_v1  ;;  %v263_v5 = vsel %vm262_vm8, %v260_v57, %v227_v2  ;;  %v329_v1 = vunpack.c.l.s4 %v1323_v62 }
  0x9a   : > { %v239_v3 = vpop.permute.xlu1 %238 }
  0x9b   : > { %v235_v54 = vpop.permute.xlu0 %234  ;;  %v267_v8 = vsel %vm265_vm9, %v264_v4, %v239_v3  ;;  %v330_v4 = vunpack.c.0.s8 %v329_v1  ;;  %v1324_v1 = vmov 0  }
  0x9c   : > { %v266_v9 = vsel %vm265_vm9, %v263_v5, %v235_v54  ;;  %v351_v54 = vld [vmem:[%s1890_s2 + $0x8] sm:$0xff]  ;;  %1253 = vset.pattern.permute.xlu0 %v1324_v1  ;;  %1254 = vset.pattern.permute.xlu1 %v1324_v1 }
  0x9d   : > { %v1690_v5 = vsub.s32 %v330_v4, %v1543_v30  ;;  %758 = vmatprep.mubr.bf16.mxu0 %v1324_v1  ;;  %v394_v4 = vrot.slane %v1649_v52, %v1609_v44 }
  0x9e   : > { %v247_v17 = vpop.permute.xlu1 %246 }
  0x9f   : > { %v243_v58 = vpop.permute.xlu0 %242  ;;  %v270_v10 = vsel %vm268_vm10, %v267_v8, %v247_v17 }
  0xa0   : > { %v269_v11 = vsel %vm268_vm10, %v266_v9, %v243_v58 }
  0xa2   : > { %v255_v12 = vpop.permute.xlu1 %254 }
  0xa3   : > { %v251_v13 = vpop.permute.xlu0 %250  ;;  %v273_v15 = vsel %vm271_vm11, %v270_v10, %v255_v12 }
  0xa4   : > { %v272_v55 = vsel %vm271_vm11, %v269_v11, %v251_v13  ;;  %v350_v13 = vld [vmem:[%s1890_s2] sm:$0xff] }
  0xa5   : > { %v274_v56 = vpack.c.bf16 %v273_v15, %v272_v55 }
  0xa7   : > { %1218 = vmatmul.mubr.msk.bf16.vlgmr.msra.gmra.mxu1 %vm275_vm12, %v274_v56 }
  0xa8   : > { %1223 = vmatprep.mubr.msk.bf16.mxu1 %vm1321_vm2, %v1926_v59 }
  0xe8   : > { %v187_v53 = vpop.f32.mrf.mxu0 }
  0xe9   : > { %v334_v8 = vrot.slane %v187_v53, %v1690_v5 }
  0xea   : > { %v1213_v61 = vpop.f32.mrf.mxu0 }
  0xeb   : > { %v335_v9 = vcombine.high %v334_v8, %v334_v8  ;;  %v342_v10 = vrot.slane %v334_v8, %v1690_v5  ;;  %v387_v8 = vrot.slane %v1649_v52, %v1606_v43 }
  0xec   : > { %v190_v0 = vpop.f32.mrf.mxu0 }
  0xed   : > { %v349_v11 = vrot.slane %v335_v9, %v1690_v5  ;;  %v355_v12 = vrot.slane %v342_v10, %v1606_v43 }
  0xee   : > { %v1214_v63 = vpop.f32.mrf.mxu0 }
  0xef   : > { %v362_v15 = vadd.f32 %v355_v12, %v350_v13  ;;  %v359_v17 = vrot.slane %v349_v11, %v1606_v43 }
  0xf1   : > { %v363_v2 = vadd.f32 %v359_v17, %v351_v54  ;;  %v1927_v17 = vlaneseq }
  0xf3   : > { %v1713_v54 = vand.u32 127, %v1927_v17 }
 0x167   : > { %v320_v55 = vpop.f32.mrf.mxu1 }
 0x168   : > { %v364_v58 = vadd.f32 %v362_v15, %v320_v55  ;;  %v1717_v55 = vsub.s32 %v1713_v54, %v1543_v30 }
 0x169   : > { %v1219_v3 = vpop.f32.mrf.mxu1 }
 0x16a   : > { %1255 = vtanh.f32 %v364_v58 }
 0x16b   : > { %v323_v7 = vpop.f32.mrf.mxu1 }
 0x16c   : > { %v365_v60 = vadd.f32 %v363_v2, %v323_v7 }
 0x16d   : > { %v1220_v57 = vpop.f32.mrf.mxu1 }
 0x16e   : > { %1257 = vtanh.f32 %v365_v60 }
 0x177   : > { %v1256_v56 = vpop.eup %1255 }
 0x178   : > { %v374_v53 = vmul.f32 %v1256_v56, %v1470_v14 }
 0x17a   : > { %v377_v61 = vsel %vm376_vm13, %v374_v53, 0.0 }
 0x17b   : > { %v1258_v0 = vpop.eup %1257  ;;  %378 = vadd.xlane.f32.xlu0 %v377_v61 }
 0x17c   : > { %v375_v63 = vmul.f32 %v1258_v0, %v1470_v14 }
 0x17e   : > { %v380_v62 = vsel %vm376_vm13, %v375_v63, 0.0 }
 0x17f   : > { %381 = vadd.xlane.f32.xlu1 %v380_v62 }
 0x190   : > { %396 = vbcast.lane.b32.xlu1 %v394_v4, 256 }
 0x191   : > { %389 = vbcast.lane.b32.xlu0 %v387_v8, 256 }
 0x204   : > { %v379_v9 = vpop.xlane.xlu0 %378 }
 0x208   : > { %v390_v10 = vpop.permute.xlu0 %389  ;;  %v382_v11 = vpop.xlane.xlu1 %381 }
 0x209   : > { %v400_v12 = vadd.f32 %v390_v10, %v379_v9 }
 0x20b   : > { %405 = vperm.xlu0 %1253, %v400_v12  }
 0x20c   : > { %v397_v13 = vpop.permute.xlu1 %396 }
 0x20d   : > { %v401_v15 = vadd.f32 %v397_v13, %v382_v11 }
 0x20f   : > { %408 = vperm.xlu1 %1254, %v401_v15  }
 0x286   : > { %v406_v58 = vpop.permute.xlu0 %405 }
 0x287   : > { %v415_v3 = vrot.slane %v406_v58, %v1717_v55 }
 0x28a   : > { %v409_v2 = vpop.permute.xlu1 %408 }
 0x28b   : > { %v419_v7 = vrot.slane %v409_v2, %v1717_v55 }
 0x28d   : > { %v421_v60 = vsel %vm420_vm14, %v419_v7, %v415_v3 }
 0x28e   : > { %v424_v57 = vsel %vm423_vm15, %v421_v60, -inf }
 0x28f   : > { %425 = vmax.xlane.f32.xlu1 %v424_v57 }
 0x318   : > { %v426_v56 = vpop.xlane.xlu1 %425 }
 0x319   : > { %v431_v53 = vrot.slane %v426_v56, %v1606_v43  ;;  %v435_v61 = vrot.slane %v426_v56, %v1609_v44 }
 0x31b   : > { %v438_v0 = vsub.f32 %v400_v12, %v431_v53  ;;  %v439_v63 = vsub.f32 %v401_v15, %v435_v61  ;;  %v481_v12 = vld [vmem:[%s1889_s1] sm:$0xf] }
 0x31c   : > { %v498_v15 = vsel %vm280_vm4, %v481_v12, 0  ;;  %v1161_v12 = vcombine.high %v1505_v22, %v1510_v23 }
 0x31d   : > { %v440_v62 = vmul.f32 1.442695, %v438_v0  ;;  %v442_v4 = vmul.f32 1.442695, %v439_v63  ;;  %1222 = vmatpush3.bf16.msra.mxu1 %v498_v15 }
 0x31e   : > { %1227 = vmatprep.subr.bf16.mxu1 %v1926_v59 }
 0x31f   : > { %1259 = vpow2.f32 %v440_v62 }
 0x320   : > { %1261 = vpow2.f32 %v442_v4  ;;  %v631_v4 = vld [vmem:[#allocation2] sm:$0x3] }
 0x32c   : > { %v1260_v8 = vpop.eup %1259 }
 0x32d   : > { %447 = vperm.xlu0 %1253, %v1260_v8   ;;  %v1262_v9 = vpop.eup %1261 }
 0x331   : > { %450 = vperm.xlu0 %1253, %v1262_v9  }
 0x3a8   : > { %v448_v10 = vpop.permute.xlu0 %447 }
 0x3a9   : > { %v455_v13 = vrot.slane %v448_v10, %v1717_v55  ;;  %v1169_v10 = vcombine.high %v1548_v31, %v1553_v32 }
 0x3ab   : > { %726 = vmatprep.subr.bf16.mxu0 %v1169_v10  ;;  %v1158_v10 = vcombine.low %v1495_v20, %v1500_v21 }
 0x3ac   : > { %v451_v11 = vpop.permute.xlu0 %450 }
 0x3ad   : > { %v459_v17 = vrot.slane %v451_v11, %v1717_v55  ;;  %v1166_v11 = vcombine.low %v1535_v28, %v1540_v29 }
 0x3af   : > { %v460_v58 = vsel %vm420_vm14, %v459_v17, %v455_v13  ;;  %v1165_v13 = vcombine.high %v1525_v26, %v1530_v27  ;;  %v1164_v17 = vcombine.low %v1525_v26, %v1530_v27 }
 0x3b0   : > { %v462_v2 = vsel %vm423_vm15, %v460_v58, 0.0  ;;  %v1163_v58 = vcombine.high %v1515_v24, %v1520_v25 }
 0x3b1   : > { %463 = vadd.xlane.f32.xlu0 %v462_v2  ;;  %v1162_v2 = vcombine.low %v1515_v24, %v1520_v25 }
 0x43a   : > { %v464_v3 = vpop.xlane.xlu0 %463 }
 0x43b   : > { %1263 = vrcp.f32 %v464_v3  ;;  %v482_v3 = vld [vmem:[%s1889_s1 + $0x4] sm:$0xf] }
 0x448   : > { %v1264_v7 = vpop.eup %1263 }
 0x449   : > { %v474_v60 = vrot.slane %v1264_v7, %v1609_v44  ;;  %v470_v57 = vrot.slane %v1264_v7, %v1606_v43 }
 0x44b   : > { %v1736_v56 = vmul.f32 %v1262_v9, %v474_v60  ;;  %v1738_v53 = vmul.f32 %v1260_v8, %v470_v57  ;;  %v1168_v9 = vcombine.low %v1548_v31, %v1553_v32  ;;  %v1167_v8 = vcombine.high %v1535_v28, %v1540_v29 }
 0x44c   : > { %v554_v57 = vsel %vm280_vm4, %v482_v3, 0 }
 0x44d   : > { %v480_v61 = vpack.c.bf16 %v1736_v56, %v1736_v56  ;;  %v479_v0 = vpack.c.bf16 %v1738_v53, %v1738_v53  ;;  %727 = vmatpush1.bf16.msra.mxu0 %v1168_v9  ;;  %v1156_v9 = vcombine.low %v1485_v18, %v1490_v19 }
 0x44e   : > { %728 = vmatprep.subr.bf16.mxu0 %v1167_v8  ;;  %v1154_v8 = vcombine.low %v1435_v6, %v1480_v16 }
 0x44f   : > { %v541_v63 = vunpack.c.l.b16 %v480_v61  ;;  %v484_v62 = vunpack.c.l.b16 %v479_v0 }
 0x451   : > { %543 = vperm.xlu0 %1253, %v541_v63   ;;  %486 = vperm.xlu1 %1254, %v484_v62   ;;  %v1160_v62 = vcombine.low %v1505_v22, %v1510_v23 }
 0x452   : > { %729 = vmatpush1.bf16.msra.mxu0 %v1166_v11  ;;  %v1172_v11 = vld.sshfl [vmem:[#allocation3] sm:$0x3 pattern:$0x76325410] }
 0x453   : > { %730 = vmatprep.subr.bf16.mxu0 %v1165_v13 }
 0x455   : > { %638 = vrot.lane.b32.xlu1 %v631_v4, %s1325_s27  ;;  %v1159_v4 = vcombine.high %v1495_v20, %v1500_v21 }
 0x456   : > { %731 = vmatpush1.bf16.msra.mxu0 %v1164_v17 }
 0x457   : > { %732 = vmatprep.subr.bf16.mxu0 %v1163_v58  ;;  %v1326_v58 = vmov 1935823168  }
 0x459   : > { %808 = vrot.lane.b32.xlu1 %v1172_v11, %s1325_s27 }
 0x45a   : > { %733 = vmatpush1.bf16.msra.mxu0 %v1162_v2  ;;  %v1059_v2 = vunpack.c.l.s4 %v1326_v58 }
 0x45b   : > { %734 = vmatprep.subr.bf16.mxu0 %v1161_v12 }
 0x45e   : > { %735 = vmatpush1.bf16.msra.mxu0 %v1160_v62 }
 0x45f   : > { %736 = vmatprep.subr.bf16.mxu0 %v1159_v4 }
 0x462   : > { %737 = vmatpush1.bf16.msra.mxu0 %v1158_v10 }
 0x4cc   : > { %v487_v15 = vpop.permute.xlu1 %486  ;;  %v544_v61 = vpop.permute.xlu0 %543 }
 0x4cd   : > { %v491_v7 = vrot.slane %v487_v15, %v1717_v55  ;;  %v548_v0 = vrot.slane %v544_v61, %v1717_v55 }
 0x4cf   : > { %v492_v60 = vpack.c.b16 %v491_v7, %v491_v7  ;;  %v549_v63 = vpack.c.b16 %v548_v0, %v548_v0  ;;  %v1060_v7 = vunpack.c.0.s8 %v1059_v2 }
 0x4d0   : > { %v639_v4 = vpop.permute.xlu1 %638 }
 0x4d1   : > { %1224 = vmatmul.mubr.msk.bf16.vlgmr.msra.gmra.mxu1 %vm493_vm1, %v492_v60  ;;  %v1063_v0 = vsub.s32 %v1060_v7, %v1543_v30 }
 0x4d2   : > { %1228 = vmatpush3.bf16.msra.mxu1 %v554_v57  ;;  %1229 = vmatprep.mubr.msk.bf16.mxu1 %vm1321_vm2, %v1926_v59  ;;  %v1157_v59 = vcombine.high %v1485_v18, %v1490_v19  ;;  %vm1024_vm2 = vcmask 516096  }
 0x4d4   : > { %738 = vmatprep.subr.bf16.mxu0 %v1157_v59 }
 0x4d5   : > { %739 = vmatpush1.bf16.msra.mxu0 %v1156_v9 }
 0x4d9   : > { %1230 = vmatmul.mubr.msk.bf16.vlgmr.msra.gmra.mxu1 %vm493_vm1, %v549_v63 }
 0x4da   : > { %957 = vmatprep.mubr.bf16.mxu1 %v1324_v1  ;;  %v1155_v1 = vcombine.high %v1435_v6, %v1480_v16 }
 0x4dc   : > { %740 = vmatprep.subr.bf16.mxu0 %v1155_v1 }
 0x4dd   : > { %741 = vmatpush1.bf16.msra.mxu0 %v1154_v8 }
 0x591   : > { %v534_v13 = vpop.f32.mrf.mxu1 }
 0x592   : > { %v1026_v17 = vpack.c.bf16 %v534_v13, %v534_v13 }
 0x593   : > { %v1225_v12 = vpop.f32.mrf.mxu1 }
 0x594   : > { %v1036_v3 = vrot.slane %v1026_v17, %v1690_v5 }
 0x595   : > { %v537_v15 = vpop.f32.mrf.mxu1 }
 0x596   : > { %v1043_v61 = vrot.slane %v1036_v3, %v1690_v5 }
 0x597   : > { %v1226_v60 = vpop.f32.mrf.mxu1 }
 0x598   : > { %v1064_v11 = vrot.slane %v1043_v61, %v1063_v0 }
 0x599   : > { %v590_v57 = vpop.f32.mrf.mxu1 }
 0x59a   : > { %v634_v63 = vrot.slane %v590_v57, 7  ;;  %v1027_v62 = vpack.c.bf16 %v590_v57, %v590_v57  ;;  %v1071_v15 = vrot.slane %v1064_v11, %v1063_v0 }
 0x59b   : > { %v1231_v10 = vpop.f32.mrf.mxu1 }
 0x59c   : > { %v1050_v59 = vrot.slane %v1027_v62, %v1690_v5  ;;  %v635_v9 = vsel %vm420_vm14, %v634_v63, %v534_v13  ;;  %v1086_v60 = vunpack.c.l.b16 %v1071_v15 }
 0x59d   : > { %v641_v1 = vsel %vm149_vm5, %v635_v9, %v639_v4  ;;  %v593_v8 = vpop.f32.mrf.mxu1  ;;  %v1327_v4 = vmov 1983009808  }
 0x59e   : > { %v1057_v17 = vrot.slane %v1050_v59, %v1690_v5  ;;  %v642_v58 = vpack.c.bf16 %v641_v1, %v641_v1  ;;  %v771_v10 = vunpack.c.l.s4 %v1327_v4  ;;  %v1187_v4 = vcombine.low %v1634_v49, %v1639_v50 }
 0x59f   : > { %v1232_v2 = vpop.f32.mrf.mxu1 }
 0x5a0   : > { %v1078_v12 = vrot.slane %v1057_v17, %v1063_v0  ;;  %759 = vmatmul.mubr.bf16.vlgmr.msra.gmra.mxu0 %v642_v58  ;;  %v645_v17 = vld [vmem:[%s644_s18] sm:$0xf] }
 0x5a2   : > { %v1085_v3 = vrot.slane %v1078_v12, %v1063_v0  ;;  %v772_v0 = vunpack.c.0.s8 %v771_v10  ;;  %v1186_v10 = vcombine.high %v1624_v47, %v1629_v48 }
 0x5a4   : > { %v1087_v7 = vunpack.c.l.b16 %v1085_v3  ;;  %v1804_v9 = vsub.s32 %v772_v0, %v1543_v30  ;;  %v1185_v0 = vcombine.low %v1624_v47, %v1629_v48 }
 0x5a6   : > { %v1088_v57 = vrot.slane %v1087_v7, 7 }
 0x5a8   : > { %v1089_v62 = vsel %vm420_vm14, %v1088_v57, %v1086_v60 }
 0x5a9   : > { %v1090_v13 = vpack.c.b16 %v1089_v62, %v1089_v62 }
 0x5ab   : > { %v1097_v63 = vrot.slane %v1090_v13, %v1690_v5 }
 0x5ad   : > { %v1104_v61 = vrot.slane %v1097_v63, %v1690_v5  ;;  %v838_v63 = vld [vmem:[#allocation2 + $0x2] sm:$0x3] }
 0x5af   : > { %1107 = vst.msk [vmem:[%s1106_s30] sm:$0x1] %vm1024_vm2, %v1104_v61  ;;  %v1188_v61 = vcombine.high %v1634_v49, %v1639_v50 }
 0x5b1   : > { %925 = vmatprep.subr.bf16.mxu1 %v1188_v61  ;;  %v1173_v61 = vcombine.low %v1558_v33, %v1563_v34 }
 0x5b2   : > { %926 = vmatpush1.bf16.msra.mxu1 %v1187_v4 }
 0x5b3   : > { %927 = vmatprep.subr.bf16.mxu1 %v1186_v10  ;;  %v967_v10 = vld [vmem:[#allocation3 + $0x2] sm:$0x3] }
 0x5b6   : > { %928 = vmatpush1.bf16.msra.mxu1 %v1185_v0 }
 0x660   : > { %v760_v59 = vpop.f32.mrf.mxu0 }
 0x662   : > { %v762_v1 = vpop.f32.mrf.mxu0 }
 0x663   : > { %v769_v8 = vcombine.low %v760_v59, %v762_v1  ;;  %v1184_v59 = vcombine.high %v1614_v45, %v1619_v46  ;;  %v1183_v1 = vcombine.low %v1614_v45, %v1619_v46 }
 0x664   : > { %v764_v11 = vpop.f32.mrf.mxu0 }
 0x665   : > { %v776_v58 = vrot.slane %v769_v8, %v1804_v9  ;;  %929 = vmatprep.subr.bf16.mxu1 %v1184_v59  ;;  %v1182_v8 = vcombine.high %v1598_v41, %v1603_v42  ;;  %v1181_v11 = vcombine.low %v1598_v41, %v1603_v42 }
 0x666   : > { %v765_v2 = vpop.f32.mrf.mxu0  ;;  %930 = vmatpush1.bf16.msra.mxu1 %v1183_v1 }
 0x667   : > { %v778_v12 = vadd.f32 %v776_v58, %v645_v17  ;;  %931 = vmatprep.subr.bf16.mxu1 %v1182_v8  ;;  %v1180_v17 = vcombine.high %v1588_v39, %v1593_v40  ;;  %v1179_v58 = vcombine.low %v1588_v39, %v1593_v40  ;;  %v1178_v2 = vcombine.high %v1578_v37, %v1583_v38 }
 0x669   : > { %790 = vrot.lane.b32.xlu0 %v778_v12, %s1325_s27  ;;  %v1170_v15 = vmul.f32 -1.442695, %v778_v12  ;;  %v787_v3 = vrot.slane %v778_v12, 2  ;;  %v1177_v12 = vcombine.low %v1578_v37, %v1583_v38 }
 0x66a   : > { %932 = vmatpush1.bf16.msra.mxu1 %v1181_v11 }
 0x66b   : > { %1265 = vpow2.f32 %v1170_v15  ;;  %933 = vmatprep.subr.bf16.mxu1 %v1180_v17  ;;  %v1176_v15 = vcombine.high %v1568_v35, %v1573_v36 }
 0x66c   : > { %1267 = vtanh.f32 %v787_v3  ;;  %v1175_v3 = vcombine.low %v1568_v35, %v1573_v36 }
 0x66d   : > { %840 = vrot.lane.b32.xlu0 %v838_v63, %s1325_s27  ;;  %v1174_v63 = vcombine.high %v1558_v33, %v1563_v34 }
 0x66e   : > { %934 = vmatpush1.bf16.msra.mxu1 %v1179_v58 }
 0x66f   : > { %935 = vmatprep.subr.bf16.mxu1 %v1178_v2 }
 0x672   : > { %936 = vmatpush1.bf16.msra.mxu1 %v1177_v12 }
 0x673   : > { %937 = vmatprep.subr.bf16.mxu1 %v1176_v15 }
 0x676   : > { %938 = vmatpush1.bf16.msra.mxu1 %v1175_v3 }
 0x677   : > { %939 = vmatprep.subr.bf16.mxu1 %v1174_v63 }
 0x678   : > { %v1266_v7 = vpop.eup %1265 }
 0x679   : > { %v783_v60 = vadd.f32 1.0, %v1266_v7  ;;  %v1268_v57 = vpop.eup %1267  ;;  %v809_v7 = vpop.permute.xlu1 %808 }
 0x67a   : > { %940 = vmatpush1.bf16.msra.mxu1 %v1173_v61 }
 0x67b   : > { %1269 = vrcp.f32 %v783_v60 }
 0x688   : > { %v1270_v62 = vpop.eup %1269 }
 0x689   : > { %v812_v13 = vmul.f32 %v1270_v62, %v1268_v57  ;;  %v811_v60 = vmul.f32 %v1270_v62, %v809_v7 }
 0x68b   : > { %814 = vrot.lane.b32.xlu1 %v812_v13, %s1325_s27 }
 0x6db   : > { %v791_v0 = vpop.permute.xlu0 %790 }
 0x6dc   : > { %v792_v59 = vrot.slane %v791_v0, 2 }
 0x6de   : > { %v1171_v1 = vmul.f32 -1.442695, %v792_v59 }
 0x6df   : > { %v841_v2 = vpop.permute.xlu0 %840 }
 0x6fd   : > { %v815_v57 = vpop.permute.xlu1 %814 }
 0x6fe   : > { %v817_v13 = vadd.f32 %v815_v57, %v811_v60  ;;  %v1928_v57 = vrot.slane %v1644_v51, %v1606_v43 }
 0x700   : > { %1271 = vtanh.f32 %v817_v13  ;;  %v833_v62 = vrot.slane %v817_v13, %v1804_v9 }
 0x701   : > { %1273 = vpow2.f32 %v1171_v1 }
 0x70d   : > { %v1272_v4 = vpop.eup %1271 }
 0x70e   : > { %820 = vrot.lane.b32.xlu1 %v1272_v4, %s1325_s27  ;;  %v1274_v8 = vpop.eup %1273 }
 0x70f   : > { %v797_v11 = vadd.f32 1.0, %v1274_v8 }
 0x711   : > { %1275 = vrcp.f32 %v797_v11 }
 0x712   : > { %982 = vrot.lane.b32.xlu1 %v967_v10, %s1325_s27 }
 0x716   : > { %599 = vperm.xlu1 %1254, %v1738_v53  }
 0x71a   : > { %834 = vrot.lane.b32.xlu1 %v833_v62, %s1325_s27  ;;  %v1929_v62 = vrot.slane %v1644_v51, %v1609_v44 }
 0x71e   : > { %v1276_v17 = vpop.eup %1275 }
 0x780   : > { %v821_v58 = vpop.permute.xlu1 %820 }
 0x781   : > { %v823_v12 = vmul.f32 %v1276_v17, %v821_v58 }
 0x783   : > { %825 = vst.msk [vmem:[#allocation2] sm:$0x3] %vm52_vm0, %v823_v12  ;;  %v843_v15 = vsel %vm149_vm5, %v823_v12, %v841_v2 }
 0x784   : > { %v844_v53 = vpack.c.bf16 %v843_v15, %v843_v15  ;;  %v983_v9 = vpop.permute.xlu1 %982 }
 0x786   : > { %958 = vmatmul.mubr.bf16.vlgmr.msra.gmra.mxu1 %v844_v53 }
 0x791   : > { %v600_v3 = vpop.permute.xlu1 %599 }
 0x795   : > { %v835_v7 = vpop.permute.xlu1 %834 }
 0x796   : > { %837 = vst.msk [vmem:[#allocation3] sm:$0x3] %vm52_vm0, %v835_v7 }
 0x846   : > { %v959_v60 = vpop.f32.mrf.mxu1 }
 0x847   : > { %v960_v13 = vadd.f32 %v959_v60, %v1928_v57  ;;  %v617_v60 = vadd.s32 4294967293, %v1713_v54  ;;  %v1930_v54 = vld [vmem:[#allocation17_spill] sm:$0xff] }
 0x848   : > { %v961_v63 = vpop.f32.mrf.mxu1 }
 0x849   : > { %v1189_v61 = vmul.f32 -1.442695, %v960_v13  ;;  %v962_v0 = vadd.f32 %v961_v63, %v1929_v62  ;;  %v620_v57 = vsub.s32 %v617_v60, %v1543_v30  ;;  %v607_v63 = vrot.slane %v600_v3, %v1717_v55 }
 0x84a   : > { %v963_v4 = vpop.f32.mrf.mxu1 }
 0x84b   : > { %1277 = vpow2.f32 %v1189_v61  ;;  %v1190_v58 = vmul.f32 -1.442695, %v962_v0 }
 0x84c   : > { %v964_v10 = vpop.f32.mrf.mxu1  ;;  %1279 = vtanh.f32 %v962_v0 }
 0x858   : > { %v1278_v59 = vpop.eup %1277 }
 0x859   : > { %v971_v1 = vadd.f32 1.0, %v1278_v59  ;;  %v1280_v8 = vpop.eup %1279 }
 0x85b   : > { %1281 = vrcp.f32 %v971_v1 }
 0x85c   : > { %1283 = vpow2.f32 %v1190_v58 }
 0x868   : > { %v1282_v11 = vpop.eup %1281 }
 0x869   : > { %v986_v17 = vmul.f32 %v1282_v11, %v1280_v8  ;;  %v1284_v2 = vpop.eup %1283  ;;  %v985_v15 = vmul.f32 %v1282_v11, %v983_v9 }
 0x86a   : > { %v978_v12 = vadd.f32 1.0, %v1284_v2 }
 0x86b   : > { %988 = vrot.lane.b32.xlu0 %v986_v17, %s1325_s27 }
 0x86c   : > { %1285 = vrcp.f32 %v978_v12 }
 0x86f   : > { %602 = vperm.xlu0 %1253, %v1736_v56   ;;  %v621_v56 = vrot.slane %v600_v3, %v620_v57 }
 0x879   : > { %v1286_v10 = vpop.eup %1285 }
 0x8dd   : > { %v989_v53 = vpop.permute.xlu0 %988 }
 0x8de   : > { %v991_v7 = vadd.f32 %v989_v53, %v985_v15 }
 0x8e0   : > { %1287 = vtanh.f32 %v991_v7  ;;  %1000 = vrot.lane.b32.xlu1 %v991_v7, %s1325_s27 }
 0x8ea   : > { %v603_v13 = vpop.permute.xlu0 %602 }
 0x8eb   : > { %v611_v61 = vrot.slane %v603_v13, %v1717_v55  ;;  %v625_v4 = vrot.slane %v603_v13, %v620_v57 }
 0x8ed   : > { %v1288_v9 = vpop.eup %1287  ;;  %v612_v62 = vsel %vm420_vm14, %v611_v61, %v607_v63  ;;  %v626_v0 = vsel %vm420_vm14, %v625_v4, %v621_v56 }
 0x8ee   : > { %616 = vst.msk [vmem:[%s615_s20] sm:$0x3] %vm423_vm15, %v612_v62  ;;  %v628_v59 = vadd.f32 %v626_v0, %v1930_v54  ;;  %v993_v1 = vmul.f32 %v1288_v9, %v1286_v10 }
 0x8f0   : > { %630 = vst.msk [vmem:[#allocation4] sm:$0x3] %vm629_vm3, %v628_v59  ;;  %995 = vrot.lane.b32.xlu0 %v993_v1, %s1325_s27  ;;  %v1004_v3 = vpack.c.bf16 %v993_v1, %v993_v1 }
 0x8f2   : > { %v1012_v55 = vrot.slane %v1004_v3, %v1690_v5 }
 0x8f4   : > { %v1019_v8 = vrot.slane %v1012_v55, %v1690_v5 }
 0x8f6   : > { %1020 = vrot.lane.b32.xlu0 %v1019_v8, %s1325_s27 }
 0x952   : > { %v1001_v11 = vpop.permute.xlu1 %1000 }
 0x953   : > { %1003 = vst.msk [vmem:[#allocation3 + $0x2] sm:$0x3] %vm52_vm0, %v1001_v11 }
 0x962   : > { %v996_v17 = vpop.permute.xlu0 %995 }
 0x963   : > { %998 = vst.msk [vmem:[#allocation2 + $0x2] sm:$0x3] %vm52_vm0, %v996_v17 }
 0x965   :  { %120 = sbr.rel (!%p118_p0) target bundleno = 21 (0x15), region = 101 }
 0x968   : > { %v1021_v58 = vpop.permute.xlu0 %1020 }
 0x969   : > { %1025 = vst.msk [vmem:[%s1023_s22] sm:$0x1] %vm1024_vm2, %v1021_v58 }
 0x96a   :  { %1300 = shalt.err (!%p1297_p5)
}
 0x96b   :  { %s1329_s3 = smov 32   ;;  %s1330_s8 = smov 2  }
 0x96c   :  { %1123 = dma.vmem_to_hbm [thread:$0]  %s1118_s23, 192, %s1902_s14, [#allocation6], %s1329_s3, %s1329_s3, %s1330_s8  }
 0x96d   :  { %1313 = dma.done.wait [#allocation6], 192  }
 0x96e   :  { %1314 = vsyncadd [#allocation6], 4294967104 }
 0x96f   :  { %1131 = vsyncpa [#allocation6], 1 }

// kernel: tacotron2_forward.24
= control target key start
LH: loop header
LB: loop body
LE: loop exit
PB: predicated region body
PF: predicated region fallthrough
CT: control target
= control target key end

     0   :  { %v227_v0 = vmov 0   ;;  %vm109_vm0 = vcmask 261120   ;;  %vm182_vm1 = vcmask 257024   ;;  %vm184_vm2 = vcmask 254976   ;;  %s301_s1 = inlined_call_operand.vmem [shape: bf16[160,32], index: 1, kind: input, shape index: {}]   ;;  %s302_s0 = inlined_call_operand.vmem [shape: bf16[12,160], index: 0, kind: input, shape index: {}]   ;;  %s303_s2 = inlined_call_operand.vmem [shape: f32[1,32], index: 2, kind: input, shape index: {}]   ;;  %s304_s3 = inlined_call_operand.vmem [shape: f32[1,32], index: 3, kind: input, shape index: {}]   ;;  %s305_s4 = inlined_call_operand.vmem [shape: bf16[12,32], index: 4, kind: output, shape index: {}]  }
   0x1   :  { %113 = vmatprep.subr.bf16.mxu0 %v227_v0  ;;  %v210_v1 = vld [vmem:[%s301_s1 + $0x38] sm:$0xff]   ;;  %v211_v2 = vld [vmem:[%s301_s1 + $0x30] sm:$0xff]   ;;  %v212_v3 = vld [vmem:[%s301_s1 + $0x28] sm:$0xff]  }
   0x2   :  { %114 = vmatpush1.bf16.msra.mxu0 %v210_v1  ;;  %v213_v4 = vld [vmem:[%s301_s1 + $0x20] sm:$0xff]   ;;  %v214_v6 = vld [vmem:[%s301_s1 + $0x18] sm:$0xff]   ;;  %v215_v7 = vld [vmem:[%s301_s1 + $0x10] sm:$0xff]  }
   0x3   :  { %115 = vmatprep.subr.bf16.mxu0 %v227_v0  ;;  %v222_v5 = vld [vmem:[%s302_s0 + $0x4] ss:$8 sps:$4 sm:$0x3f]   ;;  %v220_v12 = vld [vmem:[%s302_s0] ss:$8 sps:$4 sm:$0x3f]  }
   0x4   :  { %202 = vmatprep.mubr.msk.bf16.mxu0 %vm109_vm0, %v222_v5  ;;  %v216_v8 = vld [vmem:[%s301_s1 + $0x8] sm:$0xff]   ;;  %v217_v9 = vld [vmem:[%s301_s1] sm:$0xff]  }
   0x5   :  { %v218_v10 = vld [vmem:[%s301_s1 + $0x48] sm:$0xff]   ;;  %v219_v11 = vld [vmem:[%s301_s1 + $0x40] sm:$0xff]  }
   0x6   :  { %116 = vmatpush1.bf16.msra.mxu0 %v211_v2  ;;  %v203_v13 = vld [vmem:[%s303_s2] ss:$0 sm:$0xff] }
   0x7   :  { %117 = vmatprep.subr.bf16.mxu0 %v227_v0  ;;  %v204_v15 = vld [vmem:[%s304_s3] ss:$0 sm:$0xff] }
   0xa   :  { %118 = vmatpush1.bf16.msra.mxu0 %v212_v3 }
   0xb   :  { %119 = vmatprep.subr.bf16.mxu0 %v227_v0 }
   0xe   :  { %120 = vmatpush1.bf16.msra.mxu0 %v213_v4 }
   0xf   :  { %121 = vmatprep.subr.bf16.mxu0 %v227_v0 }
  0x12   :  { %122 = vmatpush1.bf16.msra.mxu0 %v214_v6 }
  0x13   :  { %123 = vmatprep.subr.bf16.mxu0 %v227_v0 }
  0x16   :  { %124 = vmatpush1.bf16.msra.mxu0 %v215_v7 }
  0x17   :  { %125 = vmatprep.subr.bf16.mxu0 %v227_v0 }
  0x1a   :  { %126 = vmatpush1.bf16.msra.mxu0 %v216_v8 }
  0x1b   :  { %127 = vmatprep.subr.bf16.mxu0 %v227_v0 }
  0x1e   :  { %128 = vmatpush1.bf16.msra.mxu0 %v217_v9 }
  0x1f   :  { %141 = vmatprep.subr.bf16.mxu0 %v227_v0 }
  0x22   :  { %142 = vmatpush2.bf16.msra.mxu0 %v218_v10 }
  0x23   :  { %143 = vmatprep.subr.bf16.mxu0 %v227_v0 }
  0x26   :  { %144 = vmatpush2.bf16.msra.mxu0 %v219_v11 }
  0x29   :  { %146 = vmatmul.mubr.bf16.vlgmr.msra.gmra.mxu0 %v220_v12 }
  0xe9   :  { %v147_v14 = vpop.f32.mrf.mxu0 }
  0xea   :  { %v161_v16 = vmul.f32 %v203_v13, %v147_v14 }
  0xeb   :  { %v149_v17 = vpop.f32.mrf.mxu0 }
  0xec   :  { %v170_v18 = vadd.f32 %v204_v15, %v161_v16 }
  0xed   :  { %v150_v19 = vpop.f32.mrf.mxu0 }
  0xee   :  { %223 = vtanh.f32 %v170_v18  ;;  %v162_v20 = vmul.f32 %v203_v13, %v150_v19 }
  0xef   :  { %v152_v21 = vpop.f32.mrf.mxu0 }
  0xf0   :  { %v171_v22 = vadd.f32 %v204_v15, %v162_v20 }
  0xf2   :  { %225 = vtanh.f32 %v171_v22 }
  0xfb   :  { %v224_v23 = vpop.eup %223 }
  0xfc   :  { %v207_v24 = vpack.c.bf16 %v224_v23, %v224_v23 }
  0xfe   :  { %183 = vst.msk [vmem:[%s305_s4] sm:$0xf] %vm182_vm1, %v207_v24 }
  0xff   :  { %v226_v25 = vpop.eup %225 }
 0x100   :  { %v208_v26 = vpack.c.bf16 %v226_v25, %v226_v25 }
 0x102   :  { %185 = vst.msk [vmem:[%s305_s4 + $0x4] sm:$0x3] %vm184_vm2, %v208_v26 }

// kernel: tacotron2_forward.25
= control target key start
LH: loop header
LB: loop body
LE: loop exit
PB: predicated region body
PF: predicated region fallthrough
CT: control target
= control target key end

     0   :  { %v209_v0 = vmov 0   ;;  %vm109_vm0 = vcmask 261120   ;;  %vm172_vm1 = vcmask 130048   ;;  %vm174_vm2 = vcmask 125952   ;;  %s283_s1 = inlined_call_operand.vmem [shape: bf16[160,16], index: 1, kind: input, shape index: {}]   ;;  %s284_s0 = inlined_call_operand.vmem [shape: bf16[12,160], index: 0, kind: input, shape index: {}]   ;;  %s285_s2 = inlined_call_operand.vmem [shape: f32[1,16], index: 2, kind: input, shape index: {}]   ;;  %s286_s3 = inlined_call_operand.vmem [shape: f32[1,16], index: 3, kind: input, shape index: {}]   ;;  %s287_s4 = inlined_call_operand.vmem [shape: f32[12,16], index: 4, kind: output, shape index: {}]  }
   0x1   :  { %113 = vmatprep.subr.bf16.mxu0 %v209_v0  ;;  %v196_v1 = vld [vmem:[%s283_s1 + $0x38] sm:$0xff]   ;;  %v197_v2 = vld [vmem:[%s283_s1 + $0x30] sm:$0xff]   ;;  %v198_v3 = vld [vmem:[%s283_s1 + $0x28] sm:$0xff]  }
   0x2   :  { %114 = vmatpush1.bf16.msra.mxu0 %v196_v1  ;;  %v199_v4 = vld [vmem:[%s283_s1 + $0x20] sm:$0xff]   ;;  %v200_v6 = vld [vmem:[%s283_s1 + $0x18] sm:$0xff]   ;;  %v201_v7 = vld [vmem:[%s283_s1 + $0x10] sm:$0xff]  }
   0x3   :  { %115 = vmatprep.subr.bf16.mxu0 %v209_v0  ;;  %v208_v5 = vld [vmem:[%s284_s0 + $0x4] ss:$8 sps:$4 sm:$0x3f]   ;;  %v206_v12 = vld [vmem:[%s284_s0] ss:$8 sps:$4 sm:$0x3f]  }
   0x4   :  { %192 = vmatprep.mubr.msk.bf16.mxu0 %vm109_vm0, %v208_v5  ;;  %v202_v8 = vld [vmem:[%s283_s1 + $0x8] sm:$0xff]   ;;  %v203_v9 = vld [vmem:[%s283_s1] sm:$0xff]  }
   0x5   :  { %v204_v10 = vld [vmem:[%s283_s1 + $0x48] sm:$0xff]   ;;  %v205_v11 = vld [vmem:[%s283_s1 + $0x40] sm:$0xff]  }
   0x6   :  { %116 = vmatpush1.bf16.msra.mxu0 %v197_v2  ;;  %v193_v13 = vld [vmem:[%s285_s2] ss:$0 sm:$0xff] }
   0x7   :  { %117 = vmatprep.subr.bf16.mxu0 %v209_v0  ;;  %v194_v15 = vld [vmem:[%s286_s3] ss:$0 sm:$0xff] }
   0xa   :  { %118 = vmatpush1.bf16.msra.mxu0 %v198_v3 }
   0xb   :  { %119 = vmatprep.subr.bf16.mxu0 %v209_v0 }
   0xe   :  { %120 = vmatpush1.bf16.msra.mxu0 %v199_v4 }
   0xf   :  { %121 = vmatprep.subr.bf16.mxu0 %v209_v0 }
  0x12   :  { %122 = vmatpush1.bf16.msra.mxu0 %v200_v6 }
  0x13   :  { %123 = vmatprep.subr.bf16.mxu0 %v209_v0 }
  0x16   :  { %124 = vmatpush1.bf16.msra.mxu0 %v201_v7 }
  0x17   :  { %125 = vmatprep.subr.bf16.mxu0 %v209_v0 }
  0x1a   :  { %126 = vmatpush1.bf16.msra.mxu0 %v202_v8 }
  0x1b   :  { %127 = vmatprep.subr.bf16.mxu0 %v209_v0 }
  0x1e   :  { %128 = vmatpush1.bf16.msra.mxu0 %v203_v9 }
  0x1f   :  { %141 = vmatprep.subr.bf16.mxu0 %v209_v0 }
  0x22   :  { %142 = vmatpush2.bf16.msra.mxu0 %v204_v10 }
  0x23   :  { %143 = vmatprep.subr.bf16.mxu0 %v209_v0 }
  0x26   :  { %144 = vmatpush2.bf16.msra.mxu0 %v205_v11 }
  0x29   :  { %146 = vmatmul.mubr.bf16.vlgmr.msra.gmra.mxu0 %v206_v12 }
  0xe9   :  { %v147_v14 = vpop.f32.mrf.mxu0 }
  0xea   :  { %v161_v16 = vmul.f32 %v193_v13, %v147_v14 }
  0xeb   :  { %v149_v17 = vpop.f32.mrf.mxu0 }
  0xec   :  { %v170_v18 = vadd.f32 %v194_v15, %v161_v16 }
  0xed   :  { %v150_v19 = vpop.f32.mrf.mxu0 }
  0xee   :  { %173 = vst.msk [vmem:[%s287_s4] sm:$0xff] %vm172_vm1, %v170_v18  ;;  %v162_v20 = vmul.f32 %v193_v13, %v150_v19 }
  0xef   :  { %v152_v21 = vpop.f32.mrf.mxu0 }
  0xf0   :  { %v171_v22 = vadd.f32 %v194_v15, %v162_v20 }
  0xf2   :  { %175 = vst.msk [vmem:[%s287_s4 + $0x8] sm:$0xf] %vm174_vm2, %v171_v22 }

</bundles_post_ra>
